<compile_context>
chip_gen: v7x
topology: tpu7x:2x2x1
jax: 0.10.0
libtpu: 0.0.40
codegen_flags: <defaults>
</compile_context>

<pallas_src>
import functools

import numpy as np
import jax
import jax.numpy as jnp
from jax.experimental import pallas as pl
from jax.experimental.pallas import tpu as pltpu

K_KEYPOINTS = 8
GRID_PTS = 16 * 16 * 8      # 2048, fixed by gen_grid2d
LINES_TILE = 512            # lane tile for the draw_lines kernel (multiple of 128)


# ------------------------------------------- fused keypoint chain (per batch)
def _kp_kernel(x_ref, w1_ref, b1_ref, w2_ref, b2_ref, kpcd_ref, *, hard):
    x = x_ref[0]                               # (N, 3)
    k = w2_ref.shape[0]

    # kp1 = relu(W1 @ x^T + b1): contract the size-3 coordinate axis of both operands
    # (equivalent to an einsum 'kd,nd->kn'); result is lane-dense (k, N).
    kp1 = jax.lax.dot_general(w1_ref[...], x, (((1,), (1,)), ((), ())),
                              preferred_element_type=jnp.float32)
    kp1 = jnp.maximum(kp1 + b1_ref[...], 0.0)  # (k, N)

    # logits = W2 @ kp1 + b2 -- K=k (8): VPU broadcast-FMA, no MXU needed.
    w2 = w2_ref[...]
    logits = b2_ref[...] + w2[:, 0:1] * kp1[0:1, :]
    for c in range(1, k):
        logits = logits + w2[:, c:c + 1] * kp1[c:c + 1, :]

    # softmax over the points axis (lane axis), optional hard one-hot (eval mode)
    m = jnp.max(logits, axis=-1, keepdims=True)
    e = jnp.exp(logits - m)
    h = e / jnp.sum(e, axis=-1, keepdims=True)
    if hard:
        # (heatmaps == heatmaps.max(dim=2, keepdim=True)).to(input_x)
        h = (h == jnp.max(h, axis=-1, keepdims=True)).astype(jnp.float32)

    # kpcd = h @ x : plain matmul (k, N) @ (N, 3) -> (k, 3); no transposes required.
    kpcd_ref[0] = jnp.dot(h, x, preferred_element_type=jnp.float32)


def kp_chain(x, w1, b1, w2, b2, *, hard):
    B, N, _ = x.shape
    k = w1.shape[0]
    return pl.pallas_call(
        functools.partial(_kp_kernel, hard=hard),
        out_shape=jax.ShapeDtypeStruct((B, k, 3), jnp.float32),
        grid=(B,),
        in_specs=[
            pl.BlockSpec((1, N, 3), lambda b: (b, 0, 0)),
            pl.BlockSpec((k, 3), lambda b: (0, 0)),
            pl.BlockSpec((k, 1), lambda b: (0, 0)),
            pl.BlockSpec((k, k), lambda b: (0, 0)),
            pl.BlockSpec((k, 1), lambda b: (0, 0)),
        ],
        out_specs=pl.BlockSpec((1, k, 3), lambda b: (b, 0, 0)),
        compiler_params=pltpu.CompilerParams(dimension_semantics=("parallel",)),
    )(x, w1, b1, w2, b2)


# --------------------------- fused MA head (max-pool + l3 + PBlock + sigmoid Linear)
def _ma_kernel(x_ref, l3w_ref, l3b_ref,
               w0_ref, b0_ref, g0_ref, be0_ref,
               w1_ref, b1_ref, g1_ref, be1_ref,
               wl_ref, bl_ref, out_ref):
    # global max-pool over the points axis (fused in; the l3_feats max_pool1d stand-in)
    pooled = jnp.max(x_ref[...], axis=1)                        # (B, 3)

    # l3 dense: bf16 weights, f32 accumulation
    x = jnp.dot(pooled.astype(jnp.bfloat16), l3w_ref[...],
                preferred_element_type=jnp.float32)
    x = jnp.maximum(x + l3b_ref[...], 0.0)                      # (B, 1024)

    def linear_bn_relu(x, w, b, g, beta):
        # Linear (bf16 weights, f32 acc) -> BatchNorm1d (training-mode batch stats,
        # eps=1e-5, biased var) -> ReLU
        y = jnp.dot(x.astype(jnp.bfloat16), w,
                    preferred_element_type=jnp.float32) + b
        mean = jnp.mean(y, axis=0, keepdims=True)
        var = jnp.mean(jnp.square(y - mean), axis=0, keepdims=True)
        y = (y - mean) * jax.lax.rsqrt(var + 1e-5)
        return jnp.maximum(g * y + beta, 0.0)

    h = linear_bn_relu(x, w0_ref[...], b0_ref[...], g0_ref[...], be0_ref[...])   # (B, 512)
    h = linear_bn_relu(h, w1_ref[...], b1_ref[...], g1_ref[...], be1_ref[...])   # (B, 256)
    s = jnp.dot(h.astype(jnp.bfloat16), wl_ref[...],
                preferred_element_type=jnp.float32) + bl_ref[...]
    out_ref[...] = jax.nn.sigmoid(s)                            # (B, P)


def ma_head(input_x, p):
    B = input_x.shape[0]
    P = p["mal_wt"].shape[1]
    vspec = pl.BlockSpec(memory_space=pltpu.MemorySpace.VMEM)
    return pl.pallas_call(
        _ma_kernel,
        out_shape=jax.ShapeDtypeStruct((B, P), jnp.float32),
        in_specs=[vspec] * 13,
        out_specs=vspec,
    )(input_x, p["l3_wt"], p["l3_b"],
      p["ma0_wt"], p["ma0_b"], p["ma0_g"], p["ma0_beta"],
      p["ma1_wt"], p["ma1_b"], p["ma1_g"], p["ma1_beta"],
      p["mal_wt"], p["mal_b"])


# ----- draw_lines + strength scaling + max over pairs + grid coords (fused, G-tiled)
def _lines_kernel(kp_ref, sel0_ref, sel1_ref, st_ref, out_ref):
    c = pl.program_id(1)
    # grid coordinates for this 512-lane chunk, generated in-kernel (no grid input)
    gidx = c * LINES_TILE + jax.lax.broadcasted_iota(jnp.int32, (1, LINES_TILE), 1)
    i0 = gidx >> 7                # g // 128
    i1 = (gidx >> 3) & 15         # (g // 8) % 16
    i2 = gidx & 7                 # g % 8
    gx = i0.astype(jnp.float32) * (2.0 / 15.0) - 1.0
    gy = i1.astype(jnp.float32) * (2.0 / 15.0) - 1.0
    gz = i2.astype(jnp.float32) * (2.0 / 7.0) - 1.0

    kp = kp_ref[0]                                     # (k, 3)
    sel0 = sel0_ref[...]                               # (P, k) one-hot start selection
    sel1 = sel1_ref[...]                               # (P, k) one-hot end selection
    k = sel0.shape[1]

    # start/end gather fused in-kernel: static pair indices -> VPU broadcast-FMAs
    start = sel0[:, 0:1] * kp[0:1, :]
    end = sel1[:, 0:1] * kp[0:1, :]
    for j in range(1, k):
        start = start + sel0[:, j:j + 1] * kp[j:j + 1, :]
        end = end + sel1[:, j:j + 1] * kp[j:j + 1, :]

    st = st_ref[0]                                     # (P, 1)
    sx, sy, sz = start[:, 0:1], start[:, 1:2], start[:, 2:3]
    dx, dy, dz = end[:, 0:1] - sx, end[:, 1:2] - sy, end[:, 2:3] - sz
    dd = dx * dx + dy * dy + dz * dz                   # |d|^2            (P, 1)
    inv_denom = 1.0 / (dd + 1e-8)

    # accumulate t_num = diff_to_start . d and d2s = |diff_to_start|^2 coordinate-wise
    dts = gx - sx                                      # (P, T)
    t_num = dts * dx
    d2s = dts * dts
    dts = gy - sy
    t_num = t_num + dts * dy
    d2s = d2s + dts * dts
    dts = gz - sz
    t_num = t_num + dts * dz
    d2s = d2s + dts * dts

    t = t_num * inv_denom
    # before_start: d2s ; after_end: d2s - 2*t_num + |d|^2 ; between: d2s - t*t_num
    corr = jnp.where(t <= 0.0, 0.0,
                     jnp.where(t >= 1.0, 2.0 * t_num - dd, t * t_num))
    sq = jnp.maximum(d2s - corr, 0.0)
    heat = jnp.exp(sq * -400.0) * st                   # exp(-sq/0.0025) * strength
    hmax = jnp.max(heat, axis=0, keepdims=True)        # max over pairs -> (1, T)

    # lane-dense feature slab: row 0 = heat max, rows 1-3 = grid x/y/z
    out_ref[0] = jnp.concatenate([hmax, gx, gy, gz], axis=0)   # (4, T)


def draw_lines_features(kpcd, strengths3, sel0, sel1):
    B, k, _ = kpcd.shape
    P = sel0.shape[0]
    return pl.pallas_call(
        _lines_kernel,
        out_shape=jax.ShapeDtypeStruct((B, 4, GRID_PTS), jnp.float32),
        grid=(B, GRID_PTS // LINES_TILE),
        in_specs=[
            pl.BlockSpec((1, k, 3), lambda b, c: (b, 0, 0)),
            pl.BlockSpec((P, k), lambda b, c: (0, 0)),
            pl.BlockSpec((P, k), lambda b, c: (0, 0)),
            pl.BlockSpec((1, P, 1), lambda b, c: (b, 0, 0)),
        ],
        out_specs=pl.BlockSpec((1, 4, LINES_TILE), lambda b, c: (b, 0, c)),
        compiler_params=pltpu.CompilerParams(
            dimension_semantics=("parallel", "parallel")),
    )(kpcd, sel0, sel1, strengths3)


# ------------------------------------------------------------------ Net glue
def init_params(key, k):
    n_pairs = k * (k - 1) // 2
    keys = jax.random.split(key, 10)

    def w(kk, shape, dtype=jnp.float32, scale=0.05):
        return (scale * jax.random.normal(kk, shape)).astype(dtype)

    return {
        # PointNetPP stand-in, pre-folded for concat([x,x,x]) and stored (out, in)
        "ptw_wt": w(keys[0], (k, 3)), "ptw_b": jnp.zeros((k, 1), jnp.float32),
        # l3 dense (bf16 weights, f32 bias)
        "l3_wt": w(keys[1], (3, 1024), jnp.bfloat16),
        "l3_b": jnp.zeros((1, 1024), jnp.float32),
        # PT_L : Linear(k, k), stored (out, in) like the PyTorch weight
        "ptl_wt": w(keys[2], (k, k)), "ptl_b": w(keys[3], (k, 1)),
        # MA = PBlock(1024, 512, 256, should_perm=False) -- weights bf16
        "ma0_wt": w(keys[4], (1024, 512), jnp.bfloat16), "ma0_b": w(keys[5], (1, 512)),
        "ma0_g": jnp.ones((1, 512), jnp.float32), "ma0_beta": jnp.zeros((1, 512), jnp.float32),
        "ma1_wt": w(keys[6], (512, 256), jnp.bfloat16), "ma1_b": w(keys[7], (1, 256)),
        "ma1_g": jnp.ones((1, 256), jnp.float32), "ma1_beta": jnp.zeros((1, 256), jnp.float32),
        # MA_L : Linear(256, n_pairs) -- weights bf16
        "mal_wt": w(keys[8], (256, n_pairs), jnp.bfloat16), "mal_b": w(keys[9], (1, n_pairs)),
    }


def net_forward(params, input_x, k=K_KEYPOINTS, train=True):
    B, C, _ = input_x.shape                    # C = num points, last dim = 3 (xyz)

    # TODO(synk): PointNetPP backbone source was not provided; a deterministic pointwise-MLP
    # stand-in (folded into the fused kernels below) produces kp_x / global features with the
    # shapes the rest of the forward requires.

    # ---- fused keypoint chain: PTW stand-in -> PT_L -> softmax(/hard) -> bmm  (1 call)
    kpcd = kp_chain(input_x, params["ptw_wt"], params["ptw_b"],
                    params["ptl_wt"], params["ptl_b"], hard=not train)   # (B, k, 3)

    # ---- fused MA head: max-pool + l3 dense -> PBlock(512,256) -> sigmoid MA_L  (1 call)
    strengths = ma_head(input_x, params)                                 # (B, P)

    # skeleton pairs (torch.triu_indices(k, k, offset=1), row-major) as one-hot selectors
    idx0, idx1 = np.triu_indices(k, 1)
    P = idx0.shape[0]
    sel0 = np.zeros((P, k), np.float32); sel0[np.arange(P), idx0] = 1.0
    sel1 = np.zeros((P, k), np.float32); sel1[np.arange(P), idx1] = 1.0

    # draw_lines heatmaps * strengths, max over pairs, + grid coords — fused, G-tiled
    fmap = draw_lines_features(kpcd, strengths[:, :, None],
                               jnp.asarray(sel0), jnp.asarray(sel1))     # (B, 4, 2048)
    feature_map = jnp.transpose(fmap, (0, 2, 1))                         # (B, 2048, 4)

    # TODO(synk): Decoder source was not provided; `reconstruct` cannot be reproduced, so the
    # decoder's input feature_map (B, 2048, 4) is returned in its place.
    return kpcd, feature_map


if __name__ == "__main__":
    key = jax.random.PRNGKey(0)
    k_params, k_input = jax.random.split(key)
    B, N = 2, 256
    params = init_params(k_params, K_KEYPOINTS)
    input_x = jax.random.normal(k_input, (B, N, 3), dtype=jnp.float32)

    fwd = jax.jit(functools.partial(net_forward, train=True))
    kpcd, feature_map = fwd(params, input_x)
    jax.block_until_ready((kpcd, feature_map))
    assert kpcd.shape == (B, K_KEYPOINTS, 3)
    assert feature_map.shape == (B, GRID_PTS, 4)
    print("KERNEL_OK")
</pallas_src>

<mosaic_0001>
module attributes {stable_mosaic.version = 11 : i64} {
  func.func @_kp_kernel(%arg0: i32, %arg1: memref<1x256x3xf32, #tpu.memory_space<vmem>>, %arg2: memref<8x3xf32, #tpu.memory_space<vmem>>, %arg3: memref<8x1xf32, #tpu.memory_space<vmem>>, %arg4: memref<8x8xf32, #tpu.memory_space<vmem>>, %arg5: memref<8x1xf32, #tpu.memory_space<vmem>>, %arg6: memref<1x8x3xf32, #tpu.memory_space<vmem>>) attributes {dimension_semantics = [#tpu.dimension_semantics<parallel>], iteration_bounds = array<i64: 2>, scalar_prefetch = 0 : i64, scratch_operands = 0 : i64, tpu.core_type = #tpu.core_type<tc>, window_params = [{transform_indices = @transform_0, window_bounds = array<i64: 1, 256, 3>}, {pipeline_mode = #tpu.pipeline_mode<synchronous>, transform_indices = @transform_1, window_bounds = array<i64: 8, 3>}, {pipeline_mode = #tpu.pipeline_mode<synchronous>, transform_indices = @transform_2, window_bounds = array<i64: 8, 1>}, {pipeline_mode = #tpu.pipeline_mode<synchronous>, transform_indices = @transform_3, window_bounds = array<i64: 8, 8>}, {pipeline_mode = #tpu.pipeline_mode<synchronous>, transform_indices = @transform_4, window_bounds = array<i64: 8, 1>}, {transform_indices = @transform_5, window_bounds = array<i64: 1, 8, 3>}]} {
    %c0 = arith.constant 0 : index
    %c0_0 = arith.constant 0 : index
    %c0_1 = arith.constant 0 : index
    %0 = vector.load %arg1[%c0, %c0_0, %c0_1] : memref<1x256x3xf32, #tpu.memory_space<vmem>>, vector<1x256x3xf32>
    %1 = vector.shape_cast %0 : vector<1x256x3xf32> to vector<256x3xf32>
    %c0_2 = arith.constant 0 : index
    %c0_3 = arith.constant 0 : index
    %2 = vector.load %arg2[%c0_2, %c0_3] : memref<8x3xf32, #tpu.memory_space<vmem>>, vector<8x3xf32>
    %cst = arith.constant dense<0.000000e+00> : vector<8x256xf32>
    %3 = tpu.matmul %2, %1, %cst {dimension_numbers = #tpu.dot_dimension_numbers<[1], [1], [0], [0], [0, 0, 1, 0], [], []>} : vector<8x3xf32>, vector<256x3xf32>, vector<8x256xf32> -> vector<8x256xf32>
    %c0_4 = arith.constant 0 : index
    %c0_5 = arith.constant 0 : index
    %4 = vector.load %arg3[%c0_4, %c0_5] : memref<8x1xf32, #tpu.memory_space<vmem>>, vector<8x1xf32>
    %5 = vector.broadcast %4 : vector<8x1xf32> to vector<8x256xf32>
    %6 = arith.addf %3, %5 : vector<8x256xf32>
    %cst_6 = arith.constant 0.000000e+00 : f32
    %7 = vector.broadcast %cst_6 : f32 to vector<8x256xf32>
    %8 = arith.maximumf %6, %7 : vector<8x256xf32>
    %c0_7 = arith.constant 0 : index
    %c0_8 = arith.constant 0 : index
    %9 = vector.load %arg4[%c0_7, %c0_8] : memref<8x8xf32, #tpu.memory_space<vmem>>, vector<8x8xf32>
    %c0_9 = arith.constant 0 : index
    %c0_10 = arith.constant 0 : index
    %10 = vector.load %arg5[%c0_9, %c0_10] : memref<8x1xf32, #tpu.memory_space<vmem>>, vector<8x1xf32>
    %11 = vector.extract_strided_slice %9 {offsets = [0, 0], sizes = [8, 1], strides = [1, 1]} : vector<8x8xf32> to vector<8x1xf32>
    %12 = vector.extract_strided_slice %8 {offsets = [0, 0], sizes = [1, 256], strides = [1, 1]} : vector<8x256xf32> to vector<1x256xf32>
    %13 = vector.broadcast %11 : vector<8x1xf32> to vector<8x256xf32>
    %14 = vector.broadcast %12 : vector<1x256xf32> to vector<8x256xf32>
    %15 = arith.mulf %13, %14 : vector<8x256xf32>
    %16 = vector.broadcast %10 : vector<8x1xf32> to vector<8x256xf32>
    %17 = arith.addf %16, %15 : vector<8x256xf32>
    %18 = vector.extract_strided_slice %9 {offsets = [0, 1], sizes = [8, 1], strides = [1, 1]} : vector<8x8xf32> to vector<8x1xf32>
    %19 = vector.extract_strided_slice %8 {offsets = [1, 0], sizes = [1, 256], strides = [1, 1]} : vector<8x256xf32> to vector<1x256xf32>
    %20 = vector.broadcast %18 : vector<8x1xf32> to vector<8x256xf32>
    %21 = vector.broadcast %19 : vector<1x256xf32> to vector<8x256xf32>
    %22 = arith.mulf %20, %21 : vector<8x256xf32>
    %23 = arith.addf %17, %22 : vector<8x256xf32>
    %24 = vector.extract_strided_slice %9 {offsets = [0, 2], sizes = [8, 1], strides = [1, 1]} : vector<8x8xf32> to vector<8x1xf32>
    %25 = vector.extract_strided_slice %8 {offsets = [2, 0], sizes = [1, 256], strides = [1, 1]} : vector<8x256xf32> to vector<1x256xf32>
    %26 = vector.broadcast %24 : vector<8x1xf32> to vector<8x256xf32>
    %27 = vector.broadcast %25 : vector<1x256xf32> to vector<8x256xf32>
    %28 = arith.mulf %26, %27 : vector<8x256xf32>
    %29 = arith.addf %23, %28 : vector<8x256xf32>
    %30 = vector.extract_strided_slice %9 {offsets = [0, 3], sizes = [8, 1], strides = [1, 1]} : vector<8x8xf32> to vector<8x1xf32>
    %31 = vector.extract_strided_slice %8 {offsets = [3, 0], sizes = [1, 256], strides = [1, 1]} : vector<8x256xf32> to vector<1x256xf32>
    %32 = vector.broadcast %30 : vector<8x1xf32> to vector<8x256xf32>
    %33 = vector.broadcast %31 : vector<1x256xf32> to vector<8x256xf32>
    %34 = arith.mulf %32, %33 : vector<8x256xf32>
    %35 = arith.addf %29, %34 : vector<8x256xf32>
    %36 = vector.extract_strided_slice %9 {offsets = [0, 4], sizes = [8, 1], strides = [1, 1]} : vector<8x8xf32> to vector<8x1xf32>
    %37 = vector.extract_strided_slice %8 {offsets = [4, 0], sizes = [1, 256], strides = [1, 1]} : vector<8x256xf32> to vector<1x256xf32>
    %38 = vector.broadcast %36 : vector<8x1xf32> to vector<8x256xf32>
    %39 = vector.broadcast %37 : vector<1x256xf32> to vector<8x256xf32>
    %40 = arith.mulf %38, %39 : vector<8x256xf32>
    %41 = arith.addf %35, %40 : vector<8x256xf32>
    %42 = vector.extract_strided_slice %9 {offsets = [0, 5], sizes = [8, 1], strides = [1, 1]} : vector<8x8xf32> to vector<8x1xf32>
    %43 = vector.extract_strided_slice %8 {offsets = [5, 0], sizes = [1, 256], strides = [1, 1]} : vector<8x256xf32> to vector<1x256xf32>
    %44 = vector.broadcast %42 : vector<8x1xf32> to vector<8x256xf32>
    %45 = vector.broadcast %43 : vector<1x256xf32> to vector<8x256xf32>
    %46 = arith.mulf %44, %45 : vector<8x256xf32>
    %47 = arith.addf %41, %46 : vector<8x256xf32>
    %48 = vector.extract_strided_slice %9 {offsets = [0, 6], sizes = [8, 1], strides = [1, 1]} : vector<8x8xf32> to vector<8x1xf32>
    %49 = vector.extract_strided_slice %8 {offsets = [6, 0], sizes = [1, 256], strides = [1, 1]} : vector<8x256xf32> to vector<1x256xf32>
    %50 = vector.broadcast %48 : vector<8x1xf32> to vector<8x256xf32>
    %51 = vector.broadcast %49 : vector<1x256xf32> to vector<8x256xf32>
    %52 = arith.mulf %50, %51 : vector<8x256xf32>
    %53 = arith.addf %47, %52 : vector<8x256xf32>
    %54 = vector.extract_strided_slice %9 {offsets = [0, 7], sizes = [8, 1], strides = [1, 1]} : vector<8x8xf32> to vector<8x1xf32>
    %55 = vector.extract_strided_slice %8 {offsets = [7, 0], sizes = [1, 256], strides = [1, 1]} : vector<8x256xf32> to vector<1x256xf32>
    %56 = vector.broadcast %54 : vector<8x1xf32> to vector<8x256xf32>
    %57 = vector.broadcast %55 : vector<1x256xf32> to vector<8x256xf32>
    %58 = arith.mulf %56, %57 : vector<8x256xf32>
    %59 = arith.addf %53, %58 : vector<8x256xf32>
    %cst_11 = arith.constant dense<0xFF800000> : vector<8xf32>
    %60 = vector.multi_reduction <maximumf>, %59, %cst_11 [1] : vector<8x256xf32> to vector<8xf32>
    %61 = vector.shape_cast %60 : vector<8xf32> to vector<8x1xf32>
    %62 = vector.broadcast %61 : vector<8x1xf32> to vector<8x256xf32>
    %63 = arith.subf %59, %62 : vector<8x256xf32>
    %64 = math.exp %63 : vector<8x256xf32>
    %cst_12 = arith.constant dense<0.000000e+00> : vector<8xf32>
    %65 = vector.multi_reduction <add>, %64, %cst_12 [1] : vector<8x256xf32> to vector<8xf32>
    %66 = vector.shape_cast %65 : vector<8xf32> to vector<8x1xf32>
    %67 = vector.broadcast %66 : vector<8x1xf32> to vector<8x256xf32>
    %68 = arith.divf %64, %67 : vector<8x256xf32>
    %cst_13 = arith.constant dense<0.000000e+00> : vector<8x3xf32>
    %69 = tpu.matmul %68, %1, %cst_13 {dimension_numbers = #tpu.dot_dimension_numbers<[1], [0], [0], [1], [0, 0, 1, 1], [], []>} : vector<8x256xf32>, vector<256x3xf32>, vector<8x3xf32> -> vector<8x3xf32>
    %c0_14 = arith.constant 0 : index
    %c0_15 = arith.constant 0 : index
    %c0_16 = arith.constant 0 : index
    %70 = vector.load %arg6[%c0_14, %c0_15, %c0_16] : memref<1x8x3xf32, #tpu.memory_space<vmem>>, vector<1x8x3xf32>
    %71 = vector.shape_cast %70 : vector<1x8x3xf32> to vector<8x3xf32>
    %72 = vector.shape_cast %69 : vector<8x3xf32> to vector<1x8x3xf32>
    tpu.vector_store %arg6[%c0_14, %c0_15, %c0_16], %72 {strides = array<i32>} : memref<1x8x3xf32, #tpu.memory_space<vmem>>, vector<1x8x3xf32>,
    return
  }
  func.func @transform_0(%arg0: i32) -> (i32, i32, i32) {
    %c0_i32 = arith.constant 0 : i32
    %c0_i32_0 = arith.constant 0 : i32
    %c0_i32_1 = arith.constant 0 : i32
    return %arg0, %c0_i32, %c0_i32_0 : i32, i32, i32
  }
  func.func @transform_1(%arg0: i32) -> (i32, i32) {
    %c0_i32 = arith.constant 0 : i32
    %c0_i32_0 = arith.constant 0 : i32
    %c0_i32_1 = arith.constant 0 : i32
    return %c0_i32, %c0_i32_0 : i32, i32
  }
  func.func @transform_2(%arg0: i32) -> (i32, i32) {
    %c0_i32 = arith.constant 0 : i32
    %c0_i32_0 = arith.constant 0 : i32
    %c0_i32_1 = arith.constant 0 : i32
    return %c0_i32, %c0_i32_0 : i32, i32
  }
  func.func @transform_3(%arg0: i32) -> (i32, i32) {
    %c0_i32 = arith.constant 0 : i32
    %c0_i32_0 = arith.constant 0 : i32
    %c0_i32_1 = arith.constant 0 : i32
    return %c0_i32, %c0_i32_0 : i32, i32
  }
  func.func @transform_4(%arg0: i32) -> (i32, i32) {
    %c0_i32 = arith.constant 0 : i32
    %c0_i32_0 = arith.constant 0 : i32
    %c0_i32_1 = arith.constant 0 : i32
    return %c0_i32, %c0_i32_0 : i32, i32
  }
  func.func @transform_5(%arg0: i32) -> (i32, i32, i32) {
    %c0_i32 = arith.constant 0 : i32
    %c0_i32_0 = arith.constant 0 : i32
    %c0_i32_1 = arith.constant 0 : i32
    return %arg0, %c0_i32, %c0_i32_0 : i32, i32, i32
  }
}

module attributes {stable_mosaic.version = 11 : i64} {
  func.func @_ma_kernel(%arg0: memref<2x256x3xf32, #tpu.memory_space<vmem>>, %arg1: memref<3x1024xbf16, #tpu.memory_space<vmem>>, %arg2: memref<1x1024xf32, #tpu.memory_space<vmem>>, %arg3: memref<1024x512xbf16, #tpu.memory_space<vmem>>, %arg4: memref<1x512xf32, #tpu.memory_space<vmem>>, %arg5: memref<1x512xf32, #tpu.memory_space<vmem>>, %arg6: memref<1x512xf32, #tpu.memory_space<vmem>>, %arg7: memref<512x256xbf16, #tpu.memory_space<vmem>>, %arg8: memref<1x256xf32, #tpu.memory_space<vmem>>, %arg9: memref<1x256xf32, #tpu.memory_space<vmem>>, %arg10: memref<1x256xf32, #tpu.memory_space<vmem>>, %arg11: memref<256x28xbf16, #tpu.memory_space<vmem>>, %arg12: memref<1x28xf32, #tpu.memory_space<vmem>>, %arg13: memref<2x28xf32, #tpu.memory_space<vmem>>) attributes {dimension_semantics = [], scalar_prefetch = 0 : i64, scratch_operands = 0 : i64, tpu.core_type = #tpu.core_type<tc>} {
    %c0 = arith.constant 0 : index
    %c0_0 = arith.constant 0 : index
    %c0_1 = arith.constant 0 : index
    %0 = vector.load %arg0[%c0, %c0_0, %c0_1] : memref<2x256x3xf32, #tpu.memory_space<vmem>>, vector<2x256x3xf32>
    %cst = arith.constant dense<0xFF800000> : vector<2x3xf32>
    %1 = vector.multi_reduction <maximumf>, %0, %cst [1] : vector<2x256x3xf32> to vector<2x3xf32>
    %2 = arith.truncf %1 : vector<2x3xf32> to vector<2x3xbf16>
    %c0_2 = arith.constant 0 : index
    %c0_3 = arith.constant 0 : index
    %3 = vector.load %arg1[%c0_2, %c0_3] : memref<3x1024xbf16, #tpu.memory_space<vmem>>, vector<3x1024xbf16>
    %cst_4 = arith.constant dense<0.000000e+00> : vector<2x1024xf32>
    %4 = tpu.matmul %2, %3, %cst_4 {dimension_numbers = #tpu.dot_dimension_numbers<[1], [0], [0], [1], [0, 0, 1, 1], [], []>} : vector<2x3xbf16>, vector<3x1024xbf16>, vector<2x1024xf32> -> vector<2x1024xf32>
    %c0_5 = arith.constant 0 : index
    %c0_6 = arith.constant 0 : index
    %5 = vector.load %arg2[%c0_5, %c0_6] : memref<1x1024xf32, #tpu.memory_space<vmem>>, vector<1x1024xf32>
    %6 = vector.broadcast %5 : vector<1x1024xf32> to vector<2x1024xf32>
    %7 = arith.addf %4, %6 : vector<2x1024xf32>
    %cst_7 = arith.constant 0.000000e+00 : f32
    %8 = vector.broadcast %cst_7 : f32 to vector<2x1024xf32>
    %9 = arith.maximumf %7, %8 : vector<2x1024xf32>
    %c0_8 = arith.constant 0 : index
    %c0_9 = arith.constant 0 : index
    %10 = vector.load %arg3[%c0_8, %c0_9] : memref<1024x512xbf16, #tpu.memory_space<vmem>>, vector<1024x512xbf16>
    %c0_10 = arith.constant 0 : index
    %c0_11 = arith.constant 0 : index
    %11 = vector.load %arg4[%c0_10, %c0_11] : memref<1x512xf32, #tpu.memory_space<vmem>>, vector<1x512xf32>
    %c0_12 = arith.constant 0 : index
    %c0_13 = arith.constant 0 : index
    %12 = vector.load %arg5[%c0_12, %c0_13] : memref<1x512xf32, #tpu.memory_space<vmem>>, vector<1x512xf32>
    %c0_14 = arith.constant 0 : index
    %c0_15 = arith.constant 0 : index
    %13 = vector.load %arg6[%c0_14, %c0_15] : memref<1x512xf32, #tpu.memory_space<vmem>>, vector<1x512xf32>
    %14 = arith.truncf %9 : vector<2x1024xf32> to vector<2x1024xbf16>
    %cst_16 = arith.constant dense<0.000000e+00> : vector<2x512xf32>
    %15 = tpu.matmul %14, %10, %cst_16 {dimension_numbers = #tpu.dot_dimension_numbers<[1], [0], [0], [1], [0, 0, 1, 1], [], []>} : vector<2x1024xbf16>, vector<1024x512xbf16>, vector<2x512xf32> -> vector<2x512xf32>
    %16 = vector.broadcast %11 : vector<1x512xf32> to vector<2x512xf32>
    %17 = arith.addf %15, %16 : vector<2x512xf32>
    %cst_17 = arith.constant dense<0.000000e+00> : vector<512xf32>
    %18 = vector.multi_reduction <add>, %17, %cst_17 [0] : vector<2x512xf32> to vector<512xf32>
    %19 = vector.shape_cast %18 : vector<512xf32> to vector<1x512xf32>
    %cst_18 = arith.constant 2.000000e+00 : f32
    %20 = vector.broadcast %cst_18 : f32 to vector<1x512xf32>
    %21 = arith.divf %19, %20 : vector<1x512xf32>
    %22 = vector.broadcast %21 : vector<1x512xf32> to vector<2x512xf32>
    %23 = arith.subf %17, %22 : vector<2x512xf32>
    %24 = arith.mulf %23, %23 : vector<2x512xf32>
    %cst_19 = arith.constant dense<0.000000e+00> : vector<512xf32>
    %25 = vector.multi_reduction <add>, %24, %cst_19 [0] : vector<2x512xf32> to vector<512xf32>
    %26 = vector.shape_cast %25 : vector<512xf32> to vector<1x512xf32>
    %cst_20 = arith.constant 2.000000e+00 : f32
    %27 = vector.broadcast %cst_20 : f32 to vector<1x512xf32>
    %28 = arith.divf %26, %27 : vector<1x512xf32>
    %29 = vector.broadcast %21 : vector<1x512xf32> to vector<2x512xf32>
    %30 = arith.subf %17, %29 : vector<2x512xf32>
    %cst_21 = arith.constant 9.99999974E-6 : f32
    %31 = vector.broadcast %cst_21 : f32 to vector<1x512xf32>
    %32 = arith.addf %28, %31 : vector<1x512xf32>
    %33 = math.rsqrt %32 : vector<1x512xf32>
    %34 = vector.broadcast %33 : vector<1x512xf32> to vector<2x512xf32>
    %35 = arith.mulf %30, %34 : vector<2x512xf32>
    %36 = vector.broadcast %12 : vector<1x512xf32> to vector<2x512xf32>
    %37 = arith.mulf %36, %35 : vector<2x512xf32>
    %38 = vector.broadcast %13 : vector<1x512xf32> to vector<2x512xf32>
    %39 = arith.addf %37, %38 : vector<2x512xf32>
    %cst_22 = arith.constant 0.000000e+00 : f32
    %40 = vector.broadcast %cst_22 : f32 to vector<2x512xf32>
    %41 = arith.maximumf %39, %40 : vector<2x512xf32>
    %c0_23 = arith.constant 0 : index
    %c0_24 = arith.constant 0 : index
    %42 = vector.load %arg7[%c0_23, %c0_24] : memref<512x256xbf16, #tpu.memory_space<vmem>>, vector<512x256xbf16>
    %c0_25 = arith.constant 0 : index
    %c0_26 = arith.constant 0 : index
    %43 = vector.load %arg8[%c0_25, %c0_26] : memref<1x256xf32, #tpu.memory_space<vmem>>, vector<1x256xf32>
    %c0_27 = arith.constant 0 : index
    %c0_28 = arith.constant 0 : index
    %44 = vector.load %arg9[%c0_27, %c0_28] : memref<1x256xf32, #tpu.memory_space<vmem>>, vector<1x256xf32>
    %c0_29 = arith.constant 0 : index
    %c0_30 = arith.constant 0 : index
    %45 = vector.load %arg10[%c0_29, %c0_30] : memref<1x256xf32, #tpu.memory_space<vmem>>, vector<1x256xf32>
    %46 = arith.truncf %41 : vector<2x512xf32> to vector<2x512xbf16>
    %cst_31 = arith.constant dense<0.000000e+00> : vector<2x256xf32>
    %47 = tpu.matmul %46, %42, %cst_31 {dimension_numbers = #tpu.dot_dimension_numbers<[1], [0], [0], [1], [0, 0, 1, 1], [], []>} : vector<2x512xbf16>, vector<512x256xbf16>, vector<2x256xf32> -> vector<2x256xf32>
    %48 = vector.broadcast %43 : vector<1x256xf32> to vector<2x256xf32>
    %49 = arith.addf %47, %48 : vector<2x256xf32>
    %cst_32 = arith.constant dense<0.000000e+00> : vector<256xf32>
    %50 = vector.multi_reduction <add>, %49, %cst_32 [0] : vector<2x256xf32> to vector<256xf32>
    %51 = vector.shape_cast %50 : vector<256xf32> to vector<1x256xf32>
    %cst_33 = arith.constant 2.000000e+00 : f32
    %52 = vector.broadcast %cst_33 : f32 to vector<1x256xf32>
    %53 = arith.divf %51, %52 : vector<1x256xf32>
    %54 = vector.broadcast %53 : vector<1x256xf32> to vector<2x256xf32>
    %55 = arith.subf %49, %54 : vector<2x256xf32>
    %56 = arith.mulf %55, %55 : vector<2x256xf32>
    %cst_34 = arith.constant dense<0.000000e+00> : vector<256xf32>
    %57 = vector.multi_reduction <add>, %56, %cst_34 [0] : vector<2x256xf32> to vector<256xf32>
    %58 = vector.shape_cast %57 : vector<256xf32> to vector<1x256xf32>
    %cst_35 = arith.constant 2.000000e+00 : f32
    %59 = vector.broadcast %cst_35 : f32 to vector<1x256xf32>
    %60 = arith.divf %58, %59 : vector<1x256xf32>
    %61 = vector.broadcast %53 : vector<1x256xf32> to vector<2x256xf32>
    %62 = arith.subf %49, %61 : vector<2x256xf32>
    %cst_36 = arith.constant 9.99999974E-6 : f32
    %63 = vector.broadcast %cst_36 : f32 to vector<1x256xf32>
    %64 = arith.addf %60, %63 : vector<1x256xf32>
    %65 = math.rsqrt %64 : vector<1x256xf32>
    %66 = vector.broadcast %65 : vector<1x256xf32> to vector<2x256xf32>
    %67 = arith.mulf %62, %66 : vector<2x256xf32>
    %68 = vector.broadcast %44 : vector<1x256xf32> to vector<2x256xf32>
    %69 = arith.mulf %68, %67 : vector<2x256xf32>
    %70 = vector.broadcast %45 : vector<1x256xf32> to vector<2x256xf32>
    %71 = arith.addf %69, %70 : vector<2x256xf32>
    %cst_37 = arith.constant 0.000000e+00 : f32
    %72 = vector.broadcast %cst_37 : f32 to vector<2x256xf32>
    %73 = arith.maximumf %71, %72 : vector<2x256xf32>
    %74 = arith.truncf %73 : vector<2x256xf32> to vector<2x256xbf16>
    %c0_38 = arith.constant 0 : index
    %c0_39 = arith.constant 0 : index
    %75 = vector.load %arg11[%c0_38, %c0_39] : memref<256x28xbf16, #tpu.memory_space<vmem>>, vector<256x28xbf16>
    %cst_40 = arith.constant dense<0.000000e+00> : vector<2x28xf32>
    %76 = tpu.matmul %74, %75, %cst_40 {dimension_numbers = #tpu.dot_dimension_numbers<[1], [0], [0], [1], [0, 0, 1, 1], [], []>} : vector<2x256xbf16>, vector<256x28xbf16>, vector<2x28xf32> -> vector<2x28xf32>
    %c0_41 = arith.constant 0 : index
    %c0_42 = arith.constant 0 : index
    %77 = vector.load %arg12[%c0_41, %c0_42] : memref<1x28xf32, #tpu.memory_space<vmem>>, vector<1x28xf32>
    %78 = vector.broadcast %77 : vector<1x28xf32> to vector<2x28xf32>
    %79 = arith.addf %76, %78 : vector<2x28xf32>
    %80 = arith.negf %79 : vector<2x28xf32>
    %81 = math.exp %80 : vector<2x28xf32>
    %cst_43 = arith.constant 1.000000e+00 : f32
    %82 = vector.broadcast %cst_43 : f32 to vector<2x28xf32>
    %83 = arith.addf %82, %81 : vector<2x28xf32>
    %84 = arith.divf %82, %83 : vector<2x28xf32>
    %c0_44 = arith.constant 0 : index
    %c0_45 = arith.constant 0 : index
    %85 = vector.load %arg13[%c0_44, %c0_45] : memref<2x28xf32, #tpu.memory_space<vmem>>, vector<2x28xf32>
    tpu.vector_store %arg13[%c0_44, %c0_45], %84 {strides = array<i32>} : memref<2x28xf32, #tpu.memory_space<vmem>>, vector<2x28xf32>,
    return
  }
}

module attributes {stable_mosaic.version = 11 : i64} {
  func.func @_lines_kernel(%arg0: i32, %arg1: i32, %arg2: memref<1x8x3xf32, #tpu.memory_space<vmem>>, %arg3: memref<28x8xf32, #tpu.memory_space<vmem>>, %arg4: memref<28x8xf32, #tpu.memory_space<vmem>>, %arg5: memref<1x28x1xf32, #tpu.memory_space<vmem>>, %arg6: memref<1x4x512xf32, #tpu.memory_space<vmem>>) attributes {dimension_semantics = [#tpu.dimension_semantics<parallel>, #tpu.dimension_semantics<parallel>], iteration_bounds = array<i64: 2, 4>, scalar_prefetch = 0 : i64, scratch_operands = 0 : i64, tpu.core_type = #tpu.core_type<tc>, window_params = [{transform_indices = @transform_0, window_bounds = array<i64: 1, 8, 3>}, {pipeline_mode = #tpu.pipeline_mode<synchronous>, transform_indices = @transform_1, window_bounds = array<i64: 28, 8>}, {pipeline_mode = #tpu.pipeline_mode<synchronous>, transform_indices = @transform_2, window_bounds = array<i64: 28, 8>}, {transform_indices = @transform_3, window_bounds = array<i64: 1, 28, 1>}, {transform_indices = @transform_4, window_bounds = array<i64: 1, 4, 512>}]} {
    %c512_i32 = arith.constant 512 : i32
    %0 = arith.muli %arg1, %c512_i32 : i32
    %1 = tpu.iota {dimensions = array<i32: 1>} : vector<1x512xi32>
    %2 = vector.broadcast %0 : i32 to vector<1x512xi32>
    %3 = arith.addi %2, %1 : vector<1x512xi32>
    %c7_i32 = arith.constant 7 : i32
    %4 = vector.broadcast %c7_i32 : i32 to vector<1x512xi32>
    %5 = arith.shrsi %3, %4 : vector<1x512xi32>
    %c3_i32 = arith.constant 3 : i32
    %6 = vector.broadcast %c3_i32 : i32 to vector<1x512xi32>
    %7 = arith.shrsi %3, %6 : vector<1x512xi32>
    %c15_i32 = arith.constant 15 : i32
    %8 = vector.broadcast %c15_i32 : i32 to vector<1x512xi32>
    %9 = arith.andi %7, %8 : vector<1x512xi32>
    %c7_i32_0 = arith.constant 7 : i32
    %10 = vector.broadcast %c7_i32_0 : i32 to vector<1x512xi32>
    %11 = arith.andi %3, %10 : vector<1x512xi32>
    %12 = arith.sitofp %5 : vector<1x512xi32> to vector<1x512xf32>
    %cst = arith.constant 0.13333334 : f32
    %13 = vector.broadcast %cst : f32 to vector<1x512xf32>
    %14 = arith.mulf %12, %13 : vector<1x512xf32>
    %cst_1 = arith.constant 1.000000e+00 : f32
    %15 = vector.broadcast %cst_1 : f32 to vector<1x512xf32>
    %16 = arith.subf %14, %15 : vector<1x512xf32>
    %17 = arith.sitofp %9 : vector<1x512xi32> to vector<1x512xf32>
    %cst_2 = arith.constant 0.13333334 : f32
    %18 = vector.broadcast %cst_2 : f32 to vector<1x512xf32>
    %19 = arith.mulf %17, %18 : vector<1x512xf32>
    %cst_3 = arith.constant 1.000000e+00 : f32
    %20 = vector.broadcast %cst_3 : f32 to vector<1x512xf32>
    %21 = arith.subf %19, %20 : vector<1x512xf32>
    %22 = arith.sitofp %11 : vector<1x512xi32> to vector<1x512xf32>
    %cst_4 = arith.constant 0.285714298 : f32
    %23 = vector.broadcast %cst_4 : f32 to vector<1x512xf32>
    %24 = arith.mulf %22, %23 : vector<1x512xf32>
    %cst_5 = arith.constant 1.000000e+00 : f32
    %25 = vector.broadcast %cst_5 : f32 to vector<1x512xf32>
    %26 = arith.subf %24, %25 : vector<1x512xf32>
    %c0 = arith.constant 0 : index
    %c0_6 = arith.constant 0 : index
    %c0_7 = arith.constant 0 : index
    %27 = vector.load %arg2[%c0, %c0_6, %c0_7] : memref<1x8x3xf32, #tpu.memory_space<vmem>>, vector<1x8x3xf32>
    %28 = vector.shape_cast %27 : vector<1x8x3xf32> to vector<8x3xf32>
    %c0_8 = arith.constant 0 : index
    %c0_9 = arith.constant 0 : index
    %29 = vector.load %arg3[%c0_8, %c0_9] : memref<28x8xf32, #tpu.memory_space<vmem>>, vector<28x8xf32>
    %c0_10 = arith.constant 0 : index
    %c0_11 = arith.constant 0 : index
    %30 = vector.load %arg4[%c0_10, %c0_11] : memref<28x8xf32, #tpu.memory_space<vmem>>, vector<28x8xf32>
    %31 = vector.extract_strided_slice %29 {offsets = [0, 0], sizes = [28, 1], strides = [1, 1]} : vector<28x8xf32> to vector<28x1xf32>
    %32 = vector.extract_strided_slice %28 {offsets = [0, 0], sizes = [1, 3], strides = [1, 1]} : vector<8x3xf32> to vector<1x3xf32>
    %33 = vector.broadcast %31 : vector<28x1xf32> to vector<28x3xf32>
    %34 = vector.broadcast %32 : vector<1x3xf32> to vector<28x3xf32>
    %35 = arith.mulf %33, %34 : vector<28x3xf32>
    %36 = vector.extract_strided_slice %30 {offsets = [0, 0], sizes = [28, 1], strides = [1, 1]} : vector<28x8xf32> to vector<28x1xf32>
    %37 = vector.extract_strided_slice %28 {offsets = [0, 0], sizes = [1, 3], strides = [1, 1]} : vector<8x3xf32> to vector<1x3xf32>
    %38 = vector.broadcast %36 : vector<28x1xf32> to vector<28x3xf32>
    %39 = vector.broadcast %37 : vector<1x3xf32> to vector<28x3xf32>
    %40 = arith.mulf %38, %39 : vector<28x3xf32>
    %41 = vector.extract_strided_slice %29 {offsets = [0, 1], sizes = [28, 1], strides = [1, 1]} : vector<28x8xf32> to vector<28x1xf32>
    %42 = vector.extract_strided_slice %28 {offsets = [1, 0], sizes = [1, 3], strides = [1, 1]} : vector<8x3xf32> to vector<1x3xf32>
    %43 = vector.broadcast %41 : vector<28x1xf32> to vector<28x3xf32>
    %44 = vector.broadcast %42 : vector<1x3xf32> to vector<28x3xf32>
    %45 = arith.mulf %43, %44 : vector<28x3xf32>
    %46 = arith.addf %35, %45 : vector<28x3xf32>
    %47 = vector.extract_strided_slice %30 {offsets = [0, 1], sizes = [28, 1], strides = [1, 1]} : vector<28x8xf32> to vector<28x1xf32>
    %48 = vector.extract_strided_slice %28 {offsets = [1, 0], sizes = [1, 3], strides = [1, 1]} : vector<8x3xf32> to vector<1x3xf32>
    %49 = vector.broadcast %47 : vector<28x1xf32> to vector<28x3xf32>
    %50 = vector.broadcast %48 : vector<1x3xf32> to vector<28x3xf32>
    %51 = arith.mulf %49, %50 : vector<28x3xf32>
    %52 = arith.addf %40, %51 : vector<28x3xf32>
    %53 = vector.extract_strided_slice %29 {offsets = [0, 2], sizes = [28, 1], strides = [1, 1]} : vector<28x8xf32> to vector<28x1xf32>
    %54 = vector.extract_strided_slice %28 {offsets = [2, 0], sizes = [1, 3], strides = [1, 1]} : vector<8x3xf32> to vector<1x3xf32>
    %55 = vector.broadcast %53 : vector<28x1xf32> to vector<28x3xf32>
    %56 = vector.broadcast %54 : vector<1x3xf32> to vector<28x3xf32>
    %57 = arith.mulf %55, %56 : vector<28x3xf32>
    %58 = arith.addf %46, %57 : vector<28x3xf32>
    %59 = vector.extract_strided_slice %30 {offsets = [0, 2], sizes = [28, 1], strides = [1, 1]} : vector<28x8xf32> to vector<28x1xf32>
    %60 = vector.extract_strided_slice %28 {offsets = [2, 0], sizes = [1, 3], strides = [1, 1]} : vector<8x3xf32> to vector<1x3xf32>
    %61 = vector.broadcast %59 : vector<28x1xf32> to vector<28x3xf32>
    %62 = vector.broadcast %60 : vector<1x3xf32> to vector<28x3xf32>
    %63 = arith.mulf %61, %62 : vector<28x3xf32>
    %64 = arith.addf %52, %63 : vector<28x3xf32>
    %65 = vector.extract_strided_slice %29 {offsets = [0, 3], sizes = [28, 1], strides = [1, 1]} : vector<28x8xf32> to vector<28x1xf32>
    %66 = vector.extract_strided_slice %28 {offsets = [3, 0], sizes = [1, 3], strides = [1, 1]} : vector<8x3xf32> to vector<1x3xf32>
    %67 = vector.broadcast %65 : vector<28x1xf32> to vector<28x3xf32>
    %68 = vector.broadcast %66 : vector<1x3xf32> to vector<28x3xf32>
    %69 = arith.mulf %67, %68 : vector<28x3xf32>
    %70 = arith.addf %58, %69 : vector<28x3xf32>
    %71 = vector.extract_strided_slice %30 {offsets = [0, 3], sizes = [28, 1], strides = [1, 1]} : vector<28x8xf32> to vector<28x1xf32>
    %72 = vector.extract_strided_slice %28 {offsets = [3, 0], sizes = [1, 3], strides = [1, 1]} : vector<8x3xf32> to vector<1x3xf32>
    %73 = vector.broadcast %71 : vector<28x1xf32> to vector<28x3xf32>
    %74 = vector.broadcast %72 : vector<1x3xf32> to vector<28x3xf32>
    %75 = arith.mulf %73, %74 : vector<28x3xf32>
    %76 = arith.addf %64, %75 : vector<28x3xf32>
    %77 = vector.extract_strided_slice %29 {offsets = [0, 4], sizes = [28, 1], strides = [1, 1]} : vector<28x8xf32> to vector<28x1xf32>
    %78 = vector.extract_strided_slice %28 {offsets = [4, 0], sizes = [1, 3], strides = [1, 1]} : vector<8x3xf32> to vector<1x3xf32>
    %79 = vector.broadcast %77 : vector<28x1xf32> to vector<28x3xf32>
    %80 = vector.broadcast %78 : vector<1x3xf32> to vector<28x3xf32>
    %81 = arith.mulf %79, %80 : vector<28x3xf32>
    %82 = arith.addf %70, %81 : vector<28x3xf32>
    %83 = vector.extract_strided_slice %30 {offsets = [0, 4], sizes = [28, 1], strides = [1, 1]} : vector<28x8xf32> to vector<28x1xf32>
    %84 = vector.extract_strided_slice %28 {offsets = [4, 0], sizes = [1, 3], strides = [1, 1]} : vector<8x3xf32> to vector<1x3xf32>
    %85 = vector.broadcast %83 : vector<28x1xf32> to vector<28x3xf32>
    %86 = vector.broadcast %84 : vector<1x3xf32> to vector<28x3xf32>
    %87 = arith.mulf %85, %86 : vector<28x3xf32>
    %88 = arith.addf %76, %87 : vector<28x3xf32>
    %89 = vector.extract_strided_slice %29 {offsets = [0, 5], sizes = [28, 1], strides = [1, 1]} : vector<28x8xf32> to vector<28x1xf32>
    %90 = vector.extract_strided_slice %28 {offsets = [5, 0], sizes = [1, 3], strides = [1, 1]} : vector<8x3xf32> to vector<1x3xf32>
    %91 = vector.broadcast %89 : vector<28x1xf32> to vector<28x3xf32>
    %92 = vector.broadcast %90 : vector<1x3xf32> to vector<28x3xf32>
    %93 = arith.mulf %91, %92 : vector<28x3xf32>
    %94 = arith.addf %82, %93 : vector<28x3xf32>
    %95 = vector.extract_strided_slice %30 {offsets = [0, 5], sizes = [28, 1], strides = [1, 1]} : vector<28x8xf32> to vector<28x1xf32>
    %96 = vector.extract_strided_slice %28 {offsets = [5, 0], sizes = [1, 3], strides = [1, 1]} : vector<8x3xf32> to vector<1x3xf32>
    %97 = vector.broadcast %95 : vector<28x1xf32> to vector<28x3xf32>
    %98 = vector.broadcast %96 : vector<1x3xf32> to vector<28x3xf32>
    %99 = arith.mulf %97, %98 : vector<28x3xf32>
    %100 = arith.addf %88, %99 : vector<28x3xf32>
    %101 = vector.extract_strided_slice %29 {offsets = [0, 6], sizes = [28, 1], strides = [1, 1]} : vector<28x8xf32> to vector<28x1xf32>
    %102 = vector.extract_strided_slice %28 {offsets = [6, 0], sizes = [1, 3], strides = [1, 1]} : vector<8x3xf32> to vector<1x3xf32>
    %103 = vector.broadcast %101 : vector<28x1xf32> to vector<28x3xf32>
    %104 = vector.broadcast %102 : vector<1x3xf32> to vector<28x3xf32>
    %105 = arith.mulf %103, %104 : vector<28x3xf32>
    %106 = arith.addf %94, %105 : vector<28x3xf32>
    %107 = vector.extract_strided_slice %30 {offsets = [0, 6], sizes = [28, 1], strides = [1, 1]} : vector<28x8xf32> to vector<28x1xf32>
    %108 = vector.extract_strided_slice %28 {offsets = [6, 0], sizes = [1, 3], strides = [1, 1]} : vector<8x3xf32> to vector<1x3xf32>
    %109 = vector.broadcast %107 : vector<28x1xf32> to vector<28x3xf32>
    %110 = vector.broadcast %108 : vector<1x3xf32> to vector<28x3xf32>
    %111 = arith.mulf %109, %110 : vector<28x3xf32>
    %112 = arith.addf %100, %111 : vector<28x3xf32>
    %113 = vector.extract_strided_slice %29 {offsets = [0, 7], sizes = [28, 1], strides = [1, 1]} : vector<28x8xf32> to vector<28x1xf32>
    %114 = vector.extract_strided_slice %28 {offsets = [7, 0], sizes = [1, 3], strides = [1, 1]} : vector<8x3xf32> to vector<1x3xf32>
    %115 = vector.broadcast %113 : vector<28x1xf32> to vector<28x3xf32>
    %116 = vector.broadcast %114 : vector<1x3xf32> to vector<28x3xf32>
    %117 = arith.mulf %115, %116 : vector<28x3xf32>
    %118 = arith.addf %106, %117 : vector<28x3xf32>
    %119 = vector.extract_strided_slice %30 {offsets = [0, 7], sizes = [28, 1], strides = [1, 1]} : vector<28x8xf32> to vector<28x1xf32>
    %120 = vector.extract_strided_slice %28 {offsets = [7, 0], sizes = [1, 3], strides = [1, 1]} : vector<8x3xf32> to vector<1x3xf32>
    %121 = vector.broadcast %119 : vector<28x1xf32> to vector<28x3xf32>
    %122 = vector.broadcast %120 : vector<1x3xf32> to vector<28x3xf32>
    %123 = arith.mulf %121, %122 : vector<28x3xf32>
    %124 = arith.addf %112, %123 : vector<28x3xf32>
    %c0_12 = arith.constant 0 : index
    %c0_13 = arith.constant 0 : index
    %c0_14 = arith.constant 0 : index
    %125 = vector.load %arg5[%c0_12, %c0_13, %c0_14] : memref<1x28x1xf32, #tpu.memory_space<vmem>>, vector<1x28x1xf32>
    %126 = vector.shape_cast %125 : vector<1x28x1xf32> to vector<28x1xf32>
    %127 = vector.extract_strided_slice %118 {offsets = [0, 0], sizes = [28, 1], strides = [1, 1]} : vector<28x3xf32> to vector<28x1xf32>
    %128 = vector.extract_strided_slice %118 {offsets = [0, 1], sizes = [28, 1], strides = [1, 1]} : vector<28x3xf32> to vector<28x1xf32>
    %129 = vector.extract_strided_slice %118 {offsets = [0, 2], sizes = [28, 1], strides = [1, 1]} : vector<28x3xf32> to vector<28x1xf32>
    %130 = vector.extract_strided_slice %124 {offsets = [0, 0], sizes = [28, 1], strides = [1, 1]} : vector<28x3xf32> to vector<28x1xf32>
    %131 = arith.subf %130, %127 : vector<28x1xf32>
    %132 = vector.extract_strided_slice %124 {offsets = [0, 1], sizes = [28, 1], strides = [1, 1]} : vector<28x3xf32> to vector<28x1xf32>
    %133 = arith.subf %132, %128 : vector<28x1xf32>
    %134 = vector.extract_strided_slice %124 {offsets = [0, 2], sizes = [28, 1], strides = [1, 1]} : vector<28x3xf32> to vector<28x1xf32>
    %135 = arith.subf %134, %129 : vector<28x1xf32>
    %136 = arith.mulf %131, %131 : vector<28x1xf32>
    %137 = arith.mulf %133, %133 : vector<28x1xf32>
    %138 = arith.addf %136, %137 : vector<28x1xf32>
    %139 = arith.mulf %135, %135 : vector<28x1xf32>
    %140 = arith.addf %138, %139 : vector<28x1xf32>
    %cst_15 = arith.constant 9.99999993E-9 : f32
    %141 = vector.broadcast %cst_15 : f32 to vector<28x1xf32>
    %142 = arith.addf %140, %141 : vector<28x1xf32>
    %cst_16 = arith.constant 1.000000e+00 : f32
    %143 = vector.broadcast %cst_16 : f32 to vector<28x1xf32>
    %144 = arith.divf %143, %142 : vector<28x1xf32>
    %145 = vector.broadcast %16 : vector<1x512xf32> to vector<28x512xf32>
    %146 = vector.broadcast %127 : vector<28x1xf32> to vector<28x512xf32>
    %147 = arith.subf %145, %146 : vector<28x512xf32>
    %148 = vector.broadcast %131 : vector<28x1xf32> to vector<28x512xf32>
    %149 = arith.mulf %147, %148 : vector<28x512xf32>
    %150 = arith.mulf %147, %147 : vector<28x512xf32>
    %151 = vector.broadcast %21 : vector<1x512xf32> to vector<28x512xf32>
    %152 = vector.broadcast %128 : vector<28x1xf32> to vector<28x512xf32>
    %153 = arith.subf %151, %152 : vector<28x512xf32>
    %154 = vector.broadcast %133 : vector<28x1xf32> to vector<28x512xf32>
    %155 = arith.mulf %153, %154 : vector<28x512xf32>
    %156 = arith.addf %149, %155 : vector<28x512xf32>
    %157 = arith.mulf %153, %153 : vector<28x512xf32>
    %158 = arith.addf %150, %157 : vector<28x512xf32>
    %159 = vector.broadcast %26 : vector<1x512xf32> to vector<28x512xf32>
    %160 = vector.broadcast %129 : vector<28x1xf32> to vector<28x512xf32>
    %161 = arith.subf %159, %160 : vector<28x512xf32>
    %162 = vector.broadcast %135 : vector<28x1xf32> to vector<28x512xf32>
    %163 = arith.mulf %161, %162 : vector<28x512xf32>
    %164 = arith.addf %156, %163 : vector<28x512xf32>
    %165 = arith.mulf %161, %161 : vector<28x512xf32>
    %166 = arith.addf %158, %165 : vector<28x512xf32>
    %167 = vector.broadcast %144 : vector<28x1xf32> to vector<28x512xf32>
    %168 = arith.mulf %164, %167 : vector<28x512xf32>
    %cst_17 = arith.constant 0.000000e+00 : f32
    %169 = vector.broadcast %cst_17 : f32 to vector<28x512xf32>
    %170 = arith.cmpf ole, %168, %169 : vector<28x512xf32>
    %cst_18 = arith.constant 1.000000e+00 : f32
    %171 = vector.broadcast %cst_18 : f32 to vector<28x512xf32>
    %172 = arith.cmpf oge, %168, %171 : vector<28x512xf32>
    %cst_19 = arith.constant 2.000000e+00 : f32
    %173 = vector.broadcast %cst_19 : f32 to vector<28x512xf32>
    %174 = arith.mulf %173, %164 : vector<28x512xf32>
    %175 = vector.broadcast %140 : vector<28x1xf32> to vector<28x512xf32>
    %176 = arith.subf %174, %175 : vector<28x512xf32>
    %177 = arith.mulf %168, %164 : vector<28x512xf32>
    %178 = arith.select %172, %176, %177 : vector<28x512xi1>, vector<28x512xf32>
    %cst_20 = arith.constant 0.000000e+00 : f32
    %179 = vector.broadcast %cst_20 : f32 to vector<28x512xf32>
    %180 = arith.select %170, %179, %178 : vector<28x512xi1>, vector<28x512xf32>
    %181 = arith.subf %166, %180 : vector<28x512xf32>
    %cst_21 = arith.constant 0.000000e+00 : f32
    %182 = vector.broadcast %cst_21 : f32 to vector<28x512xf32>
    %183 = arith.maximumf %181, %182 : vector<28x512xf32>
    %cst_22 = arith.constant -4.000000e+02 : f32
    %184 = vector.broadcast %cst_22 : f32 to vector<28x512xf32>
    %185 = arith.mulf %183, %184 : vector<28x512xf32>
    %186 = math.exp %185 : vector<28x512xf32>
    %187 = vector.broadcast %126 : vector<28x1xf32> to vector<28x512xf32>
    %188 = arith.mulf %186, %187 : vector<28x512xf32>
    %cst_23 = arith.constant dense<0xFF800000> : vector<512xf32>
    %189 = vector.multi_reduction <maximumf>, %188, %cst_23 [0] : vector<28x512xf32> to vector<512xf32>
    %190 = vector.shape_cast %189 : vector<512xf32> to vector<1x512xf32>
    %191 = tpu.concatenate %190, %16, %21, %26 in 0 : vector<1x512xf32>, vector<1x512xf32>, vector<1x512xf32>, vector<1x512xf32> -> vector<4x512xf32>
    %c0_24 = arith.constant 0 : index
    %c0_25 = arith.constant 0 : index
    %c0_26 = arith.constant 0 : index
    %192 = vector.load %arg6[%c0_24, %c0_25, %c0_26] : memref<1x4x512xf32, #tpu.memory_space<vmem>>, vector<1x4x512xf32>
    %193 = vector.shape_cast %192 : vector<1x4x512xf32> to vector<4x512xf32>
    %194 = vector.shape_cast %191 : vector<4x512xf32> to vector<1x4x512xf32>
    tpu.vector_store %arg6[%c0_24, %c0_25, %c0_26], %194 {strides = array<i32>} : memref<1x4x512xf32, #tpu.memory_space<vmem>>, vector<1x4x512xf32>,
    return
  }
  func.func @transform_0(%arg0: i32, %arg1: i32) -> (i32, i32, i32) {
    %c0_i32 = arith.constant 0 : i32
    %c0_i32_0 = arith.constant 0 : i32
    %c0_i32_1 = arith.constant 0 : i32
    return %arg0, %c0_i32, %c0_i32_0 : i32, i32, i32
  }
  func.func @transform_1(%arg0: i32, %arg1: i32) -> (i32, i32) {
    %c0_i32 = arith.constant 0 : i32
    %c0_i32_0 = arith.constant 0 : i32
    %c0_i32_1 = arith.constant 0 : i32
    return %c0_i32, %c0_i32_0 : i32, i32
  }
  func.func @transform_2(%arg0: i32, %arg1: i32) -> (i32, i32) {
    %c0_i32 = arith.constant 0 : i32
    %c0_i32_0 = arith.constant 0 : i32
    %c0_i32_1 = arith.constant 0 : i32
    return %c0_i32, %c0_i32_0 : i32, i32
  }
  func.func @transform_3(%arg0: i32, %arg1: i32) -> (i32, i32, i32) {
    %c0_i32 = arith.constant 0 : i32
    %c0_i32_0 = arith.constant 0 : i32
    %c0_i32_1 = arith.constant 0 : i32
    return %arg0, %c0_i32, %c0_i32_0 : i32, i32, i32
  }
  func.func @transform_4(%arg0: i32, %arg1: i32) -> (i32, i32, i32) {
    %c0_i32 = arith.constant 0 : i32
    %c0_i32_0 = arith.constant 0 : i32
    return %arg0, %c0_i32, %arg1 : i32, i32, i32
  }
}

</mosaic_0001>

<bundles_post_ra>
// kernel: net_forward.3
= control target key start
LH: loop header
LB: loop body
LE: loop exit
PB: predicated region body
PF: predicated region fallthrough
CT: control target
= control target key end

     0   :  { %s981_s18 = smov 0   ;;  %s1103_s0 = inlined_call_operand.vmem [shape: f32[2,256,3], index: 0, kind: input, shape index: {}]   ;;  %s1104_s1 = inlined_call_operand.vmem [shape: f32[8,3], index: 1, kind: input, shape index: {}]   ;;  %s1105_s2 = inlined_call_operand.vmem [shape: f32[8,1], index: 2, kind: input, shape index: {}]   ;;  %s1106_s3 = inlined_call_operand.vmem [shape: f32[8,8], index: 3, kind: input, shape index: {}]   ;;  %s1107_s4 = inlined_call_operand.vmem [shape: f32[8,1], index: 4, kind: input, shape index: {}]   ;;  %s1108_s5 = inlined_call_operand.vmem [shape: f32[2,8,3], index: 5, kind: output, shape index: {}]  }
   0x1 LB: > { %s710_s19 = sadd.s32 4294967295, %s941_s18   ;;  %p714_p0 = scmp.ge.s32.totalorder %s941_s18, 1  ;;  %s941_s18 = sphi %s981_s18, %s15_s18  }
   0x2   : > { %p187_p1 = scmp.lt.s32.totalorder %s941_s18, 3 }
   0x4   : > { %p188_p2 = pnand %p714_p0, %p187_p1 }
   0x5   : > { %p214_p3 = scmp.lt.s32.totalorder (!%p188_p2), %s710_s19, 1  ;;  %vm262_vm0 = vcmask (!%p188_p2), 23552   ;;  %v992_v0 = vld [vmem:[%s1104_s1] sm:$0xff] (!%p188_p2)  ;;  %v943_v2 = vmov (!%p188_p2), 0   ;;  %v944_v9 = vmov (!%p188_p2), 1   ;;  %v945_v20 = vmov (!%p188_p2), 3  }
   0x6   : > { %191 = sbr.rel (%p188_p2) target bundleno = 854 (0x356), region = 40  ;;  %v436_v1 = vld [vmem:[%s1107_s4] sm:$0xff] (!%p188_p2)  ;;  %786 = vmatprep.mubr.msk.f32.mxu0 (!%p188_p2), %vm262_vm0, %v992_v0  ;;  %920 = vset.pattern.permute.xlu1 (!%p188_p2), %v943_v2  ;;  %vm1017_vm1 = vmpackc.low (!%p188_p2), %vm262_vm0, %vm262_vm0  ;;  %v946_v22 = vmov (!%p188_p2), 2   ;;  %v947_v28 = vmov (!%p188_p2), 4   ;;  %v948_v30 = vmov (!%p188_p2), 5   ;;  %v949_v37 = vmov (!%p188_p2), 6  }
   0x7   : > { %v256_v3 = vld [vmem:[%s1105_s2] sm:$0xff] (!%p188_p2)  ;;  %454 = vperm.xlu1 (!%p188_p2), %920, %v436_v1   ;;  %919 = vset.pattern.permute.xlu0 (!%p188_p2), %v943_v2  ;;  %v950_v39 = vmov (!%p188_p2), 7   ;;  %v442_v62 = vlaneseq (!%p188_p2) }
   0x8   : > { %259 = vperm.xlu0 (!%p188_p2), %919, %v256_v3   ;;  %v1008_v4 = vld [vmem:[%s1106_s3] sm:$0xff] (!%p188_p2) }
   0x9   : > { %v443_v2 = vshrl.u32 (!%p188_p2), %v442_v62, 7 }
   0xb   : > { %921 = vset.pattern.permute.xlu1 (!%p188_p2), %v944_v9  ;;  %v465_v9 = vsub.s32 (!%p188_p2), 1, %v443_v2 }
   0xc   : > { %460 = vperm.xlu1 (!%p188_p2), %921, %v1008_v4   ;;  %439 = vperm.xlu0 (!%p188_p2), %919, %v1008_v4  }
   0xd   : > { %s1112_s19 = smov (!%p214_p3, %s710_s19), 1 }
   0xe   : > { %s753_s26 = sshll.u32 %s1112_s19, 8  ;;  %s717_s7 = sshll.u32 %s1112_s19, 3 }
   0xf   : > { %s1013_s6 = scalar_lea.vmem %s1103_s0, %s753_s26  ;;  %s222_s10 = scalar_lea.vmem %s1108_s5, %s717_s7 }
  0x10   : > { %v239_v6 = vld [vmem:[%s1013_s6 + $0x80] sm:$0xff]  ;;  %v240_v7 = vld [vmem:[%s1013_s6 + $0x88] sm:$0xff]  ;;  %v241_v12 = vld [vmem:[%s1013_s6 + $0x90] sm:$0xff]  ;;  %923 = vset.pattern.permute.xlu1 %v945_v20  ;;  %922 = vset.pattern.permute.xlu0 %v946_v22 }
  0x11   : > { %v223_v8 = vld [vmem:[%s1013_s6] sm:$0xff]  ;;  %v823_v10 = vpack.c.bf16 %v240_v7, %v239_v6  ;;  %v224_v11 = vld [vmem:[%s1013_s6 + $0x8] sm:$0xff]  ;;  %v242_v13 = vld [vmem:[%s1013_s6 + $0x98] sm:$0xff]  ;;  %492 = vperm.xlu1 %923, %v1008_v4   ;;  %476 = vperm.xlu0 %922, %v1008_v4  }
  0x12   : > { %v826_v14 = vpack.c.bf16 %v224_v11, %v223_v8  ;;  %v829_v15 = vpack.c.bf16 %v242_v13, %v241_v12  ;;  %v225_v16 = vld [vmem:[%s1013_s6 + $0x10] sm:$0xff]  ;;  %v226_v17 = vld [vmem:[%s1013_s6 + $0x18] sm:$0xff]  ;;  %v243_v18 = vld [vmem:[%s1013_s6 + $0xa0] sm:$0xff]  ;;  %v444_v8 = vsub.s32 0, %v443_v2  ;;  %v481_v13 = vsub.s32 2, %v443_v2 }
  0x13   : > { %825 = vmatprep.subr.msk.bf16.mxu0 %vm1017_vm1, %v823_v10  ;;  %872 = vmatprep.subr.bf16.mxu1 %v823_v10  ;;  %v244_v19 = vld [vmem:[%s1013_s6 + $0xa8] sm:$0xff]  ;;  %v832_v21 = vpack.c.bf16 %v226_v17, %v225_v16  ;;  %v227_v24 = vld [vmem:[%s1013_s6 + $0x20] sm:$0xff]  ;;  %v245_v26 = vld [vmem:[%s1013_s6 + $0xb0] sm:$0xff] }
  0x14   : > { %828 = vmatpush3.bf16.xpose.msk.msra.mxu0 %vm1017_vm1, %v826_v14  ;;  %874 = vmatpush3.bf16.msra.mxu1 %v826_v14  ;;  %v835_v23 = vpack.c.bf16 %v244_v19, %v243_v18  ;;  %v228_v25 = vld [vmem:[%s1013_s6 + $0x28] sm:$0xff]  ;;  %v246_v27 = vld [vmem:[%s1013_s6 + $0xb8] sm:$0xff]  ;;  %v229_v32 = vld [vmem:[%s1013_s6 + $0x30] sm:$0xff]  ;;  %v497_v14 = vsub.s32 3, %v443_v2 }
  0x15   : > { %831 = vmatprep.subr.msk.bf16.mxu0 %vm1017_vm1, %v829_v15  ;;  %876 = vmatprep.subr.bf16.mxu1 %v829_v15  ;;  %v838_v29 = vpack.c.bf16 %v228_v25, %v227_v24  ;;  %v841_v31 = vpack.c.bf16 %v246_v27, %v245_v26  ;;  %v230_v33 = vld [vmem:[%s1013_s6 + $0x38] sm:$0xff]  ;;  %v247_v34 = vld [vmem:[%s1013_s6 + $0xc0] sm:$0xff]  ;;  %v248_v35 = vld [vmem:[%s1013_s6 + $0xc8] sm:$0xff] }
  0x16   : > { %924 = vset.pattern.permute.xlu1 %v947_v28  ;;  %925 = vset.pattern.permute.xlu0 %v948_v30  ;;  %v844_v36 = vpack.c.bf16 %v230_v33, %v229_v32  ;;  %v847_v38 = vpack.c.bf16 %v248_v35, %v247_v34  ;;  %v231_v40 = vld [vmem:[%s1013_s6 + $0x40] sm:$0xff]  ;;  %v232_v41 = vld [vmem:[%s1013_s6 + $0x48] sm:$0xff]  ;;  %v249_v42 = vld [vmem:[%s1013_s6 + $0xd0] sm:$0xff]  ;;  %v529_v28 = vsub.s32 5, %v443_v2  ;;  %v545_v32 = vsub.s32 6, %v443_v2 }
  0x17   : > { %508 = vperm.xlu1 %924, %v1008_v4   ;;  %524 = vperm.xlu0 %925, %v1008_v4   ;;  %v250_v43 = vld [vmem:[%s1013_s6 + $0xd8] sm:$0xff]  ;;  %v850_v44 = vpack.c.bf16 %v232_v41, %v231_v40  ;;  %v233_v46 = vld [vmem:[%s1013_s6 + $0x50] sm:$0xff]  ;;  %v251_v48 = vld [vmem:[%s1013_s6 + $0xe0] sm:$0xff] }
  0x18   : > { %878 = vmatpush3.bf16.msra.mxu1 %v832_v21  ;;  %v853_v45 = vpack.c.bf16 %v250_v43, %v249_v42  ;;  %v234_v47 = vld [vmem:[%s1013_s6 + $0x58] sm:$0xff]  ;;  %v252_v49 = vld [vmem:[%s1013_s6 + $0xe8] sm:$0xff]  ;;  %v235_v52 = vld [vmem:[%s1013_s6 + $0x60] sm:$0xff]  ;;  %v561_v42 = vsub.s32 7, %v443_v2 }
  0x19   : > { %880 = vmatprep.subr.bf16.mxu1 %v835_v23  ;;  %v856_v50 = vpack.c.bf16 %v234_v47, %v233_v46  ;;  %v859_v51 = vpack.c.bf16 %v252_v49, %v251_v48  ;;  %v236_v53 = vld [vmem:[%s1013_s6 + $0x68] sm:$0xff]  ;;  %v253_v54 = vld [vmem:[%s1013_s6 + $0xf0] sm:$0xff]  ;;  %v254_v55 = vld [vmem:[%s1013_s6 + $0xf8] sm:$0xff] }
  0x1a   : > { %v862_v56 = vpack.c.bf16 %v236_v53, %v235_v52  ;;  %v865_v57 = vpack.c.bf16 %v254_v55, %v253_v54  ;;  %v237_v58 = vld [vmem:[%s1013_s6 + $0x70] sm:$0xff]  ;;  %v238_v59 = vld [vmem:[%s1013_s6 + $0x78] sm:$0xff] }
  0x1b   : > { %926 = vset.pattern.permute.xlu1 %v949_v37  ;;  %928 = vset.pattern.permute.xlu0 %v950_v39  ;;  %v868_v60 = vpack.c.bf16 %v238_v59, %v237_v58 }
  0x1c   : > { %834 = vmatpush3.bf16.xpose.msk.msra.mxu0 %vm1017_vm1, %v832_v21  ;;  %882 = vmatpush3.bf16.msra.mxu1 %v838_v29  ;;  %v513_v21 = vsub.s32 4, %v443_v2 }
  0x1d   : > { %837 = vmatprep.subr.msk.bf16.mxu0 %vm1017_vm1, %v835_v23  ;;  %884 = vmatprep.subr.bf16.mxu1 %v841_v31 }
  0x1e   : > { %540 = vperm.xlu1 %926, %v1008_v4  }
  0x20   : > { %886 = vmatpush3.bf16.msra.mxu1 %v844_v36 }
  0x21   : > { %888 = vmatprep.subr.bf16.mxu1 %v847_v38 }
  0x22   : > { %927 = vset.pattern.permute.xlu1 %v950_v39 }
  0x23   : > { %556 = vperm.xlu1 %927, %v1008_v4  }
  0x24   : > { %840 = vmatpush3.bf16.xpose.msk.msra.mxu0 %vm1017_vm1, %v838_v29  ;;  %890 = vmatpush3.bf16.msra.mxu1 %v850_v44 }
  0x25   : > { %843 = vmatprep.subr.msk.bf16.mxu0 %vm1017_vm1, %v841_v31  ;;  %892 = vmatprep.subr.bf16.mxu1 %v853_v45 }
  0x28   : > { %894 = vmatpush3.bf16.msra.mxu1 %v856_v50 }
  0x29   : > { %896 = vmatprep.subr.bf16.mxu1 %v859_v51 }
  0x2c   : > { %846 = vmatpush3.bf16.xpose.msk.msra.mxu0 %vm1017_vm1, %v844_v36  ;;  %898 = vmatpush3.bf16.msra.mxu1 %v862_v56 }
  0x2d   : > { %849 = vmatprep.subr.msk.bf16.mxu0 %vm1017_vm1, %v847_v38  ;;  %900 = vmatprep.subr.bf16.mxu1 %v865_v57 }
  0x30   : > { %902 = vmatpush3.bf16.msra.mxu1 %v868_v60 }
  0x34   : > { %852 = vmatpush3.bf16.xpose.msk.msra.mxu0 %vm1017_vm1, %v850_v44 }
  0x35   : > { %855 = vmatprep.subr.msk.bf16.mxu0 %vm1017_vm1, %v853_v45 }
  0x3c   : > { %858 = vmatpush3.bf16.xpose.msk.msra.mxu0 %vm1017_vm1, %v856_v50 }
  0x3d   : > { %861 = vmatprep.subr.msk.bf16.mxu0 %vm1017_vm1, %v859_v51 }
  0x44   : > { %864 = vmatpush3.bf16.xpose.msk.msra.mxu0 %vm1017_vm1, %v862_v56 }
  0x45   : > { %867 = vmatprep.subr.msk.bf16.mxu0 %vm1017_vm1, %v865_v57 }
  0x4c   : > { %870 = vmatpush3.bf16.xpose.msk.msra.mxu0 %vm1017_vm1, %v868_v60 }
  0x53   : > { %787 = vmatmul.mubr.msk.f32.vlgmr.msra.gmra.mrb[0].mxu0 %vm262_vm0, %v992_v0 }
  0x86   : > { %v455_v61 = vpop.permute.xlu1 %454 }
  0x87   : > { %v260_v1 = vpop.permute.xlu0 %259 }
  0x8b   : > { %v461_v63 = vpop.permute.xlu1 %460  ;;  %v440_v10 = vpop.permute.xlu0 %439 }
  0x90   : > { %v493_v3 = vpop.permute.xlu1 %492  ;;  %v477_v22 = vpop.permute.xlu0 %476 }
  0x96   : > { %v509_v0 = vpop.permute.xlu1 %508  ;;  %v525_v46 = vpop.permute.xlu0 %524 }
  0x9d   : > { %v541_v36 = vpop.permute.xlu1 %540 }
  0xa2   : > { %v557_v57 = vpop.permute.xlu1 %556 }
 0x126   : > { %v428_v4 = vpop.f32.mrb[0].mxu0 }
 0x127   : > { %v429_v6 = vadd.f32 %v428_v4, %v260_v1  ;;  %v430_v7 = vpop.f32.mrb[1].mxu0 }
 0x128   : > { %v431_v11 = vadd.f32 %v430_v7, %v260_v1 }
 0x129   : > { %v433_v12 = vmax.f32 %v429_v6, 0.0 }
 0x12a   : > { %v434_v5 = vmax.f32 %v431_v11, 0.0 }
 0x12b   : > { %v445_v15 = vrot.slane %v433_v12, %v444_v8  ;;  %v466_v16 = vrot.slane %v433_v12, %v465_v9  ;;  %v482_v20 = vrot.slane %v433_v12, %v481_v13  ;;  %v498_v27 = vrot.slane %v433_v12, %v497_v14 }
 0x12c   : > { %v449_v17 = vrot.slane %v434_v5, %v444_v8  ;;  %v470_v18 = vrot.slane %v434_v5, %v465_v9  ;;  %v486_v24 = vrot.slane %v434_v5, %v481_v13  ;;  %v502_v31 = vrot.slane %v434_v5, %v497_v14 }
 0x12d   : > { %v450_v19 = vmul.f32 %v445_v15, %v440_v10  ;;  %v471_v26 = vmul.f32 %v466_v16, %v461_v63  ;;  %v487_v34 = vmul.f32 %v482_v20, %v477_v22  ;;  %v514_v35 = vrot.slane %v433_v12, %v513_v21 }
 0x12e   : > { %v451_v23 = vmul.f32 %v449_v17, %v440_v10  ;;  %v472_v30 = vmul.f32 %v470_v18, %v461_v63  ;;  %v488_v38 = vmul.f32 %v486_v24, %v477_v22  ;;  %v518_v39 = vrot.slane %v434_v5, %v513_v21 }
 0x12f   : > { %v457_v25 = vadd.f32 %v455_v61, %v450_v19  ;;  %v503_v41 = vmul.f32 %v498_v27, %v493_v3  ;;  %v530_v43 = vrot.slane %v433_v12, %v529_v28  ;;  %v504_v45 = vmul.f32 %v502_v31, %v493_v3 }
 0x130   : > { %v458_v29 = vadd.f32 %v455_v61, %v451_v23  ;;  %v534_v47 = vrot.slane %v434_v5, %v529_v28  ;;  %v546_v48 = vrot.slane %v433_v12, %v545_v32  ;;  %v519_v50 = vmul.f32 %v514_v35, %v509_v0 }
 0x131   : > { %v473_v33 = vadd.f32 %v471_v26, %v457_v25  ;;  %v550_v51 = vrot.slane %v434_v5, %v545_v32  ;;  %v520_v53 = vmul.f32 %v518_v39, %v509_v0  ;;  %v562_v54 = vrot.slane %v433_v12, %v561_v42 }
 0x132   : > { %v474_v37 = vadd.f32 %v472_v30, %v458_v29  ;;  %v535_v56 = vmul.f32 %v530_v43, %v525_v46  ;;  %v566_v58 = vrot.slane %v434_v5, %v561_v42  ;;  %v536_v60 = vmul.f32 %v534_v47, %v525_v46 }
 0x133   : > { %v489_v40 = vadd.f32 %v487_v34, %v473_v33  ;;  %v551_v61 = vmul.f32 %v546_v48, %v541_v36  ;;  %v552_v63 = vmul.f32 %v550_v51, %v541_v36  ;;  %v567_v2 = vmul.f32 %v562_v54, %v557_v57 }
 0x134   : > { %v490_v44 = vadd.f32 %v488_v38, %v474_v37  ;;  %v568_v4 = vmul.f32 %v566_v58, %v557_v57 }
 0x135   : > { %v505_v49 = vadd.f32 %v503_v41, %v489_v40 }
 0x136   : > { %v506_v52 = vadd.f32 %v504_v45, %v490_v44 }
 0x137   : > { %v521_v55 = vadd.f32 %v519_v50, %v505_v49 }
 0x138   : > { %v522_v59 = vadd.f32 %v520_v53, %v506_v52 }
 0x139   : > { %v537_v62 = vadd.f32 %v535_v56, %v521_v55 }
 0x13a   : > { %v538_v1 = vadd.f32 %v536_v60, %v522_v59 }
 0x13b   : > { %v553_v3 = vadd.f32 %v551_v61, %v537_v62 }
 0x13c   : > { %v554_v6 = vadd.f32 %v552_v63, %v538_v1 }
 0x13d   : > { %v569_v7 = vadd.f32 %v567_v2, %v553_v3 }
 0x13e   : > { %v570_v8 = vadd.f32 %v568_v4, %v554_v6 }
 0x140   : > { %v571_v9 = vmax.f32 %v569_v7, %v570_v8 }
 0x142   : > { %572 = vmax.xlane.f32.xlu0 %v571_v9 }
 0x1cf   : > { %v573_v10 = vpop.xlane.xlu0 %572 }
 0x1d0   : > { %v574_v11 = vsub.f32 %v569_v7, %v573_v10  ;;  %v575_v12 = vsub.f32 %v570_v8, %v573_v10 }
 0x1d2   : > { %v576_v13 = vmul.f32 1.442695, %v574_v11  ;;  %v578_v5 = vmul.f32 1.442695, %v575_v12 }
 0x1d4   : > { %929 = vpow2.f32 %v576_v13 }
 0x1d5   : > { %931 = vpow2.f32 %v578_v5 }
 0x1de   : > { %v930_v14 = vpop.eup %929 }
 0x1df   : > { %v932_v15 = vpop.eup %931 }
 0x1e0   : > { %v580_v16 = vadd.f32 %v932_v15, %v930_v14 }
 0x1e2   : > { %581 = vadd.xlane.f32.xlu1 %v580_v16 }
 0x26f   : > { %v582_v0 = vpop.xlane.xlu1 %581 }
 0x270   : > { %933 = vrcp.f32 %v582_v0 }
 0x27a   : > { %v934_v17 = vpop.eup %933 }
 0x27b   : > { %v585_v18 = vmul.f32 %v934_v17, %v932_v15  ;;  %v584_v19 = vmul.f32 %v934_v17, %v930_v14 }
 0x27d   : > { %650 = vmatprep.mubr.f32.mxu1 %v585_v18 }
 0x27e   : > { %651 = vmatmul.mubr.f32.vlgmr.msra.gmra.mrb[0].mxu1 %v584_v19 }
 0x351   : > { %v820_v20 = vpop.f32.mrb[0].mxu1 }
 0x352   : > { %v821_v21 = vpop.f32.mrb[1].mxu1 }
 0x353   : > { %v822_v22 = vadd.f32 %v821_v21, %v820_v20 }
 0x355   : > { %656 = vst.msk [vmem:[%s222_s10] sm:$0xff] %vm262_vm0, %v822_v22 }
 0x356 PF: > { %s15_s18 = sadd.s32 1, %s941_s18  }
 0x357   : > { %p12_p4 = scmp.ge.s32.totalorder %s15_s18, 4  }
 0x359   :  { %14 = sbr.rel (!%p12_p4) target bundleno = 1 (0x1), region = 70 }

// kernel: net_forward.5
= control target key start
LH: loop header
LB: loop body
LE: loop exit
PB: predicated region body
PF: predicated region fallthrough
CT: control target
= control target key end

     0   :  { %9 = vsyncpa [#allocation3], 0  ;;  %s2959_s0 = inlined_call_operand.vmem [shape: f32[2,8,3], index: 0, kind: input, shape index: {}]   ;;  %s2960_s1 = inlined_call_operand.vmem [shape: f32[28,8], index: 1, kind: input, shape index: {}]   ;;  %s2961_s2 = inlined_call_operand.vmem [shape: f32[28,8], index: 2, kind: input, shape index: {}]   ;;  %s2962_s3 = inlined_call_operand.vmem [shape: f32[2,28,1], index: 3, kind: input, shape index: {}]   ;;  %s2963_s4 = inlined_call_operand.hbm [shape: f32[2,4,2048], index: 4, kind: output, shape index: {}]  }
   0x1   :  { %11 = vsyncpa [#allocation3 + $0x1], 0  ;;  %s1855_s15 = smov 0   ;;  %s1857_s16 = smov 0  }
   0x2   :  { %s1859_s17 = smov 0   ;;  %s1861_s18 = smov 0  }
   0x3   :  { %s1863_s19 = smov 0   ;;  %s1865_s20 = smov 0  }
   0x4   :  { %s1867_s21 = smov 0   ;;  %s1869_s22 = smov 0  }
   0x5 LB: > { %s1540_s23 = sadd.s32 4294967295, %s1817_s22   ;;  %s1541_s24 = sadd.s32 4294967294, %s1817_s22   ;;  %s1817_s22 = sphi %s1869_s22, %s17_s22   ;;  %s1813_s21 = sphi %s1867_s21, %s3072_s21   ;;  %s1809_s20 = sphi %s1865_s20, %s3071_s20   ;;  %s1805_s19 = sphi %s1863_s19, %s3070_s19   ;;  %s1801_s18 = sphi %s1861_s18, %s3069_s18   ;;  %s1797_s17 = sphi %s1859_s17, %s3068_s17   ;;  %s1793_s16 = sphi %s1857_s16, %s3067_s16   ;;  %s1789_s15 = sphi %s1855_s15, %s3066_s15  }
   0x6   : > { %s26_s25 = sadd.s32 1, %s1809_s20  ;;  %s29_s26 = sadd.s32 1, %s1813_s21 }
   0x7   : > { %p27_p0 = scmp.ge.s32.totalorder %s26_s25, 4  ;;  %p142_p1 = scmp.ne.s32.totalorder %s1797_s17, %s1793_s16 }
   0x8   : > { %p143_p2 = scmp.eq.s32.totalorder %s1540_s23, 7  ;;  %p148_p5 = scmp.ne.s32.totalorder %s1793_s16, %s1789_s15 }
   0x9   : > { %s3074_s25 = smov (%p27_p0, %s26_s25), 0  ;;  %s3076_s26 = smov (!%p27_p0, %s29_s26), %s1813_s21 }
   0xa   : > { %s128_s27 = ssub.s32 %s1809_s20, %s3074_s25  ;;  %p1906_p3 = por %p143_p2, %p142_p1 }
   0xb   : > { %p31_p4 = scmp.ge.s32.totalorder %s3076_s26, 2  ;;  %p149_p6 = scmp.eq.s32.totalorder %s1541_s24, 7 }
   0xc   : > { %p1544_p7 = scmp.ge.s32.totalorder %s1817_s22, 1  ;;  %p188_p9 = scmp.lt.s32.totalorder %s1817_s22, 9 }
   0xd   : > { %s3078_s26 = smov (%p31_p4, %s3076_s26), 0  ;;  %p1915_p8 = por %p149_p6, %p148_p5 }
   0xe   : > { %s127_s30 = ssub.s32 %s1813_s21, %s3078_s26  ;;  %s132_s5 = sadd.s32 1, %s1797_s17 }
   0xf   : > { %s129_s6 = sor.u32 %s128_s27, %s127_s30  ;;  %p189_p10 = pnand %p1544_p7, %p188_p9 }
  0x10   : > { %p130_p11 = scmp.eq.s32.totalorder %s129_s6, 0 }
  0x11   : > { %192 = sbr.rel (%p189_p10) target bundleno = 667 (0x29b), region = 36 }
  0x12   : > { %s1924_s7 = scalar_select %p130_p11, %s1797_s17, %s132_s5  }
  0x18   : > { %v1929_v0 = vld [vmem:[%s2960_s1 + $0x10] sm:$0xff]  ;;  %v1934_v1 = vld [vmem:[%s2960_s1] sm:$0xff]  ;;  %v1819_v2 = vmov 0   ;;  %v1943_v3 = vld [vmem:[%s2960_s1 + $0x18] sm:$0xf]  ;;  %v1820_v9 = vmov 1   ;;  %v2964_v18 = vlaneseq }
  0x19   : > { %1651 = vset.pattern.permute.xlu1 %v1819_v2  ;;  %1650 = vset.pattern.permute.xlu0 %v1819_v2  ;;  %v1948_v4 = vld [vmem:[%s2960_s1 + $0x8] sm:$0xff]  ;;  %v1960_v6 = vld [vmem:[%s2961_s2] sm:$0xff]  ;;  %v1967_v7 = vld [vmem:[%s2961_s2 + $0x18] sm:$0xf]  ;;  %v1821_v10 = vmov 2   ;;  %v1822_v11 = vmov 3  }
  0x1a   : > { %312 = vperm.xlu1 %1651, %v1929_v0   ;;  %302 = vperm.xlu0 %1650, %v1934_v1   ;;  %v1955_v5 = vld [vmem:[%s2961_s2 + $0x8] sm:$0xff]  ;;  %v1972_v8 = vld [vmem:[%s2961_s2 + $0x10] sm:$0xff]  ;;  %v1823_v12 = vmov 4   ;;  %v1824_v13 = vmov 5   ;;  %v1825_v14 = vmov 6   ;;  %v1826_v15 = vmov 7  }
  0x1b   : > { %p218_p12 = scmp.lt.s32.totalorder %s1805_s19, 1  ;;  %v2041_v21 = vshrl.u32 %v2964_v18, 7  ;;  %s1827_s24 = smov 127  }
  0x1c   : > { %s1828_s27 = smov 126   ;;  %s1549_s9 = sshll.u32 %s1801_s18, 9 }
  0x1d   : > { %s2034_s11 = scalar_select %p218_p12, %s1805_s19, 1  ;;  %v322_v24 = vsub.s32 0, %v2041_v21  ;;  %v370_v28 = vsub.s32 1, %v2041_v21  ;;  %v422_v44 = vsub.s32 2, %v2041_v21  ;;  %v474_v57 = vsub.s32 3, %v2041_v21 }
  0x1e   : > { %317 = vperm.xlu1 %1651, %v1943_v3   ;;  %307 = vperm.xlu0 %1650, %v1948_v4   ;;  %s215_s10 = sand.u32 1, %s1793_s16   ;;  %s1564_s13 = sshll.u32 %s1805_s19, 4 }
  0x1f   : > { %s1546_s12 = sshll.u32 %s2034_s11, 3  ;;  %s1568_s30 = sshll.u32 %s2034_s11, 5 }
  0x20   : > { %s221_s23 = scalar_lea.vmem %s2959_s0, %s1546_s12  ;;  %s226_s8 = scalar_lea.vmem %s2962_s3, %s1568_s30 }
  0x21   : > { %v2053_v25 = vld [vmem:[%s221_s23] sm:$0xff]  ;;  %s1545_s11 = sshll.u32 %s215_s10, 4  ;;  %s1563_s12 = sshll.u32 %s1801_s18, 2 }
  0x22   : > { %335 = vperm.xlu1 %1651, %v1955_v5   ;;  %330 = vperm.xlu0 %1650, %v1960_v6   ;;  %v2059_v29 = vrot.slane %v2053_v25, %v322_v24  ;;  %v2064_v31 = vrot.slane %v2053_v25, %v370_v28  ;;  %v2091_v49 = vrot.slane %v2053_v25, %v422_v44  ;;  %s1451_s14 = sadd.s32 %s1564_s13, %s1563_s12  ;;  %s217_s19 = scalar_lea.vmem [#allocation2], %s1545_s11 }
  0x23   : > { %v2101_v62 = vrot.slane %v2053_v25, %v474_v57  ;;  %s1565_s18 = sshll.u32 %s1451_s14, 6  ;;  %s1455_s23 = sshll.u32 %s217_s19, 4  ;;  %s2906_s23 = int_to_ptr.vmem [resolvable:$true] %s1455_s23 }
  0x24   : > { %s2904_s30 = scalar_lea.hbm %s2963_s4, %s1565_s18  ;;  %s1439_s5 = scalar_lea.sflag [#allocation3], %s215_s10 }
  0x25   : > { %s1723_s6 = scalar_lea.vmem %s2906_s23, 256 }
  0x26   : > { %345 = vperm.xlu1 %1651, %v1967_v7   ;;  %340 = vperm.xlu0 %1650, %v1972_v8   ;;  %p1724_p13 = scmp.ne.s32.totalorder %s2906_s23, %s1723_s6 }
  0x28   : > { %p1725_p0 = pnand %p1724_p13, %p1906_p3 }
  0x2a   : > { %1653 = vset.pattern.permute.xlu1 %v1820_v9  ;;  %1652 = vset.pattern.permute.xlu0 %v1820_v9  ;;  %p1726_p1 = pneg %p1725_p0 }
  0x2b   : > { %357 = vperm.xlu1 %1653, %v1948_v4   ;;  %353 = vperm.xlu0 %1652, %v1934_v1  }
  0x2f   : > { %361 = vperm.xlu1 %1653, %v1929_v0   ;;  %365 = vperm.xlu0 %1652, %v1943_v3  }
  0x33   : > { %381 = vperm.xlu1 %1653, %v1960_v6   ;;  %385 = vperm.xlu0 %1652, %v1955_v5  }
  0x37   : > { %389 = vperm.xlu1 %1653, %v1972_v8   ;;  %393 = vperm.xlu0 %1652, %v1967_v7  }
  0x3b   : > { %1654 = vset.pattern.permute.xlu1 %v1821_v10  ;;  %1655 = vset.pattern.permute.xlu0 %v1821_v10 }
  0x3c   : > { %405 = vperm.xlu1 %1654, %v1934_v1   ;;  %409 = vperm.xlu0 %1655, %v1948_v4  }
  0x40   : > { %413 = vperm.xlu1 %1654, %v1929_v0   ;;  %433 = vperm.xlu0 %1655, %v1960_v6  }
  0x44   : > { %417 = vperm.xlu1 %1654, %v1943_v3   ;;  %441 = vperm.xlu0 %1655, %v1972_v8  }
  0x48   : > { %437 = vperm.xlu1 %1654, %v1955_v5   ;;  %1656 = vset.pattern.permute.xlu0 %v1822_v11 }
  0x49   : > { %457 = vperm.xlu0 %1656, %v1934_v1  }
  0x4c   : > { %445 = vperm.xlu1 %1654, %v1967_v7  }
  0x4d   : > { %469 = vperm.xlu0 %1656, %v1943_v3  }
  0x50   : > { %1657 = vset.pattern.permute.xlu1 %v1822_v11 }
  0x51   : > { %461 = vperm.xlu1 %1657, %v1948_v4   ;;  %489 = vperm.xlu0 %1656, %v1955_v5  }
  0x55   : > { %465 = vperm.xlu1 %1657, %v1929_v0   ;;  %497 = vperm.xlu0 %1656, %v1967_v7  }
  0x59   : > { %485 = vperm.xlu1 %1657, %v1960_v6   ;;  %1659 = vset.pattern.permute.xlu0 %v1823_v12 }
  0x5a   : > { %513 = vperm.xlu0 %1659, %v1948_v4  }
  0x5d   : > { %493 = vperm.xlu1 %1657, %v1972_v8  }
  0x5e   : > { %537 = vperm.xlu0 %1659, %v1960_v6  }
  0x61   : > { %1658 = vset.pattern.permute.xlu1 %v1823_v12 }
  0x62   : > { %509 = vperm.xlu1 %1658, %v1934_v1   ;;  %545 = vperm.xlu0 %1659, %v1972_v8  }
  0x66   : > { %517 = vperm.xlu1 %1658, %v1929_v0   ;;  %549 = vperm.xlu0 %1659, %v1967_v7  }
  0x6a   : > { %521 = vperm.xlu1 %1658, %v1943_v3   ;;  %1661 = vset.pattern.permute.xlu0 %v1824_v13 }
  0x6b   : > { %565 = vperm.xlu0 %1661, %v1948_v4  }
  0x6e   : > { %541 = vperm.xlu1 %1658, %v1955_v5  }
  0x6f   : > { %601 = vperm.xlu0 %1661, %v1967_v7  }
  0x72   : > { %1660 = vset.pattern.permute.xlu1 %v1824_v13 }
  0x73   : > { %561 = vperm.xlu1 %1660, %v1934_v1   ;;  %1664 = vset.pattern.permute.xlu0 %v1825_v14 }
  0x74   : > { %613 = vperm.xlu0 %1664, %v1934_v1  }
  0x77   : > { %589 = vperm.xlu1 %1660, %v1960_v6  }
  0x78   : > { %645 = vperm.xlu0 %1664, %v1955_v5  }
  0x7b   : > { %593 = vperm.xlu1 %1660, %v1955_v5  }
  0x7c   : > { %653 = vperm.xlu0 %1664, %v1967_v7  }
  0x7f   : > { %569 = vperm.xlu1 %1660, %v1929_v0  }
  0x80   : > { %1668 = vset.pattern.permute.xlu0 %v1826_v15 }
  0x81   : > { %665 = vperm.xlu0 %1668, %v1934_v1  }
  0x83   : > { %597 = vperm.xlu1 %1660, %v1972_v8  }
  0x85   : > { %697 = vperm.xlu0 %1668, %v1955_v5  }
  0x87   : > { %1662 = vset.pattern.permute.xlu1 %v1825_v14 }
  0x88   : > { %617 = vperm.xlu1 %1662, %v1948_v4  }
  0x89   : > { %677 = vperm.xlu0 %1668, %v1943_v3  }
  0x8c   : > { %641 = vperm.xlu1 %1662, %v1960_v6  }
  0x8d   : > { %1672 = vset.pattern.permute.xlu0 %v1820_v9 }
  0x90   : > { %1663 = vset.pattern.permute.xlu1 %v1824_v13 }
  0x91   : > { %573 = vperm.xlu1 %1663, %v1943_v3  }
  0x95   : > { %1665 = vset.pattern.permute.xlu1 %v1825_v14 }
  0x96   : > { %621 = vperm.xlu1 %1665, %v1929_v0  }
  0x99   : > { %v2031_v16 = vpop.permute.xlu1 %312  ;;  %v303_v17 = vpop.permute.xlu0 %302 }
  0x9a   : > { %649 = vperm.xlu1 %1665, %v1972_v8   ;;  %v324_v30 = vmul.f32 %v2059_v29, %v303_v17 }
  0x9d   : > { %v318_v19 = vpop.permute.xlu1 %317  ;;  %v2037_v20 = vpop.permute.xlu0 %307 }
  0x9e   : > { %1666 = vset.pattern.permute.xlu1 %v1826_v15  ;;  %v327_v59 = vmul.f32 %v2059_v29, %v318_v19  ;;  %v326_v19 = vmul.f32 %v2059_v29, %v2031_v16 }
  0x9f   : > { %669 = vperm.xlu1 %1666, %v1948_v4  }
  0xa1   : > { %v2047_v22 = vpop.permute.xlu1 %335  ;;  %v2049_v23 = vpop.permute.xlu0 %330 }
  0xa3   : > { %693 = vperm.xlu1 %1666, %v1960_v6  }
  0xa5   : > { %v2055_v26 = vpop.permute.xlu1 %345  ;;  %v341_v27 = vpop.permute.xlu0 %340 }
  0xa6   : > { %v350_v47 = vmul.f32 %v341_v27, %v2059_v29  ;;  %v526_v27 = vsub.s32 4, %v2041_v21 }
  0xa7   : > { %1667 = vset.pattern.permute.xlu1 %v1825_v14 }
  0xa8   : > { %625 = vperm.xlu1 %1667, %v1943_v3  }
  0xaa   : > { %v2066_v32 = vpop.permute.xlu1 %357  ;;  %v354_v33 = vpop.permute.xlu0 %353 }
  0xab   : > { %v372_v34 = vmul.f32 %v2064_v31, %v354_v33 }
  0xac   : > { %1669 = vset.pattern.permute.xlu1 %v1826_v15 }
  0xad   : > { %v2069_v35 = vadd.f32 %v372_v34, %v324_v30  ;;  %673 = vperm.xlu1 %1669, %v1929_v0  }
  0xae   : > { %v362_v36 = vpop.permute.xlu1 %361  ;;  %v366_v37 = vpop.permute.xlu0 %365 }
  0xaf   : > { %v375_v55 = vmul.f32 %v2064_v31, %v366_v37  ;;  %v374_v14 = vmul.f32 %v2064_v31, %v362_v36  ;;  %v2120_v37 = vrot.slane %v2053_v25, %v526_v27  ;;  %v349_v27 = vmul.f32 %v2047_v22, %v2059_v29 }
  0xb1   : > { %701 = vperm.xlu1 %1669, %v1972_v8   ;;  %v379_v61 = vadd.f32 %v375_v55, %v327_v59  ;;  %v378_v30 = vadd.f32 %v374_v14, %v326_v19  ;;  %v578_v14 = vsub.s32 5, %v2041_v21 }
  0xb2   : > { %v2073_v38 = vpop.permute.xlu1 %381  ;;  %v2075_v39 = vpop.permute.xlu0 %385 }
  0xb3   : > { %v396_v22 = vmul.f32 %v2073_v38, %v2064_v31 }
  0xb5   : > { %705 = vperm.xlu1 %1669, %v1967_v7  }
  0xb6   : > { %v390_v40 = vpop.permute.xlu1 %389  ;;  %v2078_v41 = vpop.permute.xlu0 %393 }
  0xb7   : > { %v398_v48 = vmul.f32 %v390_v40, %v2064_v31 }
  0xb9   : > { %1670 = vset.pattern.permute.xlu1 %v1819_v2  ;;  %v402_v52 = vadd.f32 %v398_v48, %v350_v47 }
  0xbb   : > { %v2081_v42 = vpop.permute.xlu1 %405  ;;  %v2083_v43 = vpop.permute.xlu0 %409 }
  0xbf   : > { %v414_v45 = vpop.permute.xlu1 %413  ;;  %v2086_v46 = vpop.permute.xlu0 %433 }
  0xc0   : > { %v426_v24 = vmul.f32 %v2091_v49, %v414_v45 }
  0xc2   : > { %v430_v34 = vadd.f32 %v426_v24, %v378_v30  ;;  %v325_v24 = vmul.f32 %v2059_v29, %v2037_v20  ;;  %v373_v30 = vmul.f32 %v2064_v31, %v2066_v32  ;;  %v348_v20 = vmul.f32 %v2049_v23, %v2059_v29 }
  0xc3   : > { %v418_v50 = vpop.permute.xlu1 %417  ;;  %v442_v51 = vpop.permute.xlu0 %441  ;;  %v424_v32 = vmul.f32 %v2091_v49, %v2081_v42  ;;  %v448_v23 = vmul.f32 %v2086_v46, %v2091_v49 }
  0xc4   : > { %v450_v53 = vmul.f32 %v442_v51, %v2091_v49  ;;  %v427_v60 = vmul.f32 %v2091_v49, %v418_v50 }
  0xc6   : > { %v454_v54 = vadd.f32 %v450_v53, %v402_v52  ;;  %v431_v1 = vadd.f32 %v427_v60, %v379_v61 }
  0xc7   : > { %v438_v56 = vpop.permute.xlu1 %437 }
  0xc8   : > { %v2096_v58 = vpop.permute.xlu0 %457 }
  0xc9   : > { %v476_v38 = vmul.f32 %v2101_v62, %v2096_v58 }
  0xcb   : > { %v2103_v63 = vpop.permute.xlu1 %445 }
  0xcc   : > { %v470_v0 = vpop.permute.xlu0 %469 }
  0xcd   : > { %v479_v3 = vmul.f32 %v2101_v62, %v470_v0 }
  0xcf   : > { %v483_v4 = vadd.f32 %v479_v3, %v431_v1 }
  0xd0   : > { %v462_v5 = vpop.permute.xlu1 %461  ;;  %v490_v6 = vpop.permute.xlu0 %489 }
  0xd4   : > { %v466_v7 = vpop.permute.xlu1 %465  ;;  %v2106_v8 = vpop.permute.xlu0 %497 }
  0xd5   : > { %v478_v33 = vmul.f32 %v2101_v62, %v466_v7 }
  0xd7   : > { %v482_v44 = vadd.f32 %v478_v33, %v430_v34  ;;  %v449_v33 = vmul.f32 %v438_v56, %v2091_v49  ;;  %v630_v34 = vsub.s32 6, %v2041_v21 }
  0xd8   : > { %v2108_v11 = vpop.permute.xlu1 %485 }
  0xd9   : > { %v514_v15 = vpop.permute.xlu0 %513 }
  0xdc   : > { %v494_v12 = vpop.permute.xlu1 %493 }
  0xdd   : > { %v502_v13 = vmul.f32 %v494_v12, %v2101_v62  ;;  %v2122_v40 = vpop.permute.xlu0 %537 }
  0xdf   : > { %v2112_v17 = vadd.f32 %v502_v13, %v454_v54 }
  0xe1   : > { %v510_v28 = vpop.permute.xlu1 %509  ;;  %v2127_v45 = vpop.permute.xlu0 %545 }
  0xe2   : > { %v528_v46 = vmul.f32 %v2120_v37, %v510_v28 }
  0xe5   : > { %v518_v36 = vpop.permute.xlu1 %517  ;;  %v2132_v53 = vpop.permute.xlu0 %549 }
  0xe6   : > { %v530_v47 = vmul.f32 %v2120_v37, %v518_v36 }
  0xe8   : > { %v2125_v48 = vadd.f32 %v530_v47, %v482_v44  ;;  %v501_v44 = vmul.f32 %v490_v6, %v2101_v62  ;;  %v2159_v47 = vrot.slane %v2053_v25, %v578_v14 }
  0xe9   : > { %v522_v16 = vpop.permute.xlu1 %521 }
  0xea   : > { %v531_v50 = vmul.f32 %v2120_v37, %v522_v16  ;;  %v566_v55 = vpop.permute.xlu0 %565  ;;  %v682_v16 = vsub.s32 7, %v2041_v21  ;;  %v529_v21 = vmul.f32 %v2120_v37, %v514_v15 }
  0xeb   : > { %v581_v58 = vmul.f32 %v2159_v47, %v566_v55 }
  0xec   : > { %v2130_v51 = vadd.f32 %v531_v50, %v483_v4  ;;  %v397_v4 = vmul.f32 %v2075_v39, %v2064_v31  ;;  %v425_v39 = vmul.f32 %v2091_v49, %v2083_v43  ;;  %v377_v50 = vadd.f32 %v373_v30, %v325_v24 }
  0xed   : > { %v542_v52 = vpop.permute.xlu1 %541  ;;  %v477_v43 = vmul.f32 %v2101_v62, %v462_v5  ;;  %v400_v5 = vadd.f32 %v396_v22, %v348_v20  ;;  %v500_v30 = vmul.f32 %v2108_v11, %v2101_v62 }
  0xee   : > { %v2134_v60 = vpop.permute.xlu0 %601  ;;  %v401_v36 = vadd.f32 %v397_v4, %v349_v27  ;;  %v553_v6 = vmul.f32 %v542_v52, %v2120_v37  ;;  %v2177_v27 = vrot.slane %v2053_v25, %v630_v34  ;;  %v429_v42 = vadd.f32 %v425_v39, %v377_v50 }
  0xef   : > { %v428_v52 = vadd.f32 %v424_v32, %v2069_v35  ;;  %v2187_v34 = vrot.slane %v2053_v25, %v682_v16 }
  0xf0   : > { %v453_v4 = vadd.f32 %v449_v33, %v401_v36  ;;  %v481_v33 = vadd.f32 %v477_v43, %v429_v42 }
  0xf1   : > { %v480_v15 = vadd.f32 %v476_v38, %v428_v52 }
  0xf2   : > { %v562_v54 = vpop.permute.xlu1 %561  ;;  %v505_v18 = vadd.f32 %v501_v44, %v453_v4  ;;  %v452_v44 = vadd.f32 %v448_v23, %v400_v5  ;;  %v533_v22 = vadd.f32 %v529_v21, %v481_v33 }
  0xf3   : > { %v614_v0 = vpop.permute.xlu0 %613  ;;  %v580_v35 = vmul.f32 %v2159_v47, %v562_v54 }
  0xf4   : > { %v557_v36 = vadd.f32 %v553_v6, %v505_v18  ;;  %v504_v55 = vadd.f32 %v500_v30, %v452_v44  ;;  %v532_v18 = vadd.f32 %v528_v46, %v480_v15  ;;  %v585_v50 = vadd.f32 %v581_v58, %v533_v22 }
  0xf5   : > { %v351_v44 = vmul.f32 %v2055_v26, %v2059_v29  ;;  %v451_v15 = vmul.f32 %v2103_v63, %v2091_v49  ;;  %v555_v49 = vmul.f32 %v2132_v53, %v2120_v37  ;;  %v607_v22 = vmul.f32 %v2134_v60, %v2159_v47 }
  0xf6   : > { %v590_v57 = vpop.permute.xlu1 %589  ;;  %v584_v43 = vadd.f32 %v580_v35, %v532_v18  ;;  %v503_v35 = vmul.f32 %v2106_v8, %v2101_v62 }
  0xf7   : > { %v646_v7 = vpop.permute.xlu0 %645  ;;  %v604_v25 = vmul.f32 %v590_v57, %v2159_v47 }
  0xf8   : > { %v657_v11 = vmul.f32 %v646_v7, %v2177_v27 }
  0xfa   : > { %v594_v59 = vpop.permute.xlu1 %593 }
  0xfb   : > { %v2140_v13 = vpop.permute.xlu0 %653  ;;  %v605_v24 = vmul.f32 %v594_v59, %v2159_v47  ;;  %v552_v59 = vmul.f32 %v2122_v40, %v2120_v37  ;;  %v632_v40 = vmul.f32 %v2177_v27, %v614_v0 }
  0xfd   : > { %v609_v28 = vadd.f32 %v605_v24, %v557_v36  ;;  %v556_v4 = vadd.f32 %v552_v59, %v504_v55  ;;  %v636_v5 = vadd.f32 %v632_v40, %v584_v43  ;;  %v554_v59 = vmul.f32 %v2127_v45, %v2120_v37 }
  0xfe   : > { %v2136_v61 = vpop.permute.xlu1 %569 }
  0xff   : > { %v661_v54 = vadd.f32 %v657_v11, %v609_v28  ;;  %v608_v42 = vadd.f32 %v604_v25, %v556_v4  ;;  %v558_v62 = vadd.f32 %v554_v59, %v2112_v17  ;;  %v716_v59 = vld [vmem:[%s226_s8] sm:$0xff] }
 0x100   : > { %v666_v56 = vpop.permute.xlu0 %665 }
 0x102   : > { %v2138_v1 = vpop.permute.xlu1 %597 }
 0x103   : > { %v606_v26 = vmul.f32 %v2138_v1, %v2159_v47 }
 0x104   : > { %v698_v20 = vpop.permute.xlu0 %697 }
 0x105   : > { %v709_v16 = vmul.f32 %v698_v20, %v2187_v34  ;;  %v582_v20 = vmul.f32 %v2159_v47, %v2136_v61  ;;  %v610_v28 = vadd.f32 %v606_v26, %v558_v62 }
 0x107   : > { %v618_v3 = vpop.permute.xlu1 %617  ;;  %v713_v21 = vadd.f32 %v709_v16, %v661_v54  ;;  %v586_v11 = vadd.f32 %v582_v20, %v2125_v48  ;;  %v719_v20 = vld [vmem:[%s226_s8 + $0x18] sm:$0xf] }
 0x108   : > { %v633_v32 = vmul.f32 %v2177_v27, %v618_v3  ;;  %v684_v3 = vmul.f32 %v2187_v34, %v666_v56  ;;  %v399_v56 = vmul.f32 %v2078_v41, %v2064_v31 }
 0x10a   : > { %v637_v23 = vadd.f32 %v633_v32, %v585_v50  ;;  %v2206_v46 = vadd.f32 %v684_v3, %v636_v5  ;;  %v403_v41 = vadd.f32 %v399_v56, %v351_v44  ;;  %v678_v32 = vpop.permute.xlu0 %677 }
 0x10b   : > { %v642_v12 = vpop.permute.xlu1 %641  ;;  %v687_v48 = vmul.f32 %v2187_v34, %v678_v32 }
 0x10c   : > { %v656_v38 = vmul.f32 %v642_v12, %v2177_v27  ;;  %v455_v29 = vadd.f32 %v451_v15, %v403_v41  ;;  %v718_v41 = vld [vmem:[%s226_s8 + $0x10] sm:$0xff] }
 0x10e   : > { %v660_v52 = vadd.f32 %v656_v38, %v608_v42  ;;  %v507_v1 = vadd.f32 %v503_v35, %v455_v29  ;;  %v717_v35 = vld [vmem:[%s226_s8 + $0x8] sm:$0xff]  ;;  %s1829_s8 = smov [#allocation2]  }
 0x110   : > { %v2145_v19 = vpop.permute.xlu1 %573  ;;  %v559_v17 = vadd.f32 %v555_v49, %v507_v1  ;;  %v2995_v49 = vlaneseq  ;;  %v234_v1 = vstv %s1549_s9  ;;  %s1727_s9 = sshll.u32 %s1829_s8, 4  ;;  %s1728_s9 = int_to_ptr.vmem [resolvable:$false] %s1727_s9 }
 0x111   : > { %v583_v8 = vmul.f32 %v2159_v47, %v2145_v19  ;;  %v659_v19 = vmul.f32 %v2140_v13, %v2177_v27  ;;  %s1729_s11 = scalar_lea.vmem %s1728_s9, 512  ;;  %p1730_p2 = scmp.lt.s32.totalorder %s2906_s23, %s1728_s9 }
 0x112   : > { %v611_v60 = vadd.f32 %v607_v22, %v559_v17  ;;  %p1731_p4 = scmp.lt.s32.totalorder %s1729_s11, %s1723_s6 }
 0x114   : > { %v663_v43 = vadd.f32 %v659_v19, %v611_v60  ;;  %p1732_p5 = por %p1731_p4, %p1730_p2 }
 0x115   : > { %v2170_v14 = vpop.permute.xlu1 %621 }
 0x116   : > { %v634_v45 = vmul.f32 %v2177_v27, %v2170_v14  ;;  %v587_v14 = vadd.f32 %v583_v8, %v2130_v51  ;;  %p1733_p6 = pnand %p1732_p5, %p1726_p1 }
 0x119   : > { %v650_v39 = vpop.permute.xlu1 %649 }
 0x11a   : > { %v658_v61 = vmul.f32 %v650_v39, %v2177_v27  ;;  %v638_v39 = vadd.f32 %v634_v45, %v586_v11 }
 0x11c   : > { %v662_v18 = vadd.f32 %v658_v61, %v610_v28 }
 0x11e   : > { %v670_v6 = vpop.permute.xlu1 %669 }
 0x11f   : > { %v685_v7 = vmul.f32 %v2187_v34, %v670_v6 }
 0x121   : > { %v2200_v24 = vadd.f32 %v685_v7, %v637_v23 }
 0x122   : > { %v694_v57 = vpop.permute.xlu1 %693 }
 0x123   : > { %v2203_v30 = vsub.f32 %v713_v21, %v2200_v24  ;;  %v708_v0 = vmul.f32 %v694_v57, %v2187_v34 }
 0x125   : > { %v712_v33 = vadd.f32 %v708_v0, %v660_v52  ;;  %v2210_v12 = vmul.f32 %v2203_v30, %v2203_v30 }
 0x127   : > { %v2215_v58 = vsub.f32 %v712_v33, %v2206_v46  ;;  %v626_v36 = vpop.permute.xlu1 %625  ;;  %734 = vrot.lane.b32.xlu0 %v2210_v12, %s1827_s24 }
 0x128   : > { %v635_v37 = vmul.f32 %v2177_v27, %v626_v36 }
 0x129   : > { %v2227_v31 = vmul.f32 %v2215_v58, %v2215_v58 }
 0x12a   : > { %v639_v47 = vadd.f32 %v635_v37, %v587_v14 }
 0x12b   : > { %748 = vrot.lane.b32.xlu0 %v2227_v31, %s1828_s27  ;;  %732 = vrot.lane.b32.xlu1 %v2227_v31, %s1827_s24 }
 0x12c   : > { %v674_v63 = vpop.permute.xlu1 %673  ;;  %v691_v13 = vadd.f32 %v687_v48, %v639_v47 }
 0x12d   : > { %v686_v53 = vmul.f32 %v2187_v34, %v674_v63  ;;  %v230_v63 = vand.u32 127, %v2995_v49 }
 0x12f   : > { %v690_v25 = vadd.f32 %v686_v53, %v638_v39  ;;  %v231_v8 = vadd.s32 128, %v230_v63  ;;  %v232_v45 = vadd.s32 256, %v230_v63  ;;  %v233_v61 = vadd.s32 384, %v230_v63 }
 0x130   : > { %v702_v55 = vpop.permute.xlu1 %701  ;;  %v235_v22 = vadd.s32 %v234_v1, %v230_v63 }
 0x131   : > { %v710_v50 = vmul.f32 %v702_v55, %v2187_v34  ;;  %v236_v11 = vadd.s32 %v234_v1, %v231_v8  ;;  %v237_v28 = vadd.s32 %v234_v1, %v232_v45  ;;  %v238_v37 = vadd.s32 %v234_v1, %v233_v61 }
 0x132   : > { %v243_v19 = vshra.s32 %v235_v22, 3 }
 0x133   : > { %v714_v16 = vadd.f32 %v710_v50, %v662_v18  ;;  %v244_v32 = vshra.s32 %v236_v11, 3  ;;  %v245_v55 = vshra.s32 %v237_v28, 3  ;;  %v246_v14 = vshra.s32 %v238_v37, 3 }
 0x134   : > { %v706_v4 = vpop.permute.xlu1 %705  ;;  %v247_v18 = vand.u32 15, %v243_v19 }
 0x135   : > { %v722_v40 = vsub.f32 %v714_v16, %v690_v25  ;;  %v711_v6 = vmul.f32 %v706_v4, %v2187_v34  ;;  %v248_v50 = vand.u32 15, %v244_v32  ;;  %v249_v47 = vand.u32 15, %v245_v55 }
 0x136   : > { %v250_v48 = vand.u32 15, %v246_v14  ;;  %v240_v16 = vshra.s32 %v236_v11, 7  ;;  %v241_v4 = vshra.s32 %v237_v28, 7 }
 0x137   : > { %v715_v27 = vadd.f32 %v711_v6, %v663_v43  ;;  %v726_v54 = vmul.f32 %v722_v40, %v722_v40  ;;  %v242_v43 = vshra.s32 %v238_v37, 7  ;;  %v268_v6 = vcvt.s32.f32 %v248_v50 }
 0x139   : > { %v723_v23 = vsub.f32 %v715_v27, %v691_v13  ;;  %736 = vrot.lane.b32.xlu1 %v726_v54, %s1827_s24  ;;  %v270_v27 = vcvt.s32.f32 %v250_v48 }
 0x13b   : > { %v727_v51 = vmul.f32 %v723_v23, %v723_v23 }
 0x13d   : > { %738 = vrot.lane.b32.xlu0 %v727_v51, %s1827_s24  ;;  %750 = vrot.lane.b32.xlu1 %v2210_v12, %s1828_s27 }
 0x141   : > { %754 = vrot.lane.b32.xlu0 %v727_v51, %s1828_s27  ;;  %752 = vrot.lane.b32.xlu1 %v726_v54, %s1828_s27 }
 0x145   : > { %869 = vperm.xlu0 %1672, %v2200_v24   ;;  %778 = vperm.xlu1 %1670, %v2206_v46  }
 0x149   : > { %897 = vperm.xlu0 %1672, %v2215_v58   ;;  %788 = vperm.xlu1 %1670, %v690_v25  }
 0x14d   : > { %909 = vperm.xlu0 %1672, %v723_v23   ;;  %793 = vperm.xlu1 %1670, %v691_v13  }
 0x151   : > { %1679 = vset.pattern.permute.xlu0 %v1821_v10  ;;  %1671 = vset.pattern.permute.xlu1 %v1820_v9 }
 0x152   : > { %977 = vperm.xlu0 %1679, %v2206_v46   ;;  %865 = vperm.xlu1 %1671, %v2206_v46  }
 0x156   : > { %1009 = vperm.xlu0 %1679, %v2215_v58   ;;  %1673 = vset.pattern.permute.xlu1 %v1819_v2 }
 0x157   : > { %819 = vperm.xlu1 %1673, %v2203_v30  }
 0x15a   : > { %1021 = vperm.xlu0 %1679, %v723_v23  }
 0x15b   : > { %1674 = vset.pattern.permute.xlu1 %v1820_v9 }
 0x15c   : > { %873 = vperm.xlu1 %1674, %v690_v25  }
 0x15e   : > { %1681 = vset.pattern.permute.xlu0 %v1819_v2 }
 0x15f   : > { %783 = vperm.xlu0 %1681, %v2200_v24  }
 0x160   : > { %901 = vperm.xlu1 %1674, %v2203_v30  }
 0x163   : > { %814 = vperm.xlu0 %1681, %v2215_v58  }
 0x164   : > { %1675 = vset.pattern.permute.xlu1 %v1821_v10 }
 0x165   : > { %981 = vperm.xlu1 %1675, %v2200_v24  }
 0x167   : > { %824 = vperm.xlu0 %1681, %v722_v40  }
 0x169   : > { %1676 = vset.pattern.permute.xlu1 %v1820_v9 }
 0x16a   : > { %877 = vperm.xlu1 %1676, %v691_v13  }
 0x16e   : > { %905 = vperm.xlu1 %1676, %v722_v40  }
 0x172   : > { %1677 = vset.pattern.permute.xlu1 %v1821_v10 }
 0x173   : > { %985 = vperm.xlu1 %1677, %v690_v25   ;;  %v239_v25 = vshra.s32 %v235_v22, 7 }
 0x177   : > { %1013 = vperm.xlu1 %1677, %v2203_v30  }
 0x17b   : > { %1678 = vset.pattern.permute.xlu1 %v1819_v2 }
 0x17c   : > { %829 = vperm.xlu1 %1678, %v723_v23   ;;  %v255_v23 = vcvt.s32.f32 %v239_v25 }
 0x180   : > { %1680 = vset.pattern.permute.xlu1 %v1821_v10 }
 0x181   : > { %989 = vperm.xlu1 %1680, %v691_v13   ;;  %v269_v13 = vcvt.s32.f32 %v249_v47 }
 0x185   : > { %1017 = vperm.xlu1 %1680, %v722_v40   ;;  %v267_v40 = vcvt.s32.f32 %v247_v18 }
 0x189   : > { %1682 = vset.pattern.permute.xlu1 %v1819_v2 }
 0x199   : > { %v735_v34 = vpop.permute.xlu0 %734 }
 0x19a   : > { %v745_v24 = vadd.f32 %v735_v34, %v2210_v12 }
 0x19d   : > { %v733_v38 = vpop.permute.xlu1 %732  ;;  %v749_v7 = vpop.permute.xlu0 %748 }
 0x19e   : > { %v744_v9 = vadd.f32 %v733_v38, %v2227_v31  ;;  %v257_v38 = vcvt.s32.f32 %v241_v4 }
 0x1a0   : > { %v760_v42 = vadd.f32 %v749_v7, %v744_v9  ;;  %v258_v9 = vcvt.s32.f32 %v242_v43  ;;  %v251_v7 = vand.u32 7, %v235_v22 }
 0x1a2   : > { %1174 = vperm.xlu1 %1682, %v760_v42   ;;  %v764_v3 = vadd.f32 1e-08, %v760_v42  ;;  %v252_v42 = vand.u32 7, %v236_v11 }
 0x1a4   : > { %1683 = vrcp.f32 %v764_v3  ;;  %v271_v3 = vmul.f32 0.13333334, %v267_v40 }
 0x1ab   : > { %v737_v21 = vpop.permute.xlu1 %736 }
 0x1ac   : > { %v746_v10 = vadd.f32 %v737_v21, %v726_v54  ;;  %v272_v21 = vmul.f32 0.13333334, %v268_v6 }
 0x1ae   : > { %v1684_v56 = vpop.eup %1683 }
 0x1af   : > { %v739_v57 = vpop.permute.xlu0 %738  ;;  %v751_v5 = vpop.permute.xlu1 %750 }
 0x1b0   : > { %v761_v52 = vadd.f32 %v751_v5, %v745_v24  ;;  %v747_v2 = vadd.f32 %v739_v57, %v727_v51  ;;  %v256_v51 = vcvt.s32.f32 %v240_v16  ;;  %v253_v24 = vand.u32 7, %v237_v28 }
 0x1b1   : > { %v254_v57 = vand.u32 7, %v238_v37  ;;  %v273_v5 = vmul.f32 0.13333334, %v269_v13 }
 0x1b2   : > { %v765_v30 = vadd.f32 1e-08, %v761_v52  ;;  %1179 = vperm.xlu1 %1682, %v761_v52   ;;  %v274_v52 = vmul.f32 0.13333334, %v270_v27 }
 0x1b3   : > { %v755_v0 = vpop.permute.xlu0 %754  ;;  %v753_v46 = vpop.permute.xlu1 %752 }
 0x1b4   : > { %1685 = vrcp.f32 %v765_v30  ;;  %v762_v33 = vadd.f32 %v753_v46, %v746_v10  ;;  %v763_v58 = vadd.f32 %v755_v0, %v747_v2  ;;  %v259_v10 = vmul.f32 0.13333334, %v255_v23 }
 0x1b5   : > { %v260_v30 = vmul.f32 0.13333334, %v256_v51  ;;  %v261_v2 = vmul.f32 0.13333334, %v257_v38  ;;  %v262_v0 = vmul.f32 0.13333334, %v258_v9  ;;  %v279_v46 = vcvt.s32.f32 %v251_v7 }
 0x1b6   : > { %v766_v36 = vadd.f32 1e-08, %v762_v33  ;;  %1090 = vperm.xlu1 %1682, %v1684_v56   ;;  %v767_v44 = vadd.f32 1e-08, %v763_v58 }
 0x1b7   : > { %v2327_v49 = vadd.f32 -1.0, %v262_v0  ;;  %v283_v63 = vmul.f32 0.2857143, %v279_v46 }
 0x1b8   : > { %1687 = vrcp.f32 %v766_v36  ;;  %v2315_v36 = vadd.f32 -1.0, %v272_v21 }
 0x1b9   : > { %1689 = vrcp.f32 %v767_v44  ;;  %v281_v44 = vcvt.s32.f32 %v253_v24  ;;  %3004 = vst [vmem:[#allocation13_spill] sm:$0xff] %v2327_v49  ;;  %v2361_v18 = vadd.f32 -1.0, %v283_v63 }
 0x1ba   : > { %2998 = vst [vmem:[#allocation7_spill] sm:$0xff] %v2315_v36 }
 0x1bb   : > { %v285_v1 = vmul.f32 0.2857143, %v281_v44  ;;  %3005 = vst [vmem:[#allocation14_spill] sm:$0xff] %v2361_v18 }
 0x1bd   : > { %v2373_v25 = vadd.f32 -1.0, %v285_v1 }
 0x1be   : > { %v1686_v12 = vpop.eup %1685 }
 0x1bf   : > { %1095 = vperm.xlu1 %1682, %v1686_v12   ;;  %v282_v12 = vcvt.s32.f32 %v254_v57  ;;  %3007 = vst [vmem:[#allocation16_spill] sm:$0xff] %v2373_v25 }
 0x1c1   : > { %v286_v22 = vmul.f32 0.2857143, %v282_v12 }
 0x1c2   : > { %v1688_v15 = vpop.eup %1687 }
 0x1c3   : > { %1184 = vperm.xlu1 %1682, %v762_v33   ;;  %1100 = vperm.xlu0 %1681, %v1688_v15   ;;  %v1690_v31 = vpop.eup %1689  ;;  %v280_v33 = vcvt.s32.f32 %v252_v42  ;;  %v2375_v16 = vadd.f32 -1.0, %v286_v22 }
 0x1c4   : > { %v2293_v26 = vpop.permute.xlu1 %778  ;;  %v870_v17 = vpop.permute.xlu0 %869 }
 0x1c5   : > { %v284_v8 = vmul.f32 0.2857143, %v280_v33  ;;  %v2333_v61 = vsub.f32 %v2315_v36, %v870_v17  ;;  %3008 = vst [vmem:[#allocation17_spill] sm:$0xff] %v2375_v16 }
 0x1c7   : > { %1338 = vperm.xlu1 %1682, %v716_v59   ;;  %1105 = vperm.xlu0 %1681, %v1690_v31   ;;  %v2317_v59 = vadd.f32 -1.0, %v273_v5  ;;  %v2319_v31 = vadd.f32 -1.0, %v274_v52  ;;  %v2363_v50 = vadd.f32 -1.0, %v284_v8  ;;  %v2371_v48 = vmul.f32 %v2333_v61, %v2333_v61 }
 0x1c8   : > { %v2295_v29 = vpop.permute.xlu1 %788  ;;  %v2305_v60 = vpop.permute.xlu0 %897 }
 0x1c9   : > { %2999 = vst [vmem:[#allocation8_spill] sm:$0xff] %v2317_v59  ;;  %3000 = vst [vmem:[#allocation9_spill] sm:$0xff] %v2319_v31  ;;  %v2336_v11 = vsub.f32 %v2317_v59, %v870_v17  ;;  %v2339_v28 = vsub.f32 %v2319_v31, %v870_v17  ;;  %v2403_v23 = vsub.f32 %v2327_v49, %v2295_v29 }
 0x1ca   : > { %3006 = vst [vmem:[#allocation15_spill] sm:$0xff] %v2363_v50 }
 0x1cb   : > { %1348 = vperm.xlu1 %1682, %v718_v41   ;;  %1189 = vperm.xlu0 %1681, %v763_v58   ;;  %v2313_v58 = vadd.f32 -1.0, %v271_v3  ;;  %v2321_v41 = vadd.f32 -1.0, %v259_v10  ;;  %v2383_v4 = vmul.f32 %v2339_v28, %v2339_v28  ;;  %3013 = vst [vmem:[#allocation22_spill] sm:$0xff] %v2403_v23 }
 0x1cc   : > { %v2299_v62 = vpop.permute.xlu1 %793  ;;  %v2309_v34 = vpop.permute.xlu0 %909 }
 0x1cd   : > { %2996 = vst [vmem:[#allocation5_spill] sm:$0xff] %v2309_v34  ;;  %2997 = vst [vmem:[#allocation6_spill] sm:$0xff] %v2313_v58  ;;  %v2330_v45 = vsub.f32 %v2313_v58, %v870_v17  ;;  %v2345_v19 = vsub.f32 %v2321_v41, %v2293_v26  ;;  %v2359_v17 = vsub.f32 %v2327_v49, %v2293_v26 }
 0x1ce   : > { %3001 = vst [vmem:[#allocation10_spill] sm:$0xff] %v2321_v41  ;;  %3009 = vst [vmem:[#allocation18_spill] sm:$0xff] %v2383_v4  ;;  %v2387_v43 = vsub.f32 %v2321_v41, %v2295_v29  ;;  %v2411_v9 = vsub.f32 %v2321_v41, %v2299_v62  ;;  %v2425_v3 = vsub.f32 %v2327_v49, %v2299_v62 }
 0x1cf   : > { %1343 = vperm.xlu0 %1681, %v717_v35   ;;  %v2323_v35 = vadd.f32 -1.0, %v260_v30  ;;  %v2367_v47 = vmul.f32 %v2330_v45, %v2330_v45  ;;  %v848_v6 = vmul.f32 %v2345_v19, %v2345_v19  ;;  %v851_v38 = vmul.f32 %v2359_v17, %v2359_v17 }
 0x1d0   : > { %3010 = vst [vmem:[#allocation19_spill] sm:$0xff] %v2387_v43  ;;  %3014 = vst [vmem:[#allocation23_spill] sm:$0xff] %v2411_v9  ;;  %v856_v5 = vmul.f32 %v2387_v43, %v2387_v43  ;;  %v2449_v33 = vmul.f32 %v2411_v9, %v2411_v9  ;;  %v2463_v8 = vmul.f32 %v2425_v3, %v2425_v3 }
 0x1d1   : > { %v2301_v53 = vpop.permute.xlu1 %865  ;;  %v978_v15 = vpop.permute.xlu0 %977  ;;  %3002 = vst [vmem:[#allocation11_spill] sm:$0xff] %v2323_v35  ;;  %v2349_v32 = vsub.f32 %v2323_v35, %v2293_v26  ;;  %v2391_v40 = vsub.f32 %v2323_v35, %v2295_v29  ;;  %v2415_v7 = vsub.f32 %v2323_v35, %v2299_v62  ;;  %3018 = vst [vmem:[#allocation27_spill] sm:$0xff] %v2425_v3 }
 0x1d2   : > { %v880_v21 = vsub.f32 %v2313_v58, %v2301_v53  ;;  %v881_v24 = vsub.f32 %v2315_v36, %v2301_v53  ;;  %v882_v10 = vsub.f32 %v2317_v59, %v2301_v53  ;;  %v992_v0 = vsub.f32 %v2361_v18, %v978_v15  ;;  %3020 = vst [vmem:[#allocation29_spill] sm:$0xff] %v2449_v33 }
 0x1d3   : > { %1353 = vperm.xlu0 %1681, %v719_v20   ;;  %v2325_v20 = vadd.f32 -1.0, %v261_v2  ;;  %3011 = vst [vmem:[#allocation20_spill] sm:$0xff] %v2391_v40  ;;  %v849_v13 = vmul.f32 %v2349_v32, %v2349_v32  ;;  %3015 = vst [vmem:[#allocation24_spill] sm:$0xff] %v2415_v7  ;;  %v857_v52 = vmul.f32 %v2391_v40, %v2391_v40 }
 0x1d4   : > { %v859_v2 = vmul.f32 %v2403_v23, %v2403_v23  ;;  %v993_v46 = vsub.f32 %v2363_v50, %v978_v15  ;;  %v2453_v44 = vmul.f32 %v2415_v7, %v2415_v7  ;;  %v995_v12 = vsub.f32 %v2375_v16, %v978_v15  ;;  %3023 = vst [vmem:[#allocation32_spill] sm:$0xff] %v2463_v8 }
 0x1d5   : > { %3003 = vst [vmem:[#allocation12_spill] sm:$0xff] %v2325_v20  ;;  %v2351_v55 = vpop.permute.xlu0 %1009  ;;  %v2355_v14 = vsub.f32 %v2325_v20, %v2293_v26  ;;  %v2379_v26 = vmul.f32 %v2336_v11, %v2336_v11  ;;  %v2399_v27 = vsub.f32 %v2325_v20, %v2295_v29  ;;  %v2421_v29 = vsub.f32 %v2325_v20, %v2299_v62 }
 0x1d6   : > { %v2303_v39 = vpop.permute.xlu1 %819  ;;  %v883_v62 = vsub.f32 %v2319_v31, %v2301_v53  ;;  %3021 = vst [vmem:[#allocation30_spill] sm:$0xff] %v2453_v44  ;;  %v994_v53 = vsub.f32 %v2373_v25, %v978_v15  ;;  %v944_v1 = vmul.f32 %v880_v21, %v880_v21  ;;  %v945_v22 = vmul.f32 %v881_v24, %v881_v24 }
 0x1d7   : > { %3012 = vst [vmem:[#allocation21_spill] sm:$0xff] %v2399_v27  ;;  %v850_v51 = vmul.f32 %v2355_v14, %v2355_v14  ;;  %3017 = vst [vmem:[#allocation26_spill] sm:$0xff] %v2421_v29  ;;  %v858_v30 = vmul.f32 %v2399_v27, %v2399_v27  ;;  %v2459_v63 = vmul.f32 %v2421_v29, %v2421_v29 }
 0x1d8   : > { %v947_v9 = vmul.f32 %v883_v62, %v883_v62  ;;  %v1056_v29 = vmul.f32 %v992_v0, %v992_v0  ;;  %v1058_v34 = vmul.f32 %v994_v53, %v994_v53  ;;  %v1059_v23 = vmul.f32 %v995_v12, %v995_v12 }
 0x1d9   : > { %v2431_v57 = vpop.permute.xlu0 %1021  ;;  %3022 = vst [vmem:[#allocation31_spill] sm:$0xff] %v2459_v63  ;;  %v1057_v63 = vmul.f32 %v993_v46, %v993_v46  ;;  %v912_v27 = vmul.f32 %v2305_v60, %v880_v21  ;;  %v913_v40 = vmul.f32 %v2305_v60, %v881_v24  ;;  %v914_v43 = vmul.f32 %v2305_v60, %v882_v10 }
 0x1da   : > { %3019 = vst [vmem:[#allocation28_spill] sm:$0xff] %v2431_v57  ;;  %v946_v57 = vmul.f32 %v882_v10, %v882_v10 }
 0x1db   : > { %v2307_v54 = vpop.permute.xlu1 %873 }
 0x1dc   : > { %v2467_v7 = vsub.f32 %v2313_v58, %v2307_v54  ;;  %v2471_v44 = vsub.f32 %v2315_v36, %v2307_v54  ;;  %v2477_v3 = vsub.f32 %v2317_v59, %v2307_v54  ;;  %v2481_v8 = vsub.f32 %v2319_v31, %v2307_v54 }
 0x1dd   : > { %v960_v36 = vadd.f32 %v944_v1, %v848_v6  ;;  %v961_v58 = vadd.f32 %v945_v22, %v849_v13  ;;  %v963_v59 = vadd.f32 %v947_v9, %v851_v38  ;;  %v1024_v6 = vmul.f32 %v2351_v55, %v992_v0 }
 0x1de   : > { %v784_v33 = vpop.permute.xlu0 %783  ;;  %v952_v4 = vmul.f32 %v2467_v7, %v2467_v7  ;;  %v953_v54 = vmul.f32 %v2471_v44, %v2471_v44  ;;  %v954_v31 = vmul.f32 %v2477_v3, %v2477_v3  ;;  %v955_v21 = vmul.f32 %v2481_v8, %v2481_v8 }
 0x1df   : > { %v2311_v56 = vpop.permute.xlu1 %901  ;;  %v800_v24 = vsub.f32 %v2321_v41, %v784_v33  ;;  %v1025_v13 = vmul.f32 %v2351_v55, %v993_v46  ;;  %v803_v38 = vsub.f32 %v2327_v49, %v784_v33  ;;  %v2505_v10 = vadd.f32 %v1057_v63, %v961_v58 }
 0x1e0   : > { %v1027_v1 = vmul.f32 %v2351_v55, %v995_v12  ;;  %v2511_v0 = vadd.f32 %v1059_v23, %v963_v59  ;;  %v2513_v46 = vadd.f32 %v952_v4, %v856_v5  ;;  %v2519_v49 = vadd.f32 %v955_v21, %v859_v2 }
 0x1e1   : > { %v836_v58 = vmul.f32 %v2303_v39, %v800_v24  ;;  %v852_v4 = vmul.f32 %v800_v24, %v800_v24  ;;  %v919_v12 = vmul.f32 %v2311_v56, %v2339_v28 }
 0x1e2   : > { %v815_v22 = vpop.permute.xlu0 %814 }
 0x1e3   : > { %v833_v59 = vmul.f32 %v815_v22, %v2349_v32  ;;  %v917_v32 = vmul.f32 %v2311_v56, %v2333_v61 }
 0x1e4   : > { %v2341_v37 = vpop.permute.xlu1 %981 }
 0x1e5   : > { %v2535_v2 = vsub.f32 %v2363_v50, %v2341_v37 }
 0x1e9   : > { %v2417_v42 = vpop.permute.xlu1 %877 }
 0x1ea   : > { %3016 = vst [vmem:[#allocation25_spill] sm:$0xff] %v2417_v42  ;;  %v962_v42 = vadd.f32 %v946_v57, %v850_v51  ;;  %v802_v51 = vsub.f32 %v2325_v20, %v784_v33  ;;  %v2503_v57 = vadd.f32 %v1056_v29, %v960_v36  ;;  %v2515_v20 = vadd.f32 %v953_v54, %v857_v52 }
 0x1eb   : > { %v855_v52 = vmul.f32 %v803_v38, %v803_v38  ;;  %v929_v54 = vadd.f32 %v913_v40, %v833_v59  ;;  %v3027_v59 = vld [vmem:[#allocation6_spill] sm:$0xff] }
 0x1ec   : > { %v838_v29 = vmul.f32 %v2303_v39, %v802_v51  ;;  %v854_v5 = vmul.f32 %v802_v51, %v802_v51  ;;  %v3025_v51 = vld [vmem:[#allocation18_spill] sm:$0xff] }
 0x1ed   : > { %v2473_v15 = vpop.permute.xlu1 %905  ;;  %v2577_v40 = vadd.f32 %v1025_v13, %v929_v54  ;;  %v3036_v54 = vld [vmem:[#allocation22_spill] sm:$0xff] }
 0x1ee   : > { %3024 = vst [vmem:[#allocation33_spill] sm:$0xff] %v2473_v15  ;;  %v915_v15 = vmul.f32 %v2305_v60, %v883_v62  ;;  %v801_v60 = vsub.f32 %v2323_v35, %v784_v33  ;;  %v1026_v62 = vmul.f32 %v2351_v55, %v994_v53  ;;  %v2509_v35 = vadd.f32 %v1058_v34, %v962_v42 }
 0x1ef   : > { %v2517_v33 = vadd.f32 %v954_v31, %v858_v30  ;;  %v839_v55 = vmul.f32 %v2303_v39, %v803_v38  ;;  %v832_v34 = vmul.f32 %v815_v22, %v2345_v19  ;;  %v834_v42 = vmul.f32 %v815_v22, %v2355_v14 }
 0x1f0   : > { %v837_v36 = vmul.f32 %v2303_v39, %v801_v60  ;;  %v853_v23 = vmul.f32 %v801_v60, %v801_v60  ;;  %v835_v31 = vmul.f32 %v815_v22, %v2359_v17  ;;  %v2531_v30 = vsub.f32 %v2361_v18, %v2341_v37 }
 0x1f1   : > { %v916_v19 = vmul.f32 %v2311_v56, %v2330_v45  ;;  %v2545_v14 = vsub.f32 %v2373_v25, %v2341_v37  ;;  %v2549_v17 = vsub.f32 %v2375_v16, %v2341_v37  ;;  %v918_v53 = vmul.f32 %v2311_v56, %v2336_v11 }
 0x1f2   : > { %v2501_v9 = vpop.permute.xlu1 %985  ;;  %v928_v63 = vadd.f32 %v912_v27, %v832_v34  ;;  %v964_v45 = vadd.f32 %v2367_v47, %v852_v4  ;;  %v965_v61 = vadd.f32 %v2371_v48, %v853_v23  ;;  %v930_v21 = vadd.f32 %v914_v43, %v834_v42  ;;  %v825_v27 = vpop.permute.xlu0 %824  ;;  %v3026_v34 = vld [vmem:[#allocation25_spill] sm:$0xff]  ;;  %v3028_v23 = vld [vmem:[#allocation7_spill] sm:$0xff] }
 0x1f3   : > { %v931_v24 = vadd.f32 %v915_v15, %v835_v31  ;;  %v966_v60 = vadd.f32 %v2379_v26, %v854_v5  ;;  %v967_v38 = vadd.f32 %v3025_v51, %v855_v52  ;;  %v1060_v37 = vmul.f32 %v2531_v30, %v2531_v30  ;;  %v3030_v31 = vld [vmem:[#allocation9_spill] sm:$0xff]  ;;  %v3033_v52 = vld [vmem:[#allocation19_spill] sm:$0xff] }
 0x1f4   : > { %v1061_v11 = vmul.f32 %v2535_v2, %v2535_v2  ;;  %v2563_v22 = vadd.f32 %v916_v19, %v836_v58  ;;  %v2565_v56 = vadd.f32 %v917_v32, %v837_v36  ;;  %v1062_v28 = vmul.f32 %v2545_v14, %v2545_v14  ;;  %v3034_v32 = vld [vmem:[#allocation20_spill] sm:$0xff] }
 0x1f5   : > { %v1063_v47 = vmul.f32 %v2549_v17, %v2549_v17  ;;  %v2571_v48 = vadd.f32 %v918_v53, %v838_v29  ;;  %v2573_v26 = vadd.f32 %v919_v12, %v839_v55  ;;  %v2575_v43 = vadd.f32 %v1024_v6, %v928_v63  ;;  %v3029_v6 = vld [vmem:[#allocation8_spill] sm:$0xff]  ;;  %v3035_v12 = vld [vmem:[#allocation21_spill] sm:$0xff] }
 0x1f6   : > { %v2537_v39 = vpop.permute.xlu1 %1013  ;;  %v2581_v58 = vadd.f32 %v1026_v62, %v930_v21  ;;  %v2583_v36 = vadd.f32 %v1027_v1, %v931_v24  ;;  %v892_v4 = vsub.f32 %v3027_v59, %v3026_v34  ;;  %v893_v29 = vsub.f32 %v3028_v23, %v3026_v34  ;;  %v3041_v59 = vld [vmem:[#allocation31_spill] sm:$0xff] }
 0x1f7   : > { %v2589_v42 = vadd.f32 %v1060_v37, %v964_v45  ;;  %v2591_v55 = vadd.f32 %v1061_v11, %v965_v61  ;;  %v894_v13 = vsub.f32 %v3029_v6, %v3026_v34  ;;  %v895_v5 = vsub.f32 %v3030_v31, %v3026_v34  ;;  %v3037_v61 = vld [vmem:[#allocation33_spill] sm:$0xff] }
 0x1f8   : > { %v2597_v62 = vadd.f32 %v1062_v28, %v966_v60  ;;  %v2599_v1 = vadd.f32 %v1063_v47, %v967_v38  ;;  %v840_v19 = vmul.f32 %v825_v27, %v3033_v52  ;;  %v841_v53 = vmul.f32 %v825_v27, %v3034_v32  ;;  %v3038_v11 = vld [vmem:[#allocation5_spill] sm:$0xff] }
 0x1f9   : > { %v842_v63 = vmul.f32 %v825_v27, %v3035_v12  ;;  %v843_v45 = vmul.f32 %v825_v27, %v3036_v54  ;;  %v920_v21 = vmul.f32 %v3037_v61, %v2467_v7  ;;  %v921_v24 = vmul.f32 %v3037_v61, %v2471_v44  ;;  %v3039_v12 = vld [vmem:[#allocation29_spill] sm:$0xff] }
 0x1fa   : > { %3031 = vst [vmem:[#allocation18_spill] sm:$0xff] %v2597_v62  ;;  %3032 = vst [vmem:[#allocation25_spill] sm:$0xff] %v2599_v1  ;;  %v956_v51 = vmul.f32 %v892_v4, %v892_v4  ;;  %v957_v37 = vmul.f32 %v893_v29, %v893_v29  ;;  %v922_v60 = vmul.f32 %v3037_v61, %v2477_v3  ;;  %v3042_v1 = vld [vmem:[#allocation32_spill] sm:$0xff] }
 0x1fb   : > { %v2579_v15 = vpop.permute.xlu1 %829  ;;  %v923_v38 = vmul.f32 %v3037_v61, %v2481_v8  ;;  %v924_v28 = vmul.f32 %v3038_v11, %v892_v4  ;;  %v925_v47 = vmul.f32 %v3038_v11, %v893_v29  ;;  %v958_v34 = vmul.f32 %v894_v13, %v894_v13  ;;  %v3040_v61 = vld [vmem:[#allocation30_spill] sm:$0xff] }
 0x1fc   : > { %v959_v27 = vmul.f32 %v895_v5, %v895_v5  ;;  %v926_v7 = vmul.f32 %v3038_v11, %v894_v13  ;;  %v2618_v44 = vsub.f32 %v2361_v18, %v2501_v9  ;;  %v2622_v32 = vsub.f32 %v2363_v50, %v2501_v9 }
 0x1fd   : > { %v2626_v3 = vsub.f32 %v2373_v25, %v2501_v9  ;;  %v927_v8 = vmul.f32 %v3038_v11, %v895_v5  ;;  %v2629_v4 = vadd.f32 %v920_v21, %v840_v19  ;;  %v2631_v29 = vadd.f32 %v921_v24, %v841_v53 }
 0x1fe   : > { %v2635_v13 = vsub.f32 %v2375_v16, %v2501_v9  ;;  %v972_v54 = vadd.f32 %v956_v51, %v3039_v12  ;;  %v973_v31 = vadd.f32 %v957_v37, %v3040_v61  ;;  %v2639_v6 = vadd.f32 %v922_v60, %v842_v63  ;;  %v3044_v61 = vld [vmem:[#allocation24_spill] sm:$0xff] }
 0x1ff   : > { %v2641_v23 = vadd.f32 %v923_v38, %v843_v45  ;;  %v974_v41 = vadd.f32 %v958_v34, %v3041_v59  ;;  %v975_v5 = vadd.f32 %v959_v27, %v3042_v1  ;;  %v1028_v19 = vmul.f32 %v2537_v39, %v2531_v30  ;;  %v3043_v27 = vld [vmem:[#allocation23_spill] sm:$0xff] }
 0x200   : > { %v990_v52 = vpop.permute.xlu1 %989  ;;  %v2648_v53 = vmul.f32 2.0, %v2575_v43  ;;  %v1064_v9 = vmul.f32 %v2618_v44, %v2618_v44  ;;  %v1065_v21 = vmul.f32 %v2622_v32, %v2622_v32  ;;  %v1066_v63 = vmul.f32 %v2626_v3, %v2626_v3 }
 0x201   : > { %v2657_v45 = vmul.f32 2.0, %v2577_v40  ;;  %v1067_v59 = vmul.f32 %v2635_v13, %v2635_v13  ;;  %v1004_v30 = vsub.f32 %v2361_v18, %v990_v52  ;;  %v1005_v1 = vsub.f32 %v2363_v50, %v990_v52 }
 0x202   : > { %v2664_v51 = vmul.f32 2.0, %v2581_v58  ;;  %v1029_v37 = vmul.f32 %v2537_v39, %v2535_v2  ;;  %v1030_v60 = vmul.f32 %v2537_v39, %v2545_v14  ;;  %v1031_v38 = vmul.f32 %v2537_v39, %v2549_v17 }
 0x203   : > { %v2673_v11 = vmul.f32 2.0, %v2583_v36  ;;  %v2676_v34 = vadd.f32 %v1028_v19, %v2563_v22  ;;  %v844_v12 = vmul.f32 %v2579_v15, %v3043_v27  ;;  %v845_v50 = vmul.f32 %v2579_v15, %v3044_v61  ;;  %v3047_v19 = vld [vmem:[#allocation26_spill] sm:$0xff]  ;;  %v3048_v61 = vld [vmem:[#allocation28_spill] sm:$0xff] }
 0x204   : > { %v1018_v24 = vpop.permute.xlu1 %1017  ;;  %v1006_v2 = vsub.f32 %v2373_v25, %v990_v52  ;;  %v2684_v18 = vadd.f32 %v1064_v9, %v2513_v46  ;;  %v2687_v14 = vadd.f32 %v1065_v21, %v2515_v20  ;;  %v2690_v39 = vadd.f32 %v1066_v63, %v2517_v33 }
 0x205   : > { %v1007_v17 = vsub.f32 %v2375_v16, %v990_v52  ;;  %v2694_v22 = vadd.f32 %v1067_v59, %v2519_v49  ;;  %v846_v27 = vmul.f32 %v2579_v15, %v3047_v19  ;;  %v1036_v62 = vmul.f32 %v3048_v61, %v1004_v30  ;;  %v3049_v49 = vld [vmem:[#allocation27_spill] sm:$0xff] }
 0x206   : > { %3045 = vst [vmem:[#allocation19_spill] sm:$0xff] %v2690_v39  ;;  %v1037_v25 = vmul.f32 %v3048_v61, %v1005_v1  ;;  %v2703_v20 = vadd.f32 %v1029_v37, %v2565_v56  ;;  %v2706_v33 = vadd.f32 %v1030_v60, %v2571_v48  ;;  %v2709_v52 = vadd.f32 %v1031_v38, %v2573_v26 }
 0x207   : > { %3046 = vst [vmem:[#allocation20_spill] sm:$0xff] %v2694_v22  ;;  %v847_v9 = vmul.f32 %v2579_v15, %v3049_v49  ;;  %v940_v21 = vadd.f32 %v924_v28, %v844_v12  ;;  %v941_v63 = vadd.f32 %v925_v47, %v845_v50  ;;  %v1038_v59 = vmul.f32 %v3048_v61, %v1006_v2 }
 0x208   : > { %v2715_v19 = vmul.f32 2.0, %v2676_v34  ;;  %v1039_v16 = vmul.f32 %v3048_v61, %v1007_v17  ;;  %v1068_v56 = vmul.f32 %v1004_v30, %v1004_v30  ;;  %v1069_v37 = vmul.f32 %v1005_v1, %v1005_v1 }
 0x209   : > { %v1070_v22 = vmul.f32 %v1006_v2, %v1006_v2  ;;  %v942_v48 = vadd.f32 %v926_v7, %v846_v27  ;;  %v2718_v60 = vadd.f32 %v1036_v62, %v940_v21  ;;  %v2720_v26 = vadd.f32 %v1037_v25, %v941_v63 }
 0x20a   : > { %v1071_v38 = vmul.f32 %v1007_v17, %v1007_v17  ;;  %v943_v15 = vadd.f32 %v927_v8, %v847_v9  ;;  %v2725_v50 = vmul.f32 2.0, %v2703_v20  ;;  %v2728_v28 = vmul.f32 2.0, %v2706_v33 }
 0x20b   : > { %v2731_v47 = vmul.f32 2.0, %v2709_v52  ;;  %v2733_v30 = vadd.f32 %v1038_v59, %v942_v48  ;;  %v1032_v62 = vmul.f32 %v1018_v24, %v2618_v44  ;;  %v1033_v25 = vmul.f32 %v1018_v24, %v2622_v32 }
 0x20c   : > { %v1034_v7 = vmul.f32 %v1018_v24, %v2626_v3  ;;  %v2738_v1 = vadd.f32 %v1039_v16, %v943_v15  ;;  %v2740_v8 = vadd.f32 %v1068_v56, %v972_v54  ;;  %v2742_v12 = vadd.f32 %v1069_v37, %v973_v31 }
 0x20d   : > { %v2744_v2 = vadd.f32 %v1070_v22, %v974_v41  ;;  %v2746_v17 = vadd.f32 %v1071_v38, %v975_v5  ;;  %v1035_v27 = vmul.f32 %v1018_v24, %v2635_v13  ;;  %v2750_v49 = vmul.f32 2.0, %v2718_v60 }
 0x20e   : > { %v2753_v44 = vmul.f32 2.0, %v2720_v26  ;;  %v2760_v3 = vadd.f32 %v1032_v62, %v2629_v4  ;;  %v2763_v13 = vadd.f32 %v1033_v25, %v2631_v29  ;;  %v2766_v54 = vadd.f32 %v1034_v7, %v2639_v6 }
 0x20f   : > { %v2769_v5 = vmul.f32 2.0, %v2733_v30  ;;  %v2788_v38 = vadd.f32 %v1035_v27, %v2641_v23 }
 0x210   : > { %v2801_v23 = vmul.f32 2.0, %v2760_v3 }
 0x221   : > { %v2700_v46 = vpop.permute.xlu1 %1174 }
 0x222   : > { %v1192_v24 = vsub.f32 %v2648_v53, %v2700_v46  ;;  %v1193_v22 = vsub.f32 %v2657_v45, %v2700_v46  ;;  %v1194_v9 = vsub.f32 %v2664_v51, %v2700_v46  ;;  %v1195_v4 = vsub.f32 %v2673_v11, %v2700_v46 }
 0x231   : > { %v2722_v39 = vpop.permute.xlu1 %1179 }
 0x232   : > { %v1199_v27 = vsub.f32 %v2731_v47, %v2722_v39 }
 0x235   : > { %v1091_v61 = vpop.permute.xlu1 %1090 }
 0x236   : > { %v1108_v16 = vmul.f32 %v1091_v61, %v2575_v43  ;;  %v1109_v32 = vmul.f32 %v1091_v61, %v2577_v40  ;;  %v1110_v31 = vmul.f32 %v1091_v61, %v2581_v58  ;;  %v1111_v41 = vmul.f32 %v1091_v61, %v2583_v36 }
 0x238   : > { %vm1140_vm0 = vcmp.ge.f32.partialorder %v1108_v16, 1.0  ;;  %vm1141_vm1 = vcmp.ge.f32.partialorder %v1109_v32, 1.0  ;;  %vm1142_vm2 = vcmp.ge.f32.partialorder %v1110_v31, 1.0  ;;  %vm1143_vm3 = vcmp.ge.f32.partialorder %v1111_v41, 1.0 }
 0x239   : > { %v1208_v6 = vmul.f32 %v1108_v16, %v2575_v43  ;;  %v1209_v29 = vmul.f32 %v1109_v32, %v2577_v40  ;;  %v1210_v21 = vmul.f32 %v1110_v31, %v2581_v58  ;;  %v1211_v53 = vmul.f32 %v1111_v41, %v2583_v36 }
 0x23a   : > { %vm1124_vm4 = vcmp.le.f32.partialorder %v1108_v16, 0.0  ;;  %vm1125_vm5 = vcmp.le.f32.partialorder %v1109_v32, 0.0  ;;  %vm1126_vm6 = vcmp.le.f32.partialorder %v1110_v31, 0.0  ;;  %vm1127_vm7 = vcmp.le.f32.partialorder %v1111_v41, 0.0 }
 0x23b   : > { %v1224_v45 = vsel %vm1140_vm0, %v1192_v24, %v1208_v6  ;;  %v1225_v51 = vsel %vm1141_vm1, %v1193_v22, %v1209_v29  ;;  %v1226_v63 = vsel %vm1142_vm2, %v1194_v9, %v1210_v21  ;;  %v1227_v11 = vsel %vm1143_vm3, %v1195_v4, %v1211_v53 }
 0x23c   : > { %v1240_v46 = vsel %vm1124_vm4, 0.0, %v1224_v45  ;;  %v1241_v59 = vsel %vm1125_vm5, 0.0, %v1225_v51  ;;  %v1242_v56 = vsel %vm1126_vm6, 0.0, %v1226_v63  ;;  %v1243_v37 = vsel %vm1127_vm7, 0.0, %v1227_v11 }
 0x23d   : > { %v1256_v43 = vsub.f32 %v2503_v57, %v1240_v46  ;;  %v1257_v40 = vsub.f32 %v2505_v10, %v1241_v59  ;;  %v1258_v58 = vsub.f32 %v2509_v35, %v1242_v56  ;;  %v1259_v36 = vsub.f32 %v2511_v0, %v1243_v37  ;;  %v3050_v46 = vld [vmem:[#allocation18_spill] sm:$0xff]  ;;  %v3051_v56 = vld [vmem:[#allocation25_spill] sm:$0xff] }
 0x23e   : > { %v1096_v48 = vpop.permute.xlu1 %1095  ;;  %v1196_v35 = vsub.f32 %v2715_v19, %v2722_v39  ;;  %v1197_v10 = vsub.f32 %v2725_v50, %v2722_v39  ;;  %v1198_v0 = vsub.f32 %v2728_v28, %v2722_v39 }
 0x23f   : > { %v1112_v15 = vmul.f32 %v1096_v48, %v2676_v34  ;;  %v1113_v62 = vmul.f32 %v1096_v48, %v2703_v20  ;;  %v1114_v25 = vmul.f32 %v1096_v48, %v2706_v33  ;;  %v1272_v7 = vmax.f32 %v1256_v43, 0.0 }
 0x240   : > { %v1273_v61 = vmax.f32 %v1257_v40, 0.0  ;;  %v1274_v16 = vmax.f32 %v1258_v58, 0.0  ;;  %v1115_v57 = vmul.f32 %v1096_v48, %v2709_v52  ;;  %v1275_v32 = vmax.f32 %v1259_v36, 0.0 }
 0x241   : > { %v1288_v31 = vmul.f32 -400.0, %v1272_v7  ;;  %vm1128_vm8 = vcmp.le.f32.partialorder %v1112_v15, 0.0  ;;  %vm1129_vm9 = vcmp.le.f32.partialorder %v1113_v62, 0.0  ;;  %vm1144_vm10 = vcmp.ge.f32.partialorder %v1112_v15, 1.0 }
 0x242   : > { %v1289_v41 = vmul.f32 -400.0, %v1273_v61  ;;  %v1290_v24 = vmul.f32 -400.0, %v1274_v16  ;;  %vm1145_vm11 = vcmp.ge.f32.partialorder %v1113_v62, 1.0  ;;  %vm1146_vm12 = vcmp.ge.f32.partialorder %v1114_v25, 1.0  ;;  %v1101_v4 = vpop.permute.xlu0 %1100  ;;  %v1185_v61 = vpop.permute.xlu1 %1184 }
 0x243   : > { %vm1147_vm13 = vcmp.ge.f32.partialorder %v1115_v57, 1.0  ;;  %v1212_v19 = vmul.f32 %v1112_v15, %v2676_v34  ;;  %vm1130_vm14 = vcmp.le.f32.partialorder %v1114_v25, 0.0  ;;  %v1213_v50 = vmul.f32 %v1113_v62, %v2703_v20 }
 0x244   : > { %v1214_v28 = vmul.f32 %v1114_v25, %v2706_v33  ;;  %v1215_v22 = vmul.f32 %v1115_v57, %v2709_v52  ;;  %v1291_v39 = vmul.f32 -400.0, %v1275_v32  ;;  %v1304_v47 = vmul.f32 1.442695, %v1288_v31 }
 0x245   : > { %vm1131_vm15 = vcmp.le.f32.partialorder %v1115_v57, 0.0  ;;  %v1228_v9 = vsel %vm1144_vm10, %v1196_v35, %v1212_v19  ;;  %v1306_v6 = vmul.f32 1.442695, %v1289_v41  ;;  %v1229_v29 = vsel %vm1145_vm11, %v1197_v10, %v1213_v50 }
 0x246   : > { %v1230_v21 = vsel %vm1146_vm12, %v1198_v0, %v1214_v28  ;;  %v1231_v53 = vsel %vm1147_vm13, %v1199_v27, %v1215_v22  ;;  %v1308_v45 = vmul.f32 1.442695, %v1290_v24  ;;  %v1244_v51 = vsel %vm1128_vm8, 0.0, %v1228_v9 }
 0x247   : > { %v1245_v34 = vsel %vm1129_vm9, 0.0, %v1229_v29  ;;  %v1246_v20 = vsel %vm1130_vm14, 0.0, %v1230_v21  ;;  %v1247_v63 = vsel %vm1131_vm15, 0.0, %v1231_v53  ;;  %v1260_v33 = vsub.f32 %v2589_v42, %v1244_v51 }
 0x248   : > { %v1261_v52 = vsub.f32 %v2591_v55, %v1245_v34  ;;  %v1116_v11 = vmul.f32 %v1101_v4, %v2760_v3  ;;  %v1262_v59 = vsub.f32 %v3050_v46, %v1246_v20  ;;  %v1263_v37 = vsub.f32 %v3051_v56, %v1247_v63  ;;  %v3053_v34 = vld [vmem:[#allocation20_spill] sm:$0xff] }
 0x249   : > { %v1117_v43 = vmul.f32 %v1101_v4, %v2763_v13  ;;  %v1118_v40 = vmul.f32 %v1101_v4, %v2766_v54  ;;  %1691 = vpow2.f32 %v1304_v47  ;;  %v1165_v58 = vmul.f32 2.0, %v2763_v13 }
 0x24a   : > { %v1166_v36 = vmul.f32 2.0, %v2766_v54  ;;  %v1167_v48 = vmul.f32 2.0, %v2788_v38  ;;  %1693 = vpow2.f32 %v1306_v6  ;;  %v1278_v42 = vmax.f32 %v1262_v59, 0.0 }
 0x24b   : > { %v1279_v55 = vmax.f32 %v1263_v37, 0.0  ;;  %v1119_v15 = vmul.f32 %v1101_v4, %v2788_v38  ;;  %1695 = vpow2.f32 %v1308_v45  ;;  %v1310_v62 = vmul.f32 1.442695, %v1291_v39  ;;  %v1106_v39 = vpop.permute.xlu0 %1105  ;;  %v3052_v45 = vld [vmem:[#allocation19_spill] sm:$0xff] }
 0x24c   : > { %v1276_v25 = vmax.f32 %v1260_v33, 0.0  ;;  %v1277_v7 = vmax.f32 %v1261_v52, 0.0  ;;  %vm1132_vm0 = vcmp.le.f32.partialorder %v1116_v11, 0.0  ;;  %vm1133_vm1 = vcmp.le.f32.partialorder %v1117_v43, 0.0 }
 0x24d   : > { %vm1134_vm2 = vcmp.le.f32.partialorder %v1118_v40, 0.0  ;;  %vm1148_vm3 = vcmp.ge.f32.partialorder %v1116_v11, 1.0  ;;  %v1294_v16 = vmul.f32 -400.0, %v1278_v42  ;;  %vm1149_vm4 = vcmp.ge.f32.partialorder %v1117_v43, 1.0 }
 0x24e   : > { %v1216_v57 = vmul.f32 %v1116_v11, %v2760_v3  ;;  %v1217_v35 = vmul.f32 %v1117_v43, %v2763_v13  ;;  %v1295_v10 = vmul.f32 -400.0, %v1279_v55  ;;  %vm1150_vm5 = vcmp.ge.f32.partialorder %v1118_v40, 1.0 }
 0x24f   : > { %v1218_v0 = vmul.f32 %v1118_v40, %v2766_v54  ;;  %v1219_v27 = vmul.f32 %v1119_v15, %v2788_v38  ;;  %vm1151_vm6 = vcmp.ge.f32.partialorder %v1119_v15, 1.0  ;;  %v1200_v32 = vsub.f32 %v2801_v23, %v1185_v61  ;;  %v1190_v55 = vpop.permute.xlu0 %1189 }
 0x250   : > { %v1201_v31 = vsub.f32 %v1165_v58, %v1185_v61  ;;  %v1202_v41 = vsub.f32 %v1166_v36, %v1185_v61  ;;  %v1292_v24 = vmul.f32 -400.0, %v1276_v25  ;;  %v1293_v19 = vmul.f32 -400.0, %v1277_v7 }
 0x251   : > { %vm1135_vm7 = vcmp.le.f32.partialorder %v1119_v15, 0.0  ;;  %v1203_v50 = vsub.f32 %v1167_v48, %v1185_v61  ;;  %v1316_v28 = vmul.f32 1.442695, %v1294_v16  ;;  %v1232_v3 = vsel %vm1148_vm3, %v1200_v32, %v1216_v57 }
 0x252   : > { %v1233_v13 = vsel %vm1149_vm4, %v1201_v31, %v1217_v35  ;;  %v1234_v22 = vsel %vm1150_vm5, %v1202_v41, %v1218_v0  ;;  %v1318_v47 = vmul.f32 1.442695, %v1295_v10  ;;  %v1248_v38 = vsel %vm1132_vm0, 0.0, %v1232_v3 }
 0x253   : > { %v1235_v54 = vsel %vm1151_vm6, %v1203_v50, %v1219_v27  ;;  %v1249_v9 = vsel %vm1133_vm1, 0.0, %v1233_v13  ;;  %v2832_v23 = vpop.eup %1691  ;;  %v1250_v4 = vsel %vm1134_vm2, 0.0, %v1234_v22  ;;  %v1264_v29 = vsub.f32 %v2684_v18, %v1248_v38 }
 0x254   : > { %v1251_v6 = vsel %vm1135_vm7, 0.0, %v1235_v54  ;;  %v1265_v21 = vsub.f32 %v2687_v14, %v1249_v9  ;;  %v2837_v53 = vpop.eup %1693  ;;  %v1266_v51 = vsub.f32 %v3052_v45, %v1250_v4  ;;  %v1120_v63 = vmul.f32 %v1106_v39, %v2718_v60  ;;  %v1344_v9 = vpop.permute.xlu0 %1343 }
 0x255   : > { %v1267_v20 = vsub.f32 %v3053_v34, %v1251_v6  ;;  %v1121_v33 = vmul.f32 %v1106_v39, %v2720_v26  ;;  %v2843_v52 = vpop.eup %1695  ;;  %v1280_v11 = vmax.f32 %v1264_v29, 0.0  ;;  %v1122_v59 = vmul.f32 %v1106_v39, %v2733_v30 }
 0x256   : > { %v1281_v46 = vmax.f32 %v1265_v21, 0.0  ;;  %v1123_v18 = vmul.f32 %v1106_v39, %v2738_v1  ;;  %1697 = vpow2.f32 %v1310_v62  ;;  %v1282_v14 = vmax.f32 %v1266_v51, 0.0 }
 0x257   : > { %v1283_v56 = vmax.f32 %v1267_v20, 0.0  ;;  %v1171_v37 = vmul.f32 2.0, %v2738_v1  ;;  %v1312_v43 = vmul.f32 1.442695, %v1292_v24  ;;  %v1314_v40 = vmul.f32 1.442695, %v1293_v19 }
 0x258   : > { %1699 = vpow2.f32 %v1316_v28  ;;  %v1296_v58 = vmul.f32 -400.0, %v1280_v11  ;;  %v1298_v36 = vmul.f32 -400.0, %v1282_v14  ;;  %vm1136_vm8 = vcmp.le.f32.partialorder %v1120_v63, 0.0  ;;  %v1339_v28 = vpop.permute.xlu1 %1338 }
 0x259   : > { %1701 = vpow2.f32 %v1318_v47  ;;  %v1299_v48 = vmul.f32 -400.0, %v1283_v56  ;;  %v1297_v42 = vmul.f32 -400.0, %v1281_v46  ;;  %vm1137_vm9 = vcmp.le.f32.partialorder %v1121_v33, 0.0 }
 0x25a   : > { %vm1138_vm10 = vcmp.le.f32.partialorder %v1122_v59, 0.0  ;;  %vm1139_vm11 = vcmp.le.f32.partialorder %v1123_v18, 0.0  ;;  %v1324_v15 = vmul.f32 1.442695, %v1298_v36  ;;  %vm1152_vm12 = vcmp.ge.f32.partialorder %v1120_v63, 1.0 }
 0x25b   : > { %v1326_v25 = vmul.f32 1.442695, %v1299_v48  ;;  %vm1153_vm13 = vcmp.ge.f32.partialorder %v1121_v33, 1.0  ;;  %v1320_v62 = vmul.f32 1.442695, %v1296_v58  ;;  %vm1154_vm14 = vcmp.ge.f32.partialorder %v1122_v59, 1.0 }
 0x25c   : > { %vm1155_vm15 = vcmp.ge.f32.partialorder %v1123_v18, 1.0  ;;  %v1220_v7 = vmul.f32 %v1120_v63, %v2718_v60  ;;  %v1221_v61 = vmul.f32 %v1121_v33, %v2720_v26  ;;  %v1222_v16 = vmul.f32 %v1122_v59, %v2733_v30  ;;  %v1349_v33 = vpop.permute.xlu1 %1348 }
 0x25d   : > { %v1204_v57 = vsub.f32 %v2750_v49, %v1190_v55  ;;  %v1205_v35 = vsub.f32 %v2753_v44, %v1190_v55  ;;  %1703 = vpow2.f32 %v1324_v15  ;;  %v1223_v10 = vmul.f32 %v1123_v18, %v2738_v1 }
 0x25e   : > { %v1206_v0 = vsub.f32 %v2769_v5, %v1190_v55  ;;  %v1207_v27 = vsub.f32 %v1171_v37, %v1190_v55  ;;  %v1322_v32 = vmul.f32 1.442695, %v1297_v42  ;;  %1705 = vpow2.f32 %v1326_v25 }
 0x25f   : > { %v1236_v31 = vsel %vm1152_vm12, %v1204_v57, %v1220_v7  ;;  %v1237_v60 = vsel %vm1153_vm13, %v1205_v35, %v1221_v61  ;;  %1707 = vpow2.f32 %v1312_v43  ;;  %v1358_v45 = vmul.f32 %v2843_v52, %v1339_v28  ;;  %v1354_v61 = vpop.permute.xlu0 %1353 }
 0x260   : > { %v1238_v41 = vsel %vm1154_vm14, %v1206_v0, %v1222_v16  ;;  %v1239_v26 = vsel %vm1155_vm15, %v1207_v27, %v1223_v10  ;;  %v1252_v30 = vsel %vm1136_vm8, 0.0, %v1236_v31  ;;  %v1253_v49 = vsel %vm1137_vm9, 0.0, %v1237_v60  ;;  %v1698_v24 = vpop.eup %1697 }
 0x261   : > { %v1254_v44 = vsel %vm1138_vm10, 0.0, %v1238_v41  ;;  %v1255_v1 = vsel %vm1139_vm11, 0.0, %v1239_v26  ;;  %v1268_v5 = vsub.f32 %v2740_v8, %v1252_v30  ;;  %v1269_v19 = vsub.f32 %v2742_v12, %v1253_v49 }
 0x262   : > { %v1700_v50 = vpop.eup %1699  ;;  %v1270_v3 = vsub.f32 %v2744_v2, %v1254_v44  ;;  %v1271_v13 = vsub.f32 %v2746_v17, %v1255_v1  ;;  %1709 = vpow2.f32 %v1314_v40  ;;  %v1359_v34 = vmul.f32 %v1698_v24, %v1339_v28 }
 0x263   : > { %v1702_v22 = vpop.eup %1701  ;;  %v1284_v39 = vmax.f32 %v1268_v5, 0.0  ;;  %v1285_v47 = vmax.f32 %v1269_v19, 0.0  ;;  %1711 = vpow2.f32 %v1320_v62  ;;  %v1362_v6 = vmul.f32 %v1700_v50, %v1344_v9 }
 0x264   : > { %v1286_v54 = vmax.f32 %v1270_v3, 0.0  ;;  %v1287_v38 = vmax.f32 %v1271_v13, 0.0  ;;  %1713 = vpow2.f32 %v1322_v32  ;;  %v1363_v21 = vmul.f32 %v1702_v22, %v1344_v9 }
 0x265   : > { %v1300_v4 = vmul.f32 -400.0, %v1284_v39  ;;  %v1301_v8 = vmul.f32 -400.0, %v1285_v47  ;;  %v1393_v59 = vmax.f32 %v1358_v45, %v1362_v6  ;;  %v1356_v42 = vmul.f32 %v2832_v23, %v1339_v28 }
 0x266   : > { %v1302_v12 = vmul.f32 -400.0, %v1286_v54  ;;  %v1303_v29 = vmul.f32 -400.0, %v1287_v38  ;;  %v1403_v14 = vmax.f32 %v1359_v34, %v1363_v21  ;;  %v1357_v15 = vmul.f32 %v2837_v53, %v1339_v28 }
 0x267   : > { %v1328_v2 = vmul.f32 1.442695, %v1300_v4  ;;  %v1330_v51 = vmul.f32 1.442695, %v1301_v8  ;;  %v1704_v17 = vpop.eup %1703  ;;  %vm1374_vm0 = vcmask 1043456   ;;  %vm1413_vm1 = vcmask 1040384  }
 0x268   : > { %v1332_v20 = vmul.f32 1.442695, %v1302_v12  ;;  %v1334_v63 = vmul.f32 1.442695, %v1303_v29  ;;  %v1706_v11 = vpop.eup %1705  ;;  %v1366_v46 = vmul.f32 %v1704_v17, %v1349_v33  ;;  %vm1418_vm2 = vcmask 1041408  }
 0x269   : > { %1715 = vpow2.f32 %v1328_v2  ;;  %v1367_v18 = vmul.f32 %v1706_v11, %v1349_v33  ;;  %v1708_v37 = vpop.eup %1707  ;;  %vm1423_vm3 = vcmask 1042432   ;;  %v3055_v11 = vld [vmem:[#allocation11_spill] sm:$0xff] }
 0x26a   : > { %1717 = vpow2.f32 %v1330_v51  ;;  %v1394_v56 = vmax.f32 %v1393_v59, %v1366_v46  ;;  %v1360_v36 = vmul.f32 %v1708_v37, %v1344_v9  ;;  %v3056_v59 = vld [vmem:[#allocation6_spill] sm:$0xff]  ;;  %v3058_v37 = vld [vmem:[#allocation7_spill] sm:$0xff] }
 0x26b   : > { %1719 = vpow2.f32 %v1332_v20  ;;  %v1404_v43 = vmax.f32 %v1403_v14, %v1367_v18  ;;  %v3054_v20 = vld [vmem:[#allocation10_spill] sm:$0xff]  ;;  %v3057_v14 = vld [vmem:[#allocation12_spill] sm:$0xff] }
 0x26c   : > { %1721 = vpow2.f32 %v1334_v63  ;;  %v1710_v52 = vpop.eup %1709  ;;  %v1372_v7 = vmax.f32 %v1356_v42, %v1360_v36 }
 0x26d   : > { %v1712_v40 = vpop.eup %1711  ;;  %v1361_v48 = vmul.f32 %v1710_v52, %v1344_v9  ;;  %v3059_v52 = vld [vmem:[#allocation14_spill] sm:$0xff] }
 0x26e   : > { %v1714_v58 = vpop.eup %1713  ;;  %v1364_v55 = vmul.f32 %v1712_v40, %v1349_v33 }
 0x26f   : > { %v1365_v25 = vmul.f32 %v1714_v58, %v1349_v33  ;;  %v1383_v57 = vmax.f32 %v1357_v15, %v1361_v48  ;;  %v3060_v58 = vld [vmem:[#allocation13_spill] sm:$0xff]  ;;  %v3061_v48 = vld [vmem:[#allocation8_spill] sm:$0xff] }
 0x270   : > { %v1373_v27 = vmax.f32 %v1372_v7, %v1364_v55  ;;  %v3062_v55 = vld [vmem:[#allocation15_spill] sm:$0xff]  ;;  %v3064_v7 = vld [vmem:[#allocation16_spill] sm:$0xff] }
 0x271   : > { %v1384_v41 = vmax.f32 %v1383_v57, %v1365_v25  ;;  %v3063_v25 = vld [vmem:[#allocation9_spill] sm:$0xff] }
 0x272   : > { %v3065_v57 = vld [vmem:[#allocation17_spill] sm:$0xff] }
 0x273   : > { %v1716_v62 = vpop.eup %1715 }
 0x274   : > { %v1718_v16 = vpop.eup %1717  ;;  %v1368_v35 = vmul.f32 %v1716_v62, %v1354_v61 }
 0x275   : > { %v1720_v10 = vpop.eup %1719  ;;  %v1369_v0 = vmul.f32 %v1718_v16, %v1354_v61 }
 0x276   : > { %v1722_v32 = vpop.eup %1721  ;;  %v1370_v31 = vmul.f32 %v1720_v10, %v1354_v61  ;;  %v1375_v60 = vsel %vm1374_vm0, %v1368_v35, -inf }
 0x277   : > { %v1371_v23 = vmul.f32 %v1722_v32, %v1354_v61  ;;  %v1376_v26 = vmax.f32 %v1373_v27, %v1375_v60  ;;  %v1385_v53 = vsel %vm1374_vm0, %v1369_v0, -inf }
 0x278   : > { %v1386_v30 = vmax.f32 %v1384_v41, %v1385_v53  ;;  %v1395_v49 = vsel %vm1374_vm0, %v1370_v31, -inf }
 0x279   : > { %v1377_v24 = vrot.slane %v1376_v26, 4  ;;  %v1396_v44 = vmax.f32 %v1394_v56, %v1395_v49  ;;  %v1405_v1 = vsel %vm1374_vm0, %v1371_v23, -inf }
 0x27a   : > { %v1387_v5 = vrot.slane %v1386_v30, 4  ;;  %v1406_v19 = vmax.f32 %v1404_v43, %v1405_v1 }
 0x27b   : > { %v1378_v50 = vmax.f32 %v1376_v26, %v1377_v24  ;;  %v1397_v28 = vrot.slane %v1396_v44, 4 }
 0x27c   : > { %v1388_v3 = vmax.f32 %v1386_v30, %v1387_v5  ;;  %v1407_v13 = vrot.slane %v1406_v19, 4 }
 0x27d   : > { %v1379_v22 = vrot.slane %v1378_v50, 2  ;;  %v1398_v39 = vmax.f32 %v1396_v44, %v1397_v28 }
 0x27e   : > { %v1389_v47 = vrot.slane %v1388_v3, 2  ;;  %v1408_v54 = vmax.f32 %v1406_v19, %v1407_v13 }
 0x27f   : > { %v1380_v38 = vmax.f32 %v1378_v50, %v1379_v22  ;;  %v1399_v9 = vrot.slane %v1398_v39, 2 }
 0x280   : > { %v1390_v4 = vmax.f32 %v1388_v3, %v1389_v47  ;;  %v1409_v8 = vrot.slane %v1408_v54, 2 }
 0x281   : > { %v1381_v6 = vrot.slane %v1380_v38, 1  ;;  %v1400_v12 = vmax.f32 %v1398_v39, %v1399_v9 }
 0x282   : > { %v1391_v29 = vrot.slane %v1390_v4, 1  ;;  %v1410_v21 = vmax.f32 %v1408_v54, %v1409_v8 }
 0x283   : > { %v1382_v45 = vmax.f32 %v1380_v38, %v1381_v6  ;;  %v1401_v2 = vrot.slane %v1400_v12, 1 }
 0x284   : > { %v1392_v51 = vmax.f32 %v1390_v4, %v1391_v29  ;;  %v1411_v17 = vrot.slane %v1410_v21, 1 }
 0x285   : > { %v1402_v34 = vmax.f32 %v1400_v12, %v1401_v2  ;;  %v1414_v63 = vsel %vm1413_vm1, %v1382_v45, %v3054_v20 }
 0x286   : > { %v1412_v33 = vmax.f32 %v1410_v21, %v1411_v17  ;;  %v1415_v46 = vsel %vm1413_vm1, %v1392_v51, %v3055_v11  ;;  %v1419_v18 = vsel %vm1418_vm2, %v1414_v63, %v3056_v59 }
 0x287   : > { %v1416_v56 = vsel %vm1413_vm1, %v1402_v34, %v3057_v14  ;;  %v1420_v43 = vsel %vm1418_vm2, %v1415_v46, %v3058_v37  ;;  %v1424_v40 = vsel %vm1423_vm3, %v1419_v18, %v3059_v52 }
 0x288   : > { %v1417_v36 = vsel %vm1413_vm1, %v1412_v33, %v3060_v58  ;;  %v1421_v42 = vsel %vm1418_vm2, %v1416_v56, %v3061_v48  ;;  %v1425_v15 = vsel %vm1423_vm3, %v1420_v43, %v3062_v55 }
 0x289   : > { %v1422_v62 = vsel %vm1418_vm2, %v1417_v36, %v3063_v25  ;;  %v1426_v61 = vsel %vm1423_vm3, %v1421_v42, %v3064_v7  ;;  %v1432_v16 = vcombine.low %v1424_v40, %v1425_v15 }
 0x28a   : > { %v1427_v35 = vsel %vm1423_vm3, %v1422_v62, %v3065_v57 }
 0x28b   : > { %v1433_v10 = vcombine.low %v1426_v61, %v1427_v35  ;;  %1436 = vst [vmem:[%s217_s19] sm:$0xff] %v1432_v16 }
 0x28d   : > { %1437 = vst [vmem:[%s217_s19 + $0x8] sm:$0xff] %v1433_v10 }
 0x28e   : > { %1736 = shalt.err (!%p1733_p6)
}
 0x28f   : > { %s1737_s10 = scalar_lea.hbm %s2904_s30, 256  ;;  %s1741_s14 = scalar_lea.hbm %s2963_s4, 2048 }
 0x290   : > { %p1738_p7 = scmp.ne.s32.totalorder %s2904_s30, %s1737_s10  ;;  %p1742_p11 = scmp.lt.u32.totalorder %s2904_s30, %s2963_s4 }
 0x291   : > { %p1743_p12 = scmp.lt.u32.totalorder %s1741_s14, %s1737_s10  ;;  %p1745_p0 = scmp.lt.u32.totalorder %s1737_s10, %s2904_s30 }
 0x292   : > { %p1739_p9 = pnand %p1738_p7, %p1906_p3 }
 0x293   : > { %p1744_p13 = por %p1743_p12, %p1742_p11 }
 0x294   : > { %p1740_p10 = pneg %p1739_p9 }
 0x295   : > { %p1746_p1 = por %p1745_p0, %p1744_p13 }
 0x297   : > { %p1747_p2 = pnand %p1746_p1, %p1740_p10 }
 0x299   : > { %1750 = shalt.err (!%p1747_p2)
}
 0x29a   : > { %1569 = dma.vmem_to_hbm [thread:$0]  (%p1906_p3), %s2906_s23, 256, %s2904_s30, %s1439_s5  }
 0x29b PF: > { %p1575_p4 = scmp.ge.s32.totalorder %s1817_s22, 2  ;;  %s1467_s24 = sand.u32 1, %s1789_s15  }
 0x29c   : > { %s1468_s27 = scalar_lea.sflag [#allocation3], %s1467_s24 }
 0x29d   : > { %p1572_p5 = pnand %p1575_p4, %p1915_p8 }
 0x29f   : > { %1784 = dma.done.wait (!%p1572_p5), %s1468_s27, 256  }
 0x2a0   : > { %1786 = vsyncadd (!%p1572_p5), %s1468_s27, 4294967040  ;;  %s17_s22 = sadd.s32 1, %s1817_s22   ;;  %s3066_s15 = smov %s1793_s16 }
 0x2a1   : > { %p14_p6 = scmp.ge.s32.totalorder %s17_s22, 10   ;;  %s3067_s16 = smov %s1797_s17 }
 0x2a2   : > { %s3068_s17 = smov %s1924_s7  ;;  %s3069_s18 = smov %s1809_s20 }
 0x2a3   : > { %s3070_s19 = smov %s1813_s21  ;;  %s3071_s20 = smov %s3074_s25 }
 0x2a4   : > { %s3072_s21 = smov %s3078_s26  ;;  %16 = sbr.rel (!%p14_p6) target bundleno = 5 (0x5), region = 74 }
 0x2ab   :  { %1473 = vsyncpa [#allocation3], 1 }
 0x2ac   :  { %1475 = vsyncpa [#allocation3 + $0x1], 1 }

// kernel: net_forward.4
= control target key start
LH: loop header
LB: loop body
LE: loop exit
PB: predicated region body
PF: predicated region fallthrough
CT: control target
= control target key end

     0   :  { %18 = vsyncpa [#allocation3], 0  ;;  %s4273_s25 = smov [#allocation2]   ;;  %s5063_s0 = inlined_call_operand.vmem [shape: f32[2,256,3], index: 0, kind: input, shape index: {}]   ;;  %s5064_s1 = inlined_call_operand.vmem [shape: bf16[3,1024], index: 1, kind: input, shape index: {}]   ;;  %s5065_s2 = inlined_call_operand.vmem [shape: f32[1,1024], index: 2, kind: input, shape index: {}]   ;;  %s5066_s3 = inlined_call_operand.hbm [shape: bf16[1024,512], index: 3, kind: input, shape index: {}]   ;;  %s5067_s4 = inlined_call_operand.vmem [shape: f32[1,512], index: 4, kind: input, shape index: {}]   ;;  %s5068_s5 = inlined_call_operand.vmem [shape: f32[1,512], index: 5, kind: input, shape index: {}]   ;;  %s5069_s6 = inlined_call_operand.vmem [shape: f32[1,512], index: 6, kind: input, shape index: {}]   ;;  %s5070_s7 = inlined_call_operand.vmem [shape: bf16[512,256], index: 7, kind: input, shape index: {}]   ;;  %s5071_s8 = inlined_call_operand.vmem [shape: f32[1,256], index: 8, kind: input, shape index: {}]   ;;  %s5072_s9 = inlined_call_operand.vmem [shape: f32[1,256], index: 9, kind: input, shape index: {}]   ;;  %s5073_s10 = inlined_call_operand.vmem [shape: f32[1,256], index: 10, kind: input, shape index: {}]   ;;  %s5074_s11 = inlined_call_operand.vmem [shape: bf16[256,28], index: 11, kind: input, shape index: {}]   ;;  %s5075_s12 = inlined_call_operand.vmem [shape: f32[1,28], index: 12, kind: input, shape index: {}]   ;;  %s5076_s13 = inlined_call_operand.vmem [shape: f32[2,28], index: 13, kind: output, shape index: {}]  }
   0x1   :  { %s30_s26 = sshll.u32 %s4273_s25, 4  ;;  %s4249_s29 = scalar_lea.hbm %s5066_s3, 32768  ;;  %s31_s26 = int_to_ptr.vmem [resolvable:$true] %s30_s26 }
   0x2   :  { %p4250_p0 = scmp.ne.s32.totalorder %s5066_s3, %s4249_s29  ;;  %p4253_p1 = scmp.lt.u32.totalorder %s4249_s29, %s5066_s3 }
   0x4   :  { %p4255_p2 = pnand %p4253_p1, %p4250_p0 }
   0x6   :  { %4258 = shalt.err (!%p4255_p2)
}
   0x7   :  { %s4259_s17 = scalar_lea.vmem %s31_s26, 32768  ;;  %p4264_p4 = scmp.lt.s32.totalorder %s31_s26, %s31_s26 }
   0x8   :  { %p4260_p3 = scmp.ne.s32.totalorder %s31_s26, %s4259_s17  ;;  %p4265_p5 = scmp.lt.s32.totalorder %s4259_s17, %s4259_s17 }
   0xa   :  { %p4266_p6 = por %p4265_p5, %p4264_p4 }
   0xc   :  { %p4267_p7 = pnand %p4266_p6, %p4260_p3 }
   0xe   :  { %4270 = shalt.err (!%p4267_p7)
}
   0xf   :  { %s4274_s18 = smov 256   ;;  %s4275_s19 = smov 16  }
  0x10   :  { %36 = dma.hbm_to_vmem [thread:$0]  %s5066_s3, 32768, %s31_s26, [#allocation3], %s4274_s18, %s4274_s18, %s4275_s19  }
  0x11   :  { %4271 = dma.done.wait [#allocation3], 32768  }
  0x12   :  { %4272 = vsyncadd [#allocation3], 4294934528  ;;  %v268_v0 = vlaneseq  ;;  %v4276_v1 = vmov 1983009808   ;;  %vm354_vm0 = vcmask 1040384   ;;  %v4277_v4 = vmov 0  }
  0x13   :  { %v319_v2 = vunpack.c.l.s4 %v4276_v1  ;;  %414 = vmatprep.mubr.bf16.mxu0 %v4277_v4  ;;  %vm355_vm1 = vcmask 1041408   ;;  %v4278_v6 = vmov 65535   ;;  %vm123_vm2 = vcmask 23552   ;;  %v264_v9 = vld [vmem:[%s5064_s1] sm:$0xff]  ;;  %v60_v12 = vld [vmem:[%s5063_s0 + $0x8] sm:$0xff]  ;;  %v61_v15 = vld [vmem:[%s5063_s0 + $0x10] sm:$0xff] }
  0x14   :  { %v4361_v3 = vshrl.u32 %v268_v0, 7  ;;  %v356_v7 = vsel %vm354_vm0, 4294967295, %v4278_v6  ;;  %v59_v11 = vld [vmem:[%s5063_s0] sm:$0xff]  ;;  %v317_v13 = vcombine.high %v264_v9, %v264_v9  ;;  %v62_v16 = vld [vmem:[%s5063_s0 + $0x18] sm:$0xff]  ;;  %v125_v19 = vsel %vm123_vm2, %v60_v12, -inf  ;;  %v64_v20 = vld [vmem:[%s5063_s0 + $0x28] sm:$0xff] }
  0x15   :  { %v320_v5 = vunpack.c.0.s8 %v319_v2  ;;  %v4371_v10 = vsel %vm355_vm1, %v356_v7, 0  ;;  %v63_v17 = vld [vmem:[%s5063_s0 + $0x20] sm:$0xff]  ;;  %v124_v18 = vsel %vm123_vm2, %v59_v11, -inf  ;;  %v65_v21 = vld [vmem:[%s5063_s0 + $0x30] sm:$0xff]  ;;  %v66_v22 = vld [vmem:[%s5063_s0 + $0x38] sm:$0xff]  ;;  %v126_v23 = vsel %vm123_vm2, %v61_v15, -inf }
  0x16   :  { %v128_v24 = vsel %vm123_vm2, %v62_v16, -inf  ;;  %v130_v25 = vsel %vm123_vm2, %v63_v17, -inf  ;;  %v67_v28 = vld [vmem:[%s5063_s0 + $0x40] sm:$0xff]  ;;  %v68_v29 = vld [vmem:[%s5063_s0 + $0x48] sm:$0xff]  ;;  %v127_v30 = vmax.f32 %v124_v18, %v126_v23  ;;  %v132_v32 = vsel %vm123_vm2, %v64_v20, -inf  ;;  %v69_v37 = vld [vmem:[%s5063_s0 + $0x50] sm:$0xff] }
  0x17   :  { %v4365_v8 = vsub.s32 %v320_v5, %v4361_v3  ;;  %v129_v31 = vmax.f32 %v125_v19, %v128_v24  ;;  %v134_v33 = vsel %vm123_vm2, %v65_v21, -inf  ;;  %v136_v34 = vsel %vm123_vm2, %v66_v22, -inf  ;;  %v70_v38 = vld [vmem:[%s5063_s0 + $0x58] sm:$0xff]  ;;  %v71_v44 = vld [vmem:[%s5063_s0 + $0x60] sm:$0xff]  ;;  %v72_v45 = vld [vmem:[%s5063_s0 + $0x68] sm:$0xff] }
  0x18   :  { %v131_v39 = vmax.f32 %v127_v30, %v130_v25  ;;  %v138_v41 = vsel %vm123_vm2, %v67_v28, -inf  ;;  %v140_v42 = vsel %vm123_vm2, %v68_v29, -inf  ;;  %v73_v48 = vld [vmem:[%s5063_s0 + $0x70] sm:$0xff]  ;;  %v74_v49 = vld [vmem:[%s5063_s0 + $0x78] sm:$0xff]  ;;  %v142_v50 = vsel %vm123_vm2, %v69_v37, -inf  ;;  %v75_v53 = vld [vmem:[%s5063_s0 + $0x80] sm:$0xff] }
  0x19   :  { %v324_v14 = vrot.slane %v264_v9, %v4365_v8  ;;  %v4414_v35 = vrot.slane %v317_v13, %v4365_v8  ;;  %v133_v40 = vmax.f32 %v129_v31, %v132_v32  ;;  %v144_v51 = vsel %vm123_vm2, %v70_v38, -inf  ;;  %v76_v54 = vld [vmem:[%s5063_s0 + $0x88] sm:$0xff]  ;;  %v77_v55 = vld [vmem:[%s5063_s0 + $0x90] sm:$0xff]  ;;  %v78_v58 = vld [vmem:[%s5063_s0 + $0x98] sm:$0xff] }
  0x1a   :  { %v135_v46 = vmax.f32 %v131_v39, %v134_v33  ;;  %v79_v59 = vld [vmem:[%s5063_s0 + $0xa0] sm:$0xff]  ;;  %v80_v60 = vld [vmem:[%s5063_s0 + $0xa8] sm:$0xff]  ;;  %v146_v61 = vsel %vm123_vm2, %v71_v44, -inf  ;;  %v148_v62 = vsel %vm123_vm2, %v72_v45, -inf  ;;  %v81_v63 = vld [vmem:[%s5063_s0 + $0xb0] sm:$0xff]  ;;  %v150_v9 = vsel %vm123_vm2, %v73_v48, -inf }
  0x1b   :  { %v332_v26 = vcombine.high %v324_v14, %v324_v14  ;;  %v359_v27 = vand.u32 %v4371_v10, %v324_v14  ;;  %v333_v43 = vcombine.high %v4414_v35, %v4414_v35  ;;  %v137_v47 = vmax.f32 %v133_v40, %v136_v34  ;;  %v82_v0 = vld [vmem:[%s5063_s0 + $0xb8] sm:$0xff]  ;;  %v83_v1 = vld [vmem:[%s5063_s0 + $0xc0] sm:$0xff]  ;;  %v92_v7 = vld [vmem:[%s5063_s0 + $0x108] sm:$0xff] }
  0x1c   :  { %v139_v56 = vmax.f32 %v135_v46, %v138_v41  ;;  %v91_v6 = vld [vmem:[%s5063_s0 + $0x100] sm:$0xff]  ;;  %v152_v11 = vsel %vm123_vm2, %v74_v49, -inf  ;;  %v154_v12 = vsel %vm123_vm2, %v75_v53, -inf  ;;  %v156_v13 = vsel %vm123_vm2, %v76_v54, -inf  ;;  %v93_v14 = vld [vmem:[%s5063_s0 + $0x110] sm:$0xff]  ;;  %v94_v15 = vld [vmem:[%s5063_s0 + $0x118] sm:$0xff] }
  0x1d   :  { %v362_v36 = vand.u32 %v4371_v10, %v332_v26  ;;  %v368_v52 = vand.u32 %v4371_v10, %v333_v43  ;;  %v141_v57 = vmax.f32 %v137_v47, %v140_v42  ;;  %v95_v16 = vld [vmem:[%s5063_s0 + $0x120] sm:$0xff]  ;;  %v158_v19 = vsel %vm123_vm2, %v77_v55, -inf  ;;  %v84_v21 = vld [vmem:[%s5063_s0 + $0xc8] sm:$0xff]  ;;  %v98_v28 = vld [vmem:[%s5063_s0 + $0x138] sm:$0xff] }
  0x1e   :  { %v143_v2 = vmax.f32 %v139_v56, %v142_v50  ;;  %v160_v20 = vsel %vm123_vm2, %v78_v58, -inf  ;;  %v162_v22 = vsel %vm123_vm2, %v79_v59, -inf  ;;  %v164_v23 = vsel %vm123_vm2, %v80_v60, -inf  ;;  %v96_v26 = vld [vmem:[%s5063_s0 + $0x128] sm:$0xff]  ;;  %v85_v33 = vld [vmem:[%s5063_s0 + $0xd0] sm:$0xff]  ;;  %v86_v39 = vld [vmem:[%s5063_s0 + $0xd8] sm:$0xff] }
  0x1f   :  { %382 = vmatprep.subr.bf16.mxu0 %v362_v36  ;;  %v145_v5 = vmax.f32 %v141_v57, %v144_v51  ;;  %v166_v24 = vsel %vm123_vm2, %v81_v63, -inf  ;;  %v168_v25 = vsel %vm123_vm2, %v82_v0, -inf  ;;  %v193_v31 = vsel %vm123_vm2, %v91_v6, -inf  ;;  %v99_v40 = vld [vmem:[%s5063_s0 + $0x140] sm:$0xff]  ;;  %v100_v41 = vld [vmem:[%s5063_s0 + $0x148] sm:$0xff]  ;;  %v101_v51 = vld [vmem:[%s5063_s0 + $0x150] sm:$0xff] }
  0x20   :  { %383 = vmatpush1.bf16.msra.mxu0 %v359_v27  ;;  %v147_v17 = vmax.f32 %v143_v2, %v146_v61  ;;  %v97_v27 = vld [vmem:[%s5063_s0 + $0x130] sm:$0xff]  ;;  %v194_v32 = vsel %vm123_vm2, %v92_v7, -inf  ;;  %v170_v34 = vsel %vm123_vm2, %v83_v1, -inf  ;;  %v195_v36 = vsel %vm123_vm2, %v93_v14, -inf  ;;  %v87_v50 = vld [vmem:[%s5063_s0 + $0xe0] sm:$0xff]  ;;  %v88_v57 = vld [vmem:[%s5063_s0 + $0xe8] sm:$0xff] }
  0x21   :  { %423 = vmatprep.subr.bf16.mxu0 %v368_v52  ;;  %v149_v18 = vmax.f32 %v145_v5, %v148_v62  ;;  %v197_v37 = vsel %vm123_vm2, %v94_v15, -inf  ;;  %v199_v38 = vsel %vm123_vm2, %v95_v16, -inf  ;;  %v196_v44 = vmax.f32 %v193_v31, %v195_v36  ;;  %v102_v52 = vld [vmem:[%s5063_s0 + $0x158] sm:$0xff]  ;;  %v103_v62 = vld [vmem:[%s5063_s0 + $0x160] sm:$0xff]  ;;  %v104_v63 = vld [vmem:[%s5063_s0 + $0x168] sm:$0xff] }
  0x22   :  { %v151_v29 = vmax.f32 %v147_v17, %v150_v9  ;;  %v198_v45 = vmax.f32 %v194_v32, %v197_v37  ;;  %v172_v46 = vsel %vm123_vm2, %v84_v21, -inf  ;;  %v201_v47 = vsel %vm123_vm2, %v96_v26, -inf  ;;  %v105_v0 = vld [vmem:[%s5063_s0 + $0x170] sm:$0xff]  ;;  %v106_v7 = vld [vmem:[%s5063_s0 + $0x178] sm:$0xff]  ;;  %v107_v21 = vld [vmem:[%s5063_s0 + $0x180] sm:$0xff] }
  0x23   :  { %v153_v30 = vmax.f32 %v149_v18, %v152_v11  ;;  %v203_v48 = vsel %vm123_vm2, %v97_v27, -inf  ;;  %v205_v49 = vsel %vm123_vm2, %v98_v28, -inf  ;;  %v200_v55 = vmax.f32 %v196_v44, %v199_v38  ;;  %v90_v14 = vld [vmem:[%s5063_s0 + $0xf8] sm:$0xff]  ;;  %v108_v27 = vld [vmem:[%s5063_s0 + $0x188] sm:$0xff]  ;;  %v109_v31 = vld [vmem:[%s5063_s0 + $0x190] sm:$0xff] }
  0x24   :  { %v155_v42 = vmax.f32 %v151_v29, %v154_v12  ;;  %v202_v56 = vmax.f32 %v198_v45, %v201_v47  ;;  %v174_v58 = vsel %vm123_vm2, %v85_v33, -inf  ;;  %v176_v59 = vsel %vm123_vm2, %v86_v39, -inf  ;;  %v110_v32 = vld [vmem:[%s5063_s0 + $0x198] sm:$0xff]  ;;  %v3742_v37 = vld [vmem:[#allocation2 + $0x20] ss:$16 sps:$4 sm:$0xff]  }
  0x25   :  { %v157_v43 = vmax.f32 %v153_v30, %v156_v13  ;;  %v207_v60 = vsel %vm123_vm2, %v99_v40, -inf  ;;  %v209_v61 = vsel %vm123_vm2, %v100_v41, -inf  ;;  %v204_v5 = vmax.f32 %v200_v55, %v203_v48  ;;  %v89_v13 = vld [vmem:[%s5063_s0 + $0xf0] sm:$0xff] }
  0x26   :  { %v159_v53 = vmax.f32 %v155_v42, %v158_v19  ;;  %v206_v6 = vmax.f32 %v202_v56, %v205_v49  ;;  %v178_v9 = vsel %vm123_vm2, %v87_v50, -inf  ;;  %v211_v11 = vsel %vm123_vm2, %v101_v51, -inf  ;;  %v3737_v19 = vld [vmem:[#allocation2 + $0x4] ss:$16 sps:$4 sm:$0xff]  }
  0x27   :  { %v161_v54 = vmax.f32 %v157_v43, %v160_v20  ;;  %v213_v12 = vsel %vm123_vm2, %v102_v52, -inf  ;;  %v208_v17 = vmax.f32 %v204_v5, %v207_v60  ;;  %v3739_v20 = vld [vmem:[#allocation2] ss:$16 sps:$4 sm:$0xff]   ;;  %v217_v26 = vsel %vm123_vm2, %v104_v63, -inf  ;;  %2122 = vmatprep.subr.bf16.mxu1 %v3737_v19  ;;  %v3740_v30 = vld [vmem:[#allocation2 + $0x24] ss:$16 sps:$4 sm:$0xff]  }
  0x28   :  { %v163_v1 = vmax.f32 %v159_v53, %v162_v22  ;;  %v210_v18 = vmax.f32 %v206_v6, %v209_v61  ;;  %v180_v22 = vsel %vm123_vm2, %v88_v57, -inf  ;;  %v219_v33 = vsel %vm123_vm2, %v105_v0, -inf  ;;  %2123 = vmatpush1.bf16.msra.mxu1 %v3739_v20  ;;  %v3743_v41 = vld [vmem:[#allocation2 + $0x44] ss:$16 sps:$4 sm:$0xff]   ;;  %v112_v43 = vld [vmem:[%s5063_s0 + $0x1a8] sm:$0xff] }
  0x29   :  { %v165_v2 = vmax.f32 %v161_v54, %v164_v23  ;;  %v215_v23 = vsel %vm123_vm2, %v103_v62, -inf  ;;  %v212_v28 = vmax.f32 %v208_v17, %v211_v11  ;;  %v221_v36 = vsel %vm123_vm2, %v106_v7, -inf  ;;  %2124 = vmatprep.subr.bf16.mxu1 %v3740_v30  ;;  %v111_v42 = vld [vmem:[%s5063_s0 + $0x1a0] sm:$0xff]  ;;  %v265_v52 = vld [vmem:[%s5064_s1 + $0x8] sm:$0xff]  ;;  %v113_v53 = vld [vmem:[%s5063_s0 + $0x1b0] sm:$0xff] }
  0x2a   :  { %v167_v15 = vmax.f32 %v163_v1, %v166_v24  ;;  %v214_v29 = vmax.f32 %v210_v18, %v213_v12  ;;  %v182_v44 = vsel %vm123_vm2, %v89_v13, -inf  ;;  %v184_v45 = vsel %vm123_vm2, %v90_v14, -inf  ;;  %v114_v54 = vld [vmem:[%s5063_s0 + $0x1b8] sm:$0xff]  ;;  %v3748_v57 = vld [vmem:[#allocation2 + $0x40] ss:$16 sps:$4 sm:$0xff]   ;;  %v116_v0 = vld [vmem:[%s5063_s0 + $0x1c8] sm:$0xff] }
  0x2b   :  { %v169_v16 = vmax.f32 %v165_v2, %v168_v25  ;;  %v216_v39 = vmax.f32 %v212_v28, %v215_v23  ;;  %v225_v47 = vsel %vm123_vm2, %v108_v27, -inf  ;;  %v227_v55 = vsel %vm123_vm2, %v109_v31, -inf  ;;  %v3749_v62 = vld [vmem:[#allocation2 + $0x64] ss:$16 sps:$4 sm:$0xff]   ;;  %v118_v13 = vld [vmem:[%s5063_s0 + $0x1d8] sm:$0xff] }
  0x2c   :  { %v171_v24 = vmax.f32 %v167_v15, %v170_v34  ;;  %v218_v40 = vmax.f32 %v214_v29, %v217_v26  ;;  %v229_v56 = vsel %vm123_vm2, %v110_v32, -inf  ;;  %2125 = vmatpush1.bf16.msra.mxu1 %v3742_v37  ;;  %v115_v63 = vld [vmem:[%s5063_s0 + $0x1c0] sm:$0xff]  ;;  %v231_v1 = vsel %vm123_vm2, %v111_v42, -inf  ;;  %v117_v7 = vld [vmem:[%s5063_s0 + $0x1d0] sm:$0xff]  ;;  %v122_v29 = vld [vmem:[%s5063_s0 + $0x1f8] sm:$0xff] }
  0x2d   :  { %v173_v25 = vmax.f32 %v169_v16, %v172_v46  ;;  %v223_v46 = vsel %vm123_vm2, %v107_v21, -inf  ;;  %v220_v50 = vmax.f32 %v216_v39, %v219_v33  ;;  %2126 = vmatprep.subr.bf16.mxu1 %v3743_v41  ;;  %v233_v2 = vsel %vm123_vm2, %v112_v43, -inf  ;;  %v3754_v18 = vld [vmem:[#allocation2 + $0x60] ss:$16 sps:$4 sm:$0xff]  }
  0x2e   :  { %v175_v34 = vmax.f32 %v171_v24, %v174_v58  ;;  %v222_v51 = vmax.f32 %v218_v40, %v221_v36  ;;  %v4614_v5 = vrot.slane %v265_v52, %v4365_v8  ;;  %v334_v6 = vcombine.high %v265_v52, %v265_v52  ;;  %v119_v23 = vld [vmem:[%s5063_s0 + $0x1e0] sm:$0xff]  ;;  %v121_v28 = vld [vmem:[%s5063_s0 + $0x1f0] sm:$0xff] }
  0x2f   :  { %v177_v38 = vmax.f32 %v173_v25, %v176_v59  ;;  %v224_v60 = vmax.f32 %v220_v50, %v223_v46  ;;  %v235_v14 = vsel %vm123_vm2, %v113_v53, -inf  ;;  %v237_v15 = vsel %vm123_vm2, %v114_v54, -inf  ;;  %v120_v25 = vld [vmem:[%s5063_s0 + $0x1e8] sm:$0xff]  ;;  %v3761_v40 = vld [vmem:[#allocation2 + $0xa4] ss:$16 sps:$4 sm:$0xff]  }
  0x30   :  { %v179_v48 = vmax.f32 %v175_v34, %v178_v9  ;;  %v226_v61 = vmax.f32 %v222_v51, %v225_v47  ;;  %v371_v16 = vand.u32 %v4371_v10, %v4614_v5  ;;  %v4627_v17 = vrot.slane %v334_v6, %v4365_v8  ;;  %2127 = vmatpush1.bf16.msra.mxu1 %v3748_v57  ;;  %v3760_v34 = vld [vmem:[#allocation2 + $0x80] ss:$16 sps:$4 sm:$0xff]   ;;  %v3767_v51 = vld [vmem:[#allocation2 + $0xc4] ss:$16 sps:$4 sm:$0xff]  }
  0x31   :  { %v181_v49 = vmax.f32 %v177_v38, %v180_v22  ;;  %v228_v11 = vmax.f32 %v224_v60, %v227_v55  ;;  %2128 = vmatprep.subr.bf16.mxu1 %v3749_v62  ;;  %v3755_v22 = vld [vmem:[#allocation2 + $0x84] ss:$16 sps:$4 sm:$0xff]   ;;  %v239_v26 = vsel %vm123_vm2, %v115_v63, -inf  ;;  %v241_v27 = vsel %vm123_vm2, %v116_v0, -inf  ;;  %v3772_v55 = vld [vmem:[#allocation2 + $0xc0] ss:$16 sps:$4 sm:$0xff]  }
  0x32   :  { %v183_v58 = vmax.f32 %v179_v48, %v182_v44  ;;  %v230_v12 = vmax.f32 %v226_v61, %v229_v56  ;;  %v350_v24 = vcombine.high %v4627_v17, %v4627_v17  ;;  %v377_v8 = vand.u32 %v4371_v10, %v4627_v17  ;;  %v3766_v48 = vld [vmem:[#allocation2 + $0xa0] ss:$16 sps:$4 sm:$0xff]   ;;  %v3773_v57 = vld [vmem:[#allocation2 + $0xe4] ss:$16 sps:$4 sm:$0xff]  }
  0x33   :  { %v185_v59 = vmax.f32 %v181_v49, %v184_v45  ;;  %v232_v20 = vmax.f32 %v228_v11, %v231_v1  ;;  %v243_v33 = vsel %vm123_vm2, %v117_v7, -inf  ;;  %v245_v36 = vsel %vm123_vm2, %v118_v13, -inf  ;;  %v3778_v60 = vld [vmem:[#allocation2 + $0xe0] ss:$16 sps:$4 sm:$0xff]   ;;  %v3779_v62 = vld [vmem:[#allocation2 + $0x104] ss:$16 sps:$4 sm:$0xff]  }
  0x34   :  { %v234_v21 = vmax.f32 %v230_v12, %v233_v2  ;;  %v4650_v37 = vand.u32 %v4371_v10, %v350_v24  ;;  %2129 = vmatpush1.bf16.msra.mxu1 %v3754_v18  ;;  %v247_v41 = vsel %vm123_vm2, %v119_v23, -inf  ;;  %v249_v42 = vsel %vm123_vm2, %v120_v25, -inf  ;;  %v3784_v1 = vld [vmem:[#allocation2 + $0x100] ss:$16 sps:$4 sm:$0xff]   ;;  %v3785_v6 = vld [vmem:[#allocation2 + $0x124] ss:$16 sps:$4 sm:$0xff]  }
  0x35   :  { %v186_v9 = vmax.f32 %v183_v58, %v185_v59  ;;  %v236_v31 = vmax.f32 %v232_v20, %v235_v14  ;;  %2130 = vmatprep.subr.bf16.mxu1 %v3755_v22  ;;  %v251_v46 = vsel %vm123_vm2, %v121_v28, -inf  ;;  %v253_v47 = vsel %vm123_vm2, %v122_v29, -inf  ;;  %v3790_v11 = vld [vmem:[#allocation2 + $0x120] ss:$16 sps:$4 sm:$0xff]   ;;  %v3791_v13 = vld [vmem:[#allocation2 + $0x144] ss:$16 sps:$4 sm:$0xff]  }
  0x36   :  { %v238_v32 = vmax.f32 %v234_v21, %v237_v15  ;;  %v3796_v14 = vld [vmem:[#allocation2 + $0x140] ss:$16 sps:$4 sm:$0xff]   ;;  %vm312_vm3 = vcmask 1041409   ;;  %v349_v20 = vcombine.high %v4614_v5, %v4614_v5  ;;  %v3809_v29 = vld [vmem:[#allocation2 + $0x1a4] ss:$16 sps:$4 sm:$0xff]   ;;  %vm3326_vm4 = vcmask 222208  }
  0x37   :  { %v187_v19 = vrot.slane %v186_v9, 4  ;;  %v240_v38 = vmax.f32 %v236_v31, %v239_v26  ;;  %v3802_v22 = vld [vmem:[#allocation2 + $0x160] ss:$16 sps:$4 sm:$0xff]   ;;  %v365_v26 = vand.u32 %v4371_v10, %v4414_v35  ;;  %v3747_v35 = vld [vmem:[#allocation2 + $0x204] ss:$16 sps:$4 sm:$0xff]  }
  0x38   :  { %v242_v39 = vmax.f32 %v238_v32, %v241_v27  ;;  %2131 = vmatpush1.bf16.msra.mxu1 %v3760_v34  ;;  %v3803_v27 = vld [vmem:[#allocation2 + $0x184] ss:$16 sps:$4 sm:$0xff]   ;;  %v374_v25 = vand.u32 %v4371_v10, %v349_v20  ;;  %v3808_v28 = vld [vmem:[#allocation2 + $0x180] ss:$16 sps:$4 sm:$0xff]  }
  0x39   :  { %v188_v30 = vmax.f32 %v186_v9, %v187_v19  ;;  %v244_v44 = vmax.f32 %v240_v38, %v243_v33  ;;  %2132 = vmatprep.subr.bf16.mxu1 %v3761_v40  ;;  %v3797_v19 = vld [vmem:[#allocation2 + $0x164] ss:$16 sps:$4 sm:$0xff]   ;;  %v3745_v31 = vld [vmem:[#allocation2 + $0x200] ss:$16 sps:$4 sm:$0xff]  }
  0x3a   :  { %v246_v45 = vmax.f32 %v242_v39, %v245_v36  ;;  %v3753_v32 = vld [vmem:[#allocation2 + $0x224] ss:$16 sps:$4 sm:$0xff]   ;;  %v3751_v33 = vld [vmem:[#allocation2 + $0x220] ss:$16 sps:$4 sm:$0xff]  }
  0x3b   :  { %v189_v43 = vrot.slane %v188_v30, 2  ;;  %v248_v49 = vmax.f32 %v244_v44, %v247_v41  ;;  %v3759_v5 = vld [vmem:[#allocation2 + $0x244] ss:$16 sps:$4 sm:$0xff]   ;;  %v3769_v10 = vld [vmem:[#allocation2 + $0x280] ss:$16 sps:$4 sm:$0xff]  }
  0x3c   :  { %v250_v50 = vmax.f32 %v246_v45, %v249_v42  ;;  %2133 = vmatpush1.bf16.msra.mxu1 %v3766_v48  ;;  %v3765_v36 = vld [vmem:[#allocation2 + $0x264] ss:$16 sps:$4 sm:$0xff]   ;;  %v3781_v38 = vld [vmem:[#allocation2 + $0x2c0] ss:$16 sps:$4 sm:$0xff]  }
  0x3d   :  { %v190_v52 = vmax.f32 %v188_v30, %v189_v43  ;;  %v252_v53 = vmax.f32 %v248_v49, %v251_v46  ;;  %2134 = vmatprep.subr.bf16.mxu1 %v3767_v51  ;;  %v3814_v30 = vld [vmem:[#allocation2 + $0x1a0] ss:$16 sps:$4 sm:$0xff]   ;;  %v3771_v34 = vld [vmem:[#allocation2 + $0x284] ss:$16 sps:$4 sm:$0xff]  }
  0x3e   :  { %v254_v54 = vmax.f32 %v250_v50, %v253_v47  ;;  %v3777_v17 = vld [vmem:[#allocation2 + $0x2a4] ss:$16 sps:$4 sm:$0xff]   ;;  %v3787_v40 = vld [vmem:[#allocation2 + $0x2e0] ss:$16 sps:$4 sm:$0xff]  }
  0x3f   :  { %v191_v58 = vrot.slane %v190_v52, 1  ;;  %v3789_v39 = vld [vmem:[#allocation2 + $0x2e4] ss:$16 sps:$4 sm:$0xff]   ;;  %v3793_v42 = vld [vmem:[#allocation2 + $0x300] ss:$16 sps:$4 sm:$0xff]  }
  0x40   :  { %v255_v56 = vmax.f32 %v252_v53, %v254_v54  ;;  %2135 = vmatpush1.bf16.msra.mxu1 %v3772_v55  ;;  %v3795_v41 = vld [vmem:[#allocation2 + $0x304] ss:$16 sps:$4 sm:$0xff]   ;;  %v3799_v44 = vld [vmem:[#allocation2 + $0x320] ss:$16 sps:$4 sm:$0xff]  }
  0x41   :  { %2136 = vmatprep.subr.bf16.mxu1 %v3773_v57  ;;  %v192_v63 = vmax.f32 %v190_v52, %v191_v58  ;;  %v3801_v43 = vld [vmem:[#allocation2 + $0x324] ss:$16 sps:$4 sm:$0xff]   ;;  %v3805_v46 = vld [vmem:[#allocation2 + $0x340] ss:$16 sps:$4 sm:$0xff]   ;;  %v3832_v58 = vld [vmem:[#allocation2 + $0xc] ss:$16 sps:$4 sm:$0xff]  }
  0x42   :  { %v256_v59 = vrot.slane %v255_v56, 4  ;;  %v3807_v45 = vld [vmem:[#allocation2 + $0x344] ss:$16 sps:$4 sm:$0xff]   ;;  %v3811_v48 = vld [vmem:[#allocation2 + $0x360] ss:$16 sps:$4 sm:$0xff]  }
  0x43   :  { %v262_v9 = vpack.c.bf16 %v192_v63, %v192_v63  ;;  %v3813_v47 = vld [vmem:[#allocation2 + $0x364] ss:$16 sps:$4 sm:$0xff]   ;;  %v3817_v51 = vld [vmem:[#allocation2 + $0x380] ss:$16 sps:$4 sm:$0xff]   ;;  %v4676_v63 = vsub.s32 0, %v4361_v3 }
  0x44   :  { %v257_v61 = vmax.f32 %v255_v56, %v256_v59  ;;  %2137 = vmatpush1.bf16.msra.mxu1 %v3778_v60  ;;  %v3815_v49 = vld [vmem:[#allocation2 + $0x1c4] ss:$16 sps:$4 sm:$0xff]   ;;  %v3820_v52 = vld [vmem:[#allocation2 + $0x1c0] ss:$16 sps:$4 sm:$0xff]  }
  0x45   :  { %2138 = vmatprep.subr.bf16.mxu1 %v3779_v62  ;;  %v310_v18 = vunpack.c.l.b16 %v262_v9  ;;  %v3819_v50 = vld [vmem:[#allocation2 + $0x384] ss:$16 sps:$4 sm:$0xff]   ;;  %v3823_v55 = vld [vmem:[#allocation2 + $0x3a0] ss:$16 sps:$4 sm:$0xff]  }
  0x46   :  { %v258_v0 = vrot.slane %v257_v61, 2  ;;  %v3821_v53 = vld [vmem:[#allocation2 + $0x1e4] ss:$16 sps:$4 sm:$0xff]   ;;  %v3826_v56 = vld [vmem:[#allocation2 + $0x1e0] ss:$16 sps:$4 sm:$0xff]  }
  0x47   :  { %v3825_v54 = vld [vmem:[#allocation2 + $0x3a4] ss:$16 sps:$4 sm:$0xff]   ;;  %v3827_v59 = vld [vmem:[#allocation2 + $0x3c0] ss:$16 sps:$4 sm:$0xff]  }
  0x48   :  { %v259_v2 = vmax.f32 %v257_v61, %v258_v0  ;;  %2139 = vmatpush1.bf16.msra.mxu1 %v3784_v1  ;;  %v3829_v57 = vld [vmem:[#allocation2 + $0x3c4] ss:$16 sps:$4 sm:$0xff]   ;;  %v3833_v61 = vld [vmem:[#allocation2 + $0x3e0] ss:$16 sps:$4 sm:$0xff]   ;;  %v4684_v1 = vsub.s32 1, %v4361_v3 }
  0x49   :  { %2140 = vmatprep.subr.bf16.mxu1 %v3785_v6  ;;  %v3835_v60 = vld [vmem:[#allocation2 + $0x3e4] ss:$16 sps:$4 sm:$0xff]  }
  0x4a   :  { %v260_v7 = vrot.slane %v259_v2, 1  ;;  %v3841_v62 = vld [vmem:[#allocation2 + $0x404] ss:$16 sps:$4 sm:$0xff]  }
  0x4b   :  { %v4681_v0 = vld [vmem:[%s5065_s2] sm:$0xff] }
  0x4c   :  { %v261_v12 = vmax.f32 %v259_v2, %v260_v7  ;;  %2141 = vmatpush1.bf16.msra.mxu1 %v3790_v11  ;;  %v271_v2 = vrot.slane %v4681_v0, %v4676_v63  ;;  %v275_v6 = vrot.slane %v4681_v0, %v4684_v1 }
  0x4d   :  { %2142 = vmatprep.subr.bf16.mxu1 %v3791_v13 }
  0x4e   :  { %v263_v15 = vpack.c.bf16 %v261_v12, %v261_v12  ;;  %v4691_v12 = vsub.s32 2, %v4361_v3 }
  0x50   :  { %v311_v21 = vunpack.c.l.b16 %v263_v15  ;;  %2143 = vmatpush1.bf16.msra.mxu1 %v3796_v14  ;;  %v4694_v15 = vsub.s32 3, %v4361_v3 }
  0x51   :  { %2144 = vmatprep.subr.bf16.mxu1 %v3797_v19 }
  0x52   :  { %v313_v23 = vsel %vm312_vm3, %v311_v21, %v310_v18  ;;  %v279_v21 = vrot.slane %v4681_v0, %v4691_v12 }
  0x53   :  { %v314_v24 = vpack.c.b16 %v313_v23, %v313_v23  ;;  %v3830_v23 = vld [vmem:[#allocation2 + $0x8] ss:$16 sps:$4 sm:$0xff]  }
  0x54   :  { %2145 = vmatpush1.bf16.msra.mxu1 %v3802_v22 }
  0x55   :  { %3333 = vmatmul.mubr.msk.bf16.vlgmr.msra.gmra.mrb[0].mxu0 %vm123_vm2, %v314_v24  ;;  %2146 = vmatprep.subr.bf16.mxu1 %v3803_v27 }
  0x56   :  { %424 = vmatpush1.bf16.msra.mxu0 %v365_v26  ;;  %455 = vmatprep.mubr.bf16.mxu0 %v4277_v4  ;;  %v283_v26 = vrot.slane %v4681_v0, %v4694_v15 }
  0x57   :  { %464 = vmatprep.subr.bf16.mxu0 %v374_v25 }
  0x58   :  { %2147 = vmatpush1.bf16.msra.mxu1 %v3808_v28 }
  0x59   :  { %2148 = vmatprep.subr.bf16.mxu1 %v3809_v29 }
  0x5c   :  { %2149 = vmatpush1.bf16.msra.mxu1 %v3814_v30 }
  0x5d   :  { %3334 = vmatmul.mubr.msk.bf16.vlgmr.msra.gmra.mrb[4].mxu0 %vm123_vm2, %v314_v24  ;;  %2150 = vmatprep.subr.bf16.mxu1 %v3815_v49  ;;  %v3851_v49 = vld [vmem:[#allocation2 + $0x440] ss:$16 sps:$4 sm:$0xff]  }
  0x5e   :  { %465 = vmatpush1.bf16.msra.mxu0 %v371_v16  ;;  %496 = vmatprep.mubr.bf16.mxu0 %v4277_v4  ;;  %v3757_v16 = vld [vmem:[#allocation2 + $0x240] ss:$16 sps:$4 sm:$0xff]  }
  0x5f   :  { %505 = vmatprep.subr.bf16.mxu0 %v4650_v37  ;;  %v3763_v37 = vld [vmem:[#allocation2 + $0x260] ss:$16 sps:$4 sm:$0xff]  }
  0x60   :  { %2151 = vmatpush1.bf16.msra.mxu1 %v3820_v52  ;;  %v3859_v52 = vld [vmem:[#allocation2 + $0x464] ss:$16 sps:$4 sm:$0xff]  }
  0x61   :  { %2152 = vmatprep.subr.bf16.mxu1 %v3821_v53  ;;  %v3862_v53 = vld [vmem:[#allocation2 + $0xac] ss:$16 sps:$4 sm:$0xff]  }
  0x64   :  { %2153 = vmatpush1.bf16.msra.mxu1 %v3826_v56  ;;  %v3857_v56 = vld [vmem:[#allocation2 + $0x460] ss:$16 sps:$4 sm:$0xff]  }
  0x65   :  { %3335 = vmatmul.mubr.msk.bf16.vlgmr.msra.gmra.mrb[8].mxu0 %vm123_vm2, %v314_v24  ;;  %2286 = vmatprep.subr.bf16.mxu1 %v3832_v58 }
  0x66   :  { %506 = vmatpush1.bf16.msra.mxu0 %v377_v8  ;;  %537 = vmatprep.mubr.bf16.mxu0 %v4277_v4  ;;  %v3775_v4 = vld [vmem:[#allocation2 + $0x2a0] ss:$16 sps:$4 sm:$0xff]   ;;  %v3783_v8 = vld [vmem:[#allocation2 + $0x2c4] ss:$16 sps:$4 sm:$0xff]  }
  0x67   :  { %2163 = vmatprep.subr.bf16.mxu0 %v3747_v35  ;;  %v3836_v35 = vld [vmem:[#allocation2 + $0x28] ss:$16 sps:$4 sm:$0xff]  }
  0x6d   :  { %3336 = vmatmul.mubr.msk.bf16.vlgmr.msra.gmra.mrb[12].mxu0 %vm123_vm2, %v314_v24  ;;  %v3838_v24 = vld [vmem:[#allocation2 + $0x2c] ss:$16 sps:$4 sm:$0xff]  }
  0x6e   :  { %2164 = vmatpush1.bf16.msra.mxu0 %v3745_v31 }
  0x6f   :  { %2165 = vmatprep.subr.bf16.mxu0 %v3753_v32  ;;  %v290_v32 = vsub.s32 5, %v4361_v3 }
  0x72   :  { %2166 = vmatpush1.bf16.msra.mxu0 %v3751_v33 }
  0x73   :  { %2167 = vmatprep.subr.bf16.mxu0 %v3759_v5  ;;  %v3844_v5 = vld [vmem:[#allocation2 + $0x4c] ss:$16 sps:$4 sm:$0xff]  }
  0x76   :  { %2168 = vmatpush1.bf16.msra.mxu0 %v3757_v16 }
  0x77   :  { %2169 = vmatprep.subr.bf16.mxu0 %v3765_v36 }
  0x7a   :  { %2170 = vmatpush1.bf16.msra.mxu0 %v3763_v37 }
  0x7b   :  { %2171 = vmatprep.subr.bf16.mxu0 %v3771_v34 }
  0x7e   :  { %2172 = vmatpush1.bf16.msra.mxu0 %v3769_v10  ;;  %v3839_v10 = vld [vmem:[#allocation2 + $0x400] ss:$16 sps:$4 sm:$0xff]  }
  0x7f   :  { %2173 = vmatprep.subr.bf16.mxu0 %v3777_v17  ;;  %v3842_v17 = vld [vmem:[#allocation2 + $0x48] ss:$16 sps:$4 sm:$0xff]  }
  0x82   :  { %2174 = vmatpush1.bf16.msra.mxu0 %v3775_v4  ;;  %v291_v4 = vrot.slane %v4681_v0, %v290_v32  ;;  %v3901_v32 = vld [vmem:[#allocation2 + $0x544] ss:$16 sps:$4 sm:$0xff]  }
  0x83   :  { %2175 = vmatprep.subr.bf16.mxu0 %v3783_v8  ;;  %v3847_v8 = vld [vmem:[#allocation2 + $0x424] ss:$16 sps:$4 sm:$0xff]  }
  0x86   :  { %2176 = vmatpush1.bf16.msra.mxu0 %v3781_v38  ;;  %v3850_v38 = vld [vmem:[#allocation2 + $0x6c] ss:$16 sps:$4 sm:$0xff]  }
  0x87   :  { %2177 = vmatprep.subr.bf16.mxu0 %v3789_v39 }
  0x8a   :  { %2178 = vmatpush1.bf16.msra.mxu0 %v3787_v40 }
  0x8b   :  { %2179 = vmatprep.subr.bf16.mxu0 %v3795_v41  ;;  %v3845_v41 = vld [vmem:[#allocation2 + $0x420] ss:$16 sps:$4 sm:$0xff]  }
  0x8e   :  { %2180 = vmatpush1.bf16.msra.mxu0 %v3793_v42  ;;  %v3848_v42 = vld [vmem:[#allocation2 + $0x68] ss:$16 sps:$4 sm:$0xff]  }
  0x8f   :  { %2181 = vmatprep.subr.bf16.mxu0 %v3801_v43 }
  0x92   :  { %2182 = vmatpush1.bf16.msra.mxu0 %v3799_v44 }
  0x93   :  { %2183 = vmatprep.subr.bf16.mxu0 %v3807_v45  ;;  %v3853_v45 = vld [vmem:[#allocation2 + $0x444] ss:$16 sps:$4 sm:$0xff]  }
  0x96   :  { %2184 = vmatpush1.bf16.msra.mxu0 %v3805_v46  ;;  %v3856_v46 = vld [vmem:[#allocation2 + $0x8c] ss:$16 sps:$4 sm:$0xff]  }
  0x97   :  { %2185 = vmatprep.subr.bf16.mxu0 %v3813_v47 }
  0x9a   :  { %2186 = vmatpush1.bf16.msra.mxu0 %v3811_v48 }
  0x9b   :  { %2187 = vmatprep.subr.bf16.mxu0 %v3819_v50  ;;  %v3854_v50 = vld [vmem:[#allocation2 + $0x88] ss:$16 sps:$4 sm:$0xff]  }
  0x9e   :  { %2188 = vmatpush1.bf16.msra.mxu0 %v3817_v51 }
  0x9f   :  { %2189 = vmatprep.subr.bf16.mxu0 %v3825_v54 }
  0xa2   :  { %2190 = vmatpush1.bf16.msra.mxu0 %v3823_v55 }
  0xa3   :  { %2191 = vmatprep.subr.bf16.mxu0 %v3829_v57  ;;  %v3860_v57 = vld [vmem:[#allocation2 + $0xa8] ss:$16 sps:$4 sm:$0xff]  }
  0xa6   :  { %2192 = vmatpush1.bf16.msra.mxu0 %v3827_v59  ;;  %v3865_v59 = vld [vmem:[#allocation2 + $0x484] ss:$16 sps:$4 sm:$0xff]  }
  0xa7   :  { %2193 = vmatprep.subr.bf16.mxu0 %v3835_v60  ;;  %v3868_v60 = vld [vmem:[#allocation2 + $0xcc] ss:$16 sps:$4 sm:$0xff]  }
  0xaa   :  { %2194 = vmatpush1.bf16.msra.mxu0 %v3833_v61 }
  0xab   :  { %2204 = vmatprep.subr.bf16.mxu0 %v3841_v62  ;;  %v3863_v62 = vld [vmem:[#allocation2 + $0x480] ss:$16 sps:$4 sm:$0xff]  }
 0x128   :  { %v416_v7 = vpop.f32.mrb[0].mxu0 }
 0x129   :  { %v417_v9 = vadd.f32 %v416_v7, %v271_v2  ;;  %v418_v11 = vpop.f32.mrb[1].mxu0  ;;  %v3866_v2 = vld [vmem:[#allocation2 + $0xc8] ss:$16 sps:$4 sm:$0xff]   ;;  %v3874_v7 = vld [vmem:[#allocation2 + $0xec] ss:$16 sps:$4 sm:$0xff]  }
 0x12a   :  { %v419_v13 = vadd.f32 %v418_v11, %v275_v6  ;;  %v420_v14 = vpop.f32.mrb[2].mxu0  ;;  %v3871_v6 = vld [vmem:[#allocation2 + $0x4a4] ss:$16 sps:$4 sm:$0xff]   ;;  %v3872_v11 = vld [vmem:[#allocation2 + $0xe8] ss:$16 sps:$4 sm:$0xff]  }
 0x12b   :  { %v546_v18 = vmax.f32 %v417_v9, 0.0  ;;  %v421_v19 = vpop.f32.mrb[3].mxu0  ;;  %v3869_v9 = vld [vmem:[#allocation2 + $0x4a0] ss:$16 sps:$4 sm:$0xff]   ;;  %v3880_v14 = vld [vmem:[#allocation2 + $0x10c] ss:$16 sps:$4 sm:$0xff]  }
 0x12c   :  { %v547_v20 = vmax.f32 %v419_v13, 0.0  ;;  %v3877_v13 = vld [vmem:[#allocation2 + $0x4c4] ss:$16 sps:$4 sm:$0xff]   ;;  %v3878_v19 = vld [vmem:[#allocation2 + $0x108] ss:$16 sps:$4 sm:$0xff]  }
 0x12d   :  { %v4700_v27 = vpack.c.bf16 %v546_v18, %v546_v18  ;;  %v3875_v18 = vld [vmem:[#allocation2 + $0x4c0] ss:$16 sps:$4 sm:$0xff]  }
 0x12e   :  { %v814_v22 = vpack.c.bf16 %v547_v20, %v547_v20  ;;  %v3883_v20 = vld [vmem:[#allocation2 + $0x4e4] ss:$16 sps:$4 sm:$0xff]  }
 0x130   :  { %v457_v25 = vpop.f32.mrb[4].mxu0  ;;  %2154 = vmatprep.mubr.bf16.mxu1 %v814_v22 }
 0x131   :  { %v458_v28 = vadd.f32 %v457_v25, %v279_v21  ;;  %v459_v29 = vpop.f32.mrb[5].mxu0  ;;  %2155 = vmatmul.mubr.bf16.vlgmr.msra.gmra.mrb[0].mxu1 %v4700_v27  ;;  %v3886_v21 = vld [vmem:[#allocation2 + $0x12c] ss:$16 sps:$4 sm:$0xff]   ;;  %v3887_v25 = vld [vmem:[#allocation2 + $0x500] ss:$16 sps:$4 sm:$0xff]  }
 0x132   :  { %v460_v30 = vadd.f32 %v459_v29, %v283_v26  ;;  %2287 = vmatpush1.bf16.msra.mxu1 %v3830_v23  ;;  %2318 = vmatprep.mubr.bf16.mxu1 %v814_v22  ;;  %v461_v31 = vpop.f32.mrb[6].mxu0  ;;  %v3881_v22 = vld [vmem:[#allocation2 + $0x4e0] ss:$16 sps:$4 sm:$0xff]   ;;  %v3884_v23 = vld [vmem:[#allocation2 + $0x128] ss:$16 sps:$4 sm:$0xff]  }
 0x133   :  { %v548_v33 = vmax.f32 %v458_v28, 0.0  ;;  %2288 = vmatprep.subr.bf16.mxu1 %v3838_v24  ;;  %v462_v16 = vpop.f32.mrb[7].mxu0  ;;  %v3889_v26 = vld [vmem:[#allocation2 + $0x504] ss:$16 sps:$4 sm:$0xff]   ;;  %v3892_v24 = vld [vmem:[#allocation2 + $0x14c] ss:$16 sps:$4 sm:$0xff]  }
 0x134   :  { %v549_v36 = vmax.f32 %v460_v30, 0.0  ;;  %v3890_v28 = vld [vmem:[#allocation2 + $0x148] ss:$16 sps:$4 sm:$0xff]   ;;  %v3895_v29 = vld [vmem:[#allocation2 + $0x524] ss:$16 sps:$4 sm:$0xff]  }
 0x135   :  { %v4704_v37 = vpack.c.bf16 %v548_v33, %v548_v33  ;;  %v3898_v30 = vld [vmem:[#allocation2 + $0x16c] ss:$16 sps:$4 sm:$0xff]   ;;  %v3896_v31 = vld [vmem:[#allocation2 + $0x168] ss:$16 sps:$4 sm:$0xff]  }
 0x136   :  { %v4706_v34 = vpack.c.bf16 %v549_v36, %v549_v36  ;;  %2289 = vmatpush1.bf16.msra.mxu1 %v3836_v35  ;;  %v3893_v35 = vld [vmem:[#allocation2 + $0x520] ss:$16 sps:$4 sm:$0xff]   ;;  %v3904_v33 = vld [vmem:[#allocation2 + $0x18c] ss:$16 sps:$4 sm:$0xff]   ;;  %v3902_v16 = vld [vmem:[#allocation2 + $0x188] ss:$16 sps:$4 sm:$0xff]  }
 0x137   :  { %2290 = vmatprep.subr.bf16.mxu1 %v3844_v5  ;;  %v3899_v5 = vld [vmem:[#allocation2 + $0x540] ss:$16 sps:$4 sm:$0xff]   ;;  %v3907_v36 = vld [vmem:[#allocation2 + $0x564] ss:$16 sps:$4 sm:$0xff]  }
 0x138   :  { %2195 = vmatprep.mubr.bf16.mxu0 %v4706_v34  ;;  %v4710_v39 = vpop.f32.mrb[8].mxu0 }
 0x139   :  { %2196 = vmatmul.mubr.bf16.vlgmr.msra.gmra.mrb[16].mxu0 %v4704_v37  ;;  %v500_v40 = vpop.f32.mrb[9].mxu0 }
 0x13a   :  { %2205 = vmatpush1.bf16.msra.mxu0 %v3839_v10  ;;  %2291 = vmatpush1.bf16.msra.mxu1 %v3842_v17  ;;  %v501_v43 = vadd.f32 %v500_v40, %v291_v4  ;;  %v502_v44 = vpop.f32.mrb[10].mxu0  ;;  %v3910_v10 = vld [vmem:[#allocation2 + $0x1ac] ss:$16 sps:$4 sm:$0xff]   ;;  %v3905_v17 = vld [vmem:[#allocation2 + $0x560] ss:$16 sps:$4 sm:$0xff]   ;;  %v286_v40 = vsub.s32 4, %v4361_v3 }
 0x13b   :  { %2206 = vmatprep.subr.bf16.mxu0 %v3847_v8  ;;  %2292 = vmatprep.subr.bf16.mxu1 %v3850_v38  ;;  %v503_v47 = vpop.f32.mrb[11].mxu0  ;;  %v3908_v4 = vld [vmem:[#allocation2 + $0x1a8] ss:$16 sps:$4 sm:$0xff]   ;;  %v3913_v8 = vld [vmem:[#allocation2 + $0x584] ss:$16 sps:$4 sm:$0xff]  }
 0x13c   :  { %v551_v48 = vmax.f32 %v501_v43, 0.0  ;;  %v3916_v38 = vld [vmem:[#allocation2 + $0x1cc] ss:$16 sps:$4 sm:$0xff]   ;;  %v3919_v43 = vld [vmem:[#allocation2 + $0x5a4] ss:$16 sps:$4 sm:$0xff]  }
 0x13d   :  { %v3922_v44 = vld [vmem:[#allocation2 + $0x1ec] ss:$16 sps:$4 sm:$0xff]   ;;  %v3917_v47 = vld [vmem:[#allocation2 + $0x5a0] ss:$16 sps:$4 sm:$0xff]  }
 0x13e   :  { %2207 = vmatpush1.bf16.msra.mxu0 %v3845_v41  ;;  %2293 = vmatpush1.bf16.msra.mxu1 %v3848_v42  ;;  %v4713_v51 = vpack.c.bf16 %v551_v48, %v551_v48  ;;  %v3911_v41 = vld [vmem:[#allocation2 + $0x580] ss:$16 sps:$4 sm:$0xff]   ;;  %v3914_v42 = vld [vmem:[#allocation2 + $0x1c8] ss:$16 sps:$4 sm:$0xff]  }
 0x13f   :  { %2208 = vmatprep.subr.bf16.mxu0 %v3853_v45  ;;  %2294 = vmatprep.subr.bf16.mxu1 %v3856_v46  ;;  %v298_v45 = vsub.s32 7, %v4361_v3  ;;  %v287_v46 = vrot.slane %v4681_v0, %v286_v40  ;;  %v3920_v48 = vld [vmem:[#allocation2 + $0x1e8] ss:$16 sps:$4 sm:$0xff]  }
 0x140   :  { %2236 = vmatprep.mubr.bf16.mxu0 %v4713_v51  ;;  %v4716_v54 = vpop.f32.mrb[12].mxu0  ;;  %v3980_v40 = vld [vmem:[#allocation2 + $0x328] ss:$16 sps:$4 sm:$0xff]  }
 0x141   :  { %v4718_v55 = vpop.f32.mrb[13].mxu0 }
 0x142   :  { %2209 = vmatpush1.bf16.msra.mxu0 %v3851_v49  ;;  %2295 = vmatpush1.bf16.msra.mxu1 %v3854_v50  ;;  %v543_v58 = vpop.f32.mrb[14].mxu0  ;;  %v3925_v49 = vld [vmem:[#allocation2 + $0x5c4] ss:$16 sps:$4 sm:$0xff]   ;;  %v3928_v50 = vld [vmem:[#allocation2 + $0x20c] ss:$16 sps:$4 sm:$0xff]  }
 0x143   :  { %2210 = vmatprep.subr.bf16.mxu0 %v3859_v52  ;;  %2296 = vmatprep.subr.bf16.mxu1 %v3862_v53  ;;  %v544_v61 = vpop.f32.mrb[15].mxu0  ;;  %v299_v52 = vrot.slane %v4681_v0, %v298_v45  ;;  %v499_v53 = vadd.f32 %v4710_v39, %v287_v46  ;;  %v3931_v58 = vld [vmem:[#allocation2 + $0x5e4] ss:$16 sps:$4 sm:$0xff]   ;;  %v3994_v46 = vld [vmem:[#allocation2 + $0x36c] ss:$16 sps:$4 sm:$0xff]  }
 0x144   :  { %v3937_v39 = vld [vmem:[#allocation2 + $0x604] ss:$16 sps:$4 sm:$0xff]  }
 0x145   :  { %v550_v61 = vmax.f32 %v499_v53, 0.0  ;;  %v3991_v45 = vld [vmem:[#allocation2 + $0x724] ss:$16 sps:$4 sm:$0xff]   ;;  %v3998_v53 = vld [vmem:[#allocation2 + $0x388] ss:$16 sps:$4 sm:$0xff]  }
 0x146   :  { %2211 = vmatpush1.bf16.msra.mxu0 %v3857_v56  ;;  %2297 = vmatpush1.bf16.msra.mxu1 %v3860_v57  ;;  %v3923_v56 = vld [vmem:[#allocation2 + $0x5c0] ss:$16 sps:$4 sm:$0xff]   ;;  %v3926_v57 = vld [vmem:[#allocation2 + $0x208] ss:$16 sps:$4 sm:$0xff]  }
 0x147   :  { %2212 = vmatprep.subr.bf16.mxu0 %v3865_v59  ;;  %2298 = vmatprep.subr.bf16.mxu1 %v3868_v60  ;;  %v3934_v59 = vld [vmem:[#allocation2 + $0x22c] ss:$16 sps:$4 sm:$0xff]   ;;  %v542_v60 = vadd.f32 %v4718_v55, %v299_v52  ;;  %v3938_v55 = vld [vmem:[#allocation2 + $0x248] ss:$16 sps:$4 sm:$0xff]   ;;  %v3995_v52 = vld [vmem:[#allocation2 + $0x740] ss:$16 sps:$4 sm:$0xff]  }
 0x14a   :  { %2213 = vmatpush1.bf16.msra.mxu0 %v3863_v62  ;;  %2299 = vmatpush1.bf16.msra.mxu1 %v3866_v2  ;;  %v3929_v62 = vld [vmem:[#allocation2 + $0x5e0] ss:$16 sps:$4 sm:$0xff]   ;;  %v3932_v2 = vld [vmem:[#allocation2 + $0x228] ss:$16 sps:$4 sm:$0xff]  }
 0x14b   :  { %2214 = vmatprep.subr.bf16.mxu0 %v3871_v6  ;;  %2300 = vmatprep.subr.bf16.mxu1 %v3874_v7  ;;  %v3940_v6 = vld [vmem:[#allocation2 + $0x24c] ss:$16 sps:$4 sm:$0xff]   ;;  %v553_v7 = vmax.f32 %v542_v60, 0.0  ;;  %v4009_v60 = vld [vmem:[#allocation2 + $0x784] ss:$16 sps:$4 sm:$0xff]  }
 0x14e   :  { %2215 = vmatpush1.bf16.msra.mxu0 %v3869_v9  ;;  %2301 = vmatpush1.bf16.msra.mxu1 %v3872_v11  ;;  %v4728_v9 = vpack.c.bf16 %v550_v61, %v550_v61  ;;  %v3935_v11 = vld [vmem:[#allocation2 + $0x600] ss:$16 sps:$4 sm:$0xff]   ;;  %v4012_v61 = vld [vmem:[#allocation2 + $0x3cc] ss:$16 sps:$4 sm:$0xff]  }
 0x14f   :  { %2216 = vmatprep.subr.bf16.mxu0 %v3877_v13  ;;  %2302 = vmatprep.subr.bf16.mxu1 %v3880_v14  ;;  %v3946_v13 = vld [vmem:[#allocation2 + $0x26c] ss:$16 sps:$4 sm:$0xff]   ;;  %v4730_v14 = vpack.c.bf16 %v553_v7, %v553_v7 }
 0x150   :  { %v4018_v7 = vld [vmem:[#allocation2 + $0x3ec] ss:$16 sps:$4 sm:$0xff]  }
 0x152   :  { %2217 = vmatpush1.bf16.msra.mxu0 %v3875_v18  ;;  %2303 = vmatpush1.bf16.msra.mxu1 %v3878_v19  ;;  %v3944_v18 = vld [vmem:[#allocation2 + $0x268] ss:$16 sps:$4 sm:$0xff]   ;;  %v3949_v19 = vld [vmem:[#allocation2 + $0x644] ss:$16 sps:$4 sm:$0xff]  }
 0x153   :  { %2218 = vmatprep.subr.bf16.mxu0 %v3883_v20  ;;  %2304 = vmatprep.subr.bf16.mxu1 %v3886_v21  ;;  %v3952_v20 = vld [vmem:[#allocation2 + $0x28c] ss:$16 sps:$4 sm:$0xff]   ;;  %v3947_v21 = vld [vmem:[#allocation2 + $0x640] ss:$16 sps:$4 sm:$0xff]  }
 0x156   :  { %2219 = vmatpush1.bf16.msra.mxu0 %v3881_v22  ;;  %2305 = vmatpush1.bf16.msra.mxu1 %v3884_v23  ;;  %v3950_v22 = vld [vmem:[#allocation2 + $0x288] ss:$16 sps:$4 sm:$0xff]   ;;  %v3955_v23 = vld [vmem:[#allocation2 + $0x664] ss:$16 sps:$4 sm:$0xff]  }
 0x157   :  { %2220 = vmatprep.subr.bf16.mxu0 %v3889_v26  ;;  %2306 = vmatprep.subr.bf16.mxu1 %v3892_v24  ;;  %v3958_v26 = vld [vmem:[#allocation2 + $0x2ac] ss:$16 sps:$4 sm:$0xff]   ;;  %v3953_v24 = vld [vmem:[#allocation2 + $0x660] ss:$16 sps:$4 sm:$0xff]  }
 0x15a   :  { %2221 = vmatpush1.bf16.msra.mxu0 %v3887_v25  ;;  %2307 = vmatpush1.bf16.msra.mxu1 %v3890_v28  ;;  %v3956_v25 = vld [vmem:[#allocation2 + $0x2a8] ss:$16 sps:$4 sm:$0xff]   ;;  %v3961_v28 = vld [vmem:[#allocation2 + $0x684] ss:$16 sps:$4 sm:$0xff]  }
 0x15b   :  { %2222 = vmatprep.subr.bf16.mxu0 %v3895_v29  ;;  %2308 = vmatprep.subr.bf16.mxu1 %v3898_v30  ;;  %v3964_v29 = vld [vmem:[#allocation2 + $0x2cc] ss:$16 sps:$4 sm:$0xff]   ;;  %v3959_v30 = vld [vmem:[#allocation2 + $0x680] ss:$16 sps:$4 sm:$0xff]  }
 0x15e   :  { %2223 = vmatpush1.bf16.msra.mxu0 %v3893_v35  ;;  %2309 = vmatpush1.bf16.msra.mxu1 %v3896_v31  ;;  %v3962_v35 = vld [vmem:[#allocation2 + $0x2c8] ss:$16 sps:$4 sm:$0xff]   ;;  %v3967_v31 = vld [vmem:[#allocation2 + $0x6a4] ss:$16 sps:$4 sm:$0xff]  }
 0x15f   :  { %2224 = vmatprep.subr.bf16.mxu0 %v3901_v32  ;;  %2310 = vmatprep.subr.bf16.mxu1 %v3904_v33  ;;  %v3970_v32 = vld [vmem:[#allocation2 + $0x2ec] ss:$16 sps:$4 sm:$0xff]   ;;  %v3965_v33 = vld [vmem:[#allocation2 + $0x6a0] ss:$16 sps:$4 sm:$0xff]  }
 0x162   :  { %2225 = vmatpush1.bf16.msra.mxu0 %v3899_v5  ;;  %2311 = vmatpush1.bf16.msra.mxu1 %v3902_v16  ;;  %v3968_v5 = vld [vmem:[#allocation2 + $0x2e8] ss:$16 sps:$4 sm:$0xff]   ;;  %v3973_v16 = vld [vmem:[#allocation2 + $0x6c4] ss:$16 sps:$4 sm:$0xff]  }
 0x163   :  { %2226 = vmatprep.subr.bf16.mxu0 %v3907_v36  ;;  %2312 = vmatprep.subr.bf16.mxu1 %v3910_v10  ;;  %v3976_v36 = vld [vmem:[#allocation2 + $0x30c] ss:$16 sps:$4 sm:$0xff]   ;;  %v3971_v10 = vld [vmem:[#allocation2 + $0x6c0] ss:$16 sps:$4 sm:$0xff]  }
 0x166   :  { %2227 = vmatpush1.bf16.msra.mxu0 %v3905_v17  ;;  %2313 = vmatpush1.bf16.msra.mxu1 %v3908_v4  ;;  %v3974_v17 = vld [vmem:[#allocation2 + $0x308] ss:$16 sps:$4 sm:$0xff]   ;;  %v3979_v4 = vld [vmem:[#allocation2 + $0x6e4] ss:$16 sps:$4 sm:$0xff]  }
 0x167   :  { %2228 = vmatprep.subr.bf16.mxu0 %v3913_v8  ;;  %2314 = vmatprep.subr.bf16.mxu1 %v3916_v38  ;;  %v3982_v8 = vld [vmem:[#allocation2 + $0x32c] ss:$16 sps:$4 sm:$0xff]   ;;  %v3977_v38 = vld [vmem:[#allocation2 + $0x6e0] ss:$16 sps:$4 sm:$0xff]  }
 0x16a   :  { %2229 = vmatpush1.bf16.msra.mxu0 %v3911_v41  ;;  %2315 = vmatpush1.bf16.msra.mxu1 %v3914_v42  ;;  %v3985_v41 = vld [vmem:[#allocation2 + $0x704] ss:$16 sps:$4 sm:$0xff]   ;;  %v3988_v42 = vld [vmem:[#allocation2 + $0x34c] ss:$16 sps:$4 sm:$0xff]  }
 0x16b   :  { %2230 = vmatprep.subr.bf16.mxu0 %v3919_v43  ;;  %2316 = vmatprep.subr.bf16.mxu1 %v3922_v44  ;;  %v3983_v43 = vld [vmem:[#allocation2 + $0x700] ss:$16 sps:$4 sm:$0xff]   ;;  %v3986_v44 = vld [vmem:[#allocation2 + $0x348] ss:$16 sps:$4 sm:$0xff]  }
 0x16e   :  { %2231 = vmatpush1.bf16.msra.mxu0 %v3917_v47  ;;  %2317 = vmatpush1.bf16.msra.mxu1 %v3920_v48  ;;  %v3989_v47 = vld [vmem:[#allocation2 + $0x720] ss:$16 sps:$4 sm:$0xff]   ;;  %v3992_v48 = vld [vmem:[#allocation2 + $0x368] ss:$16 sps:$4 sm:$0xff]  }
 0x16f   :  { %2232 = vmatprep.subr.bf16.mxu0 %v3925_v49  ;;  %2327 = vmatprep.subr.bf16.mxu1 %v3928_v50  ;;  %v3997_v49 = vld [vmem:[#allocation2 + $0x744] ss:$16 sps:$4 sm:$0xff]   ;;  %v4000_v50 = vld [vmem:[#allocation2 + $0x38c] ss:$16 sps:$4 sm:$0xff]  }
 0x171   :  { %2319 = vmatmul.mubr.bf16.vlgmr.msra.gmra.mrb[4].mxu1 %v4700_v27  ;;  %v3943_v27 = vld [vmem:[#allocation2 + $0x624] ss:$16 sps:$4 sm:$0xff]  }
 0x172   :  { %2233 = vmatpush1.bf16.msra.mxu0 %v3923_v56  ;;  %2328 = vmatpush1.bf16.msra.mxu1 %v3926_v57  ;;  %v4003_v56 = vld [vmem:[#allocation2 + $0x764] ss:$16 sps:$4 sm:$0xff]   ;;  %v4006_v57 = vld [vmem:[#allocation2 + $0x3ac] ss:$16 sps:$4 sm:$0xff]  }
 0x173   :  { %2359 = vmatprep.mubr.bf16.mxu1 %v4706_v34  ;;  %2234 = vmatprep.subr.bf16.mxu0 %v3931_v58  ;;  %v3941_v34 = vld [vmem:[#allocation2 + $0x620] ss:$16 sps:$4 sm:$0xff]  }
 0x174   :  { %2329 = vmatprep.subr.bf16.mxu1 %v3934_v59  ;;  %v4001_v58 = vld [vmem:[#allocation2 + $0x760] ss:$16 sps:$4 sm:$0xff]   ;;  %v4004_v59 = vld [vmem:[#allocation2 + $0x3a8] ss:$16 sps:$4 sm:$0xff]  }
 0x176   :  { %2235 = vmatpush1.bf16.msra.mxu0 %v3929_v62  ;;  %2330 = vmatpush1.bf16.msra.mxu1 %v3932_v2  ;;  %v294_v62 = vsub.s32 6, %v4361_v3  ;;  %v4007_v2 = vld [vmem:[#allocation2 + $0x780] ss:$16 sps:$4 sm:$0xff]  }
 0x177   :  { %2245 = vmatprep.subr.bf16.mxu0 %v3937_v39  ;;  %2331 = vmatprep.subr.bf16.mxu1 %v3940_v6  ;;  %v4010_v39 = vld [vmem:[#allocation2 + $0x3c8] ss:$16 sps:$4 sm:$0xff]   ;;  %v4015_v6 = vld [vmem:[#allocation2 + $0x7a4] ss:$16 sps:$4 sm:$0xff]  }
 0x179   :  { %2237 = vmatmul.mubr.bf16.vlgmr.msra.gmra.mrb[16].mxu0 %v4728_v9 }
 0x17a   :  { %2246 = vmatpush1.bf16.msra.mxu0 %v3935_v11  ;;  %2332 = vmatpush1.bf16.msra.mxu1 %v3938_v55  ;;  %v295_v11 = vrot.slane %v4681_v0, %v294_v62  ;;  %v4013_v55 = vld [vmem:[#allocation2 + $0x7a0] ss:$16 sps:$4 sm:$0xff]   ;;  %v4085_v62 = vld [vmem:[#allocation2 + $0x688] ss:$16 sps:$4 sm:$0xff]  }
 0x17b   :  { %2247 = vmatprep.subr.bf16.mxu0 %v3943_v27  ;;  %2333 = vmatprep.subr.bf16.mxu1 %v3946_v13  ;;  %v4016_v27 = vld [vmem:[#allocation2 + $0x3e8] ss:$16 sps:$4 sm:$0xff]   ;;  %v4021_v13 = vld [vmem:[#allocation2 + $0x7c4] ss:$16 sps:$4 sm:$0xff]   ;;  %v4025_v0 = vld [vmem:[#allocation2 + $0x7e0] ss:$16 sps:$4 sm:$0xff]  }
 0x17c   :  { %2277 = vmatprep.mubr.bf16.mxu0 %v4730_v14  ;;  %v540_v3 = vadd.f32 %v4716_v54, %v295_v11  ;;  %v4123_v54 = vld [vmem:[%s5070_s7 + $0x4] ss:$8 sps:$4 sm:$0xff]   ;;  %v4091_v11 = vld [vmem:[#allocation2 + $0x6c8] ss:$16 sps:$4 sm:$0xff]  }
 0x17e   :  { %2248 = vmatpush1.bf16.msra.mxu0 %v3941_v34  ;;  %2334 = vmatpush1.bf16.msra.mxu1 %v3944_v18  ;;  %v4024_v34 = vld [vmem:[#allocation2 + $0x40c] ss:$16 sps:$4 sm:$0xff]   ;;  %v4019_v18 = vld [vmem:[#allocation2 + $0x7c0] ss:$16 sps:$4 sm:$0xff]  }
 0x17f   :  { %2249 = vmatprep.subr.bf16.mxu0 %v3949_v19  ;;  %2335 = vmatprep.subr.bf16.mxu1 %v3952_v20  ;;  %v4022_v19 = vld [vmem:[#allocation2 + $0x408] ss:$16 sps:$4 sm:$0xff]   ;;  %v4027_v20 = vld [vmem:[#allocation2 + $0x7e4] ss:$16 sps:$4 sm:$0xff]  }
 0x182   :  { %2250 = vmatpush1.bf16.msra.mxu0 %v3947_v21  ;;  %2336 = vmatpush1.bf16.msra.mxu1 %v3950_v22  ;;  %v4030_v21 = vld [vmem:[#allocation2 + $0x42c] ss:$16 sps:$4 sm:$0xff]   ;;  %v552_v22 = vmax.f32 %v540_v3, 0.0 }
 0x183   :  { %2251 = vmatprep.subr.bf16.mxu0 %v3955_v23  ;;  %2337 = vmatprep.subr.bf16.mxu1 %v3958_v26  ;;  %v4028_v23 = vld [vmem:[#allocation2 + $0x428] ss:$16 sps:$4 sm:$0xff]   ;;  %v4033_v26 = vld [vmem:[#allocation2 + $0x44c] ss:$16 sps:$4 sm:$0xff]  }
 0x184   :  { %v4126_v3 = vld [vmem:[%s5070_s7 + $0x14] ss:$8 sps:$4 sm:$0xff]  }
 0x186   :  { %2252 = vmatpush1.bf16.msra.mxu0 %v3953_v24  ;;  %2338 = vmatpush1.bf16.msra.mxu1 %v3956_v25  ;;  %v4742_v24 = vpack.c.bf16 %v552_v22, %v552_v22  ;;  %v4031_v25 = vld [vmem:[#allocation2 + $0x448] ss:$16 sps:$4 sm:$0xff]  }
 0x187   :  { %2253 = vmatprep.subr.bf16.mxu0 %v3961_v28  ;;  %2339 = vmatprep.subr.bf16.mxu1 %v3964_v29  ;;  %v4036_v28 = vld [vmem:[#allocation2 + $0x46c] ss:$16 sps:$4 sm:$0xff]   ;;  %v4100_v22 = vld [vmem:[#allocation2 + $0x728] ss:$16 sps:$4 sm:$0xff]  }
 0x188   :  { %v4039_v29 = vld [vmem:[#allocation2 + $0x48c] ss:$16 sps:$4 sm:$0xff]  }
 0x18a   :  { %2254 = vmatpush1.bf16.msra.mxu0 %v3959_v30  ;;  %2340 = vmatpush1.bf16.msra.mxu1 %v3962_v35  ;;  %v4037_v30 = vld [vmem:[#allocation2 + $0x488] ss:$16 sps:$4 sm:$0xff]   ;;  %v4042_v35 = vld [vmem:[#allocation2 + $0x4ac] ss:$16 sps:$4 sm:$0xff]  }
 0x18b   :  { %2255 = vmatprep.subr.bf16.mxu0 %v3967_v31  ;;  %2341 = vmatprep.subr.bf16.mxu1 %v3970_v32  ;;  %v4040_v31 = vld [vmem:[#allocation2 + $0x4a8] ss:$16 sps:$4 sm:$0xff]   ;;  %v4045_v32 = vld [vmem:[#allocation2 + $0x4cc] ss:$16 sps:$4 sm:$0xff]  }
 0x18e   :  { %2256 = vmatpush1.bf16.msra.mxu0 %v3965_v33  ;;  %2342 = vmatpush1.bf16.msra.mxu1 %v3968_v5  ;;  %v4043_v33 = vld [vmem:[#allocation2 + $0x4c8] ss:$16 sps:$4 sm:$0xff]   ;;  %v4048_v5 = vld [vmem:[#allocation2 + $0x4ec] ss:$16 sps:$4 sm:$0xff]  }
 0x18f   :  { %2257 = vmatprep.subr.bf16.mxu0 %v3973_v16  ;;  %2343 = vmatprep.subr.bf16.mxu1 %v3976_v36  ;;  %v4046_v16 = vld [vmem:[#allocation2 + $0x4e8] ss:$16 sps:$4 sm:$0xff]   ;;  %v4051_v36 = vld [vmem:[#allocation2 + $0x50c] ss:$16 sps:$4 sm:$0xff]  }
 0x192   :  { %2258 = vmatpush1.bf16.msra.mxu0 %v3971_v10  ;;  %2344 = vmatpush1.bf16.msra.mxu1 %v3974_v17  ;;  %v4049_v10 = vld [vmem:[#allocation2 + $0x508] ss:$16 sps:$4 sm:$0xff]   ;;  %v4054_v17 = vld [vmem:[#allocation2 + $0x52c] ss:$16 sps:$4 sm:$0xff]  }
 0x193   :  { %2259 = vmatprep.subr.bf16.mxu0 %v3979_v4  ;;  %2345 = vmatprep.subr.bf16.mxu1 %v3982_v8  ;;  %v4052_v4 = vld [vmem:[#allocation2 + $0x528] ss:$16 sps:$4 sm:$0xff]   ;;  %v4057_v8 = vld [vmem:[#allocation2 + $0x54c] ss:$16 sps:$4 sm:$0xff]  }
 0x196   :  { %2260 = vmatpush1.bf16.msra.mxu0 %v3977_v38  ;;  %2346 = vmatpush1.bf16.msra.mxu1 %v3980_v40  ;;  %v4055_v38 = vld [vmem:[#allocation2 + $0x548] ss:$16 sps:$4 sm:$0xff]   ;;  %v4060_v40 = vld [vmem:[#allocation2 + $0x56c] ss:$16 sps:$4 sm:$0xff]  }
 0x197   :  { %2261 = vmatprep.subr.bf16.mxu0 %v3985_v41  ;;  %2347 = vmatprep.subr.bf16.mxu1 %v3988_v42  ;;  %v4058_v41 = vld [vmem:[#allocation2 + $0x568] ss:$16 sps:$4 sm:$0xff]   ;;  %v4063_v42 = vld [vmem:[#allocation2 + $0x58c] ss:$16 sps:$4 sm:$0xff]  }
 0x19a   :  { %2262 = vmatpush1.bf16.msra.mxu0 %v3983_v43  ;;  %2348 = vmatpush1.bf16.msra.mxu1 %v3986_v44  ;;  %v4061_v43 = vld [vmem:[#allocation2 + $0x588] ss:$16 sps:$4 sm:$0xff]   ;;  %v4066_v44 = vld [vmem:[#allocation2 + $0x5ac] ss:$16 sps:$4 sm:$0xff]  }
 0x19b   :  { %2263 = vmatprep.subr.bf16.mxu0 %v3991_v45  ;;  %2349 = vmatprep.subr.bf16.mxu1 %v3994_v46  ;;  %v4064_v45 = vld [vmem:[#allocation2 + $0x5a8] ss:$16 sps:$4 sm:$0xff]   ;;  %v4069_v46 = vld [vmem:[#allocation2 + $0x5cc] ss:$16 sps:$4 sm:$0xff]  }
 0x19e   :  { %2264 = vmatpush1.bf16.msra.mxu0 %v3989_v47  ;;  %2350 = vmatpush1.bf16.msra.mxu1 %v3992_v48  ;;  %v4067_v47 = vld [vmem:[#allocation2 + $0x5c8] ss:$16 sps:$4 sm:$0xff]   ;;  %v4072_v48 = vld [vmem:[#allocation2 + $0x5ec] ss:$16 sps:$4 sm:$0xff]  }
 0x19f   :  { %2265 = vmatprep.subr.bf16.mxu0 %v3997_v49  ;;  %2351 = vmatprep.subr.bf16.mxu1 %v4000_v50  ;;  %v4070_v49 = vld [vmem:[#allocation2 + $0x5e8] ss:$16 sps:$4 sm:$0xff]   ;;  %v4075_v50 = vld [vmem:[#allocation2 + $0x60c] ss:$16 sps:$4 sm:$0xff]  }
 0x1a2   :  { %2266 = vmatpush1.bf16.msra.mxu0 %v3995_v52  ;;  %2352 = vmatpush1.bf16.msra.mxu1 %v3998_v53  ;;  %v4073_v52 = vld [vmem:[#allocation2 + $0x608] ss:$16 sps:$4 sm:$0xff]   ;;  %v4078_v53 = vld [vmem:[#allocation2 + $0x62c] ss:$16 sps:$4 sm:$0xff]  }
 0x1a3   :  { %2267 = vmatprep.subr.bf16.mxu0 %v4003_v56  ;;  %2353 = vmatprep.subr.bf16.mxu1 %v4006_v57  ;;  %v4076_v56 = vld [vmem:[#allocation2 + $0x628] ss:$16 sps:$4 sm:$0xff]   ;;  %v4081_v57 = vld [vmem:[#allocation2 + $0x64c] ss:$16 sps:$4 sm:$0xff]  }
 0x1a6   :  { %2268 = vmatpush1.bf16.msra.mxu0 %v4001_v58  ;;  %2354 = vmatpush1.bf16.msra.mxu1 %v4004_v59  ;;  %v4079_v58 = vld [vmem:[#allocation2 + $0x648] ss:$16 sps:$4 sm:$0xff]   ;;  %v4084_v59 = vld [vmem:[#allocation2 + $0x66c] ss:$16 sps:$4 sm:$0xff]  }
 0x1a7   :  { %2269 = vmatprep.subr.bf16.mxu0 %v4009_v60  ;;  %2355 = vmatprep.subr.bf16.mxu1 %v4012_v61  ;;  %v4082_v60 = vld [vmem:[#allocation2 + $0x668] ss:$16 sps:$4 sm:$0xff]   ;;  %v4087_v61 = vld [vmem:[#allocation2 + $0x68c] ss:$16 sps:$4 sm:$0xff]  }
 0x1aa   :  { %2270 = vmatpush1.bf16.msra.mxu0 %v4007_v2  ;;  %2356 = vmatpush1.bf16.msra.mxu1 %v4010_v39  ;;  %v4090_v2 = vld [vmem:[#allocation2 + $0x6ac] ss:$16 sps:$4 sm:$0xff]  }
 0x1ab   :  { %2271 = vmatprep.subr.bf16.mxu0 %v4015_v6  ;;  %2357 = vmatprep.subr.bf16.mxu1 %v4018_v7  ;;  %v4093_v39 = vld [vmem:[#allocation2 + $0x6cc] ss:$16 sps:$4 sm:$0xff]  }
 0x1ae   :  { %2272 = vmatpush1.bf16.msra.mxu0 %v4013_v55  ;;  %2358 = vmatpush1.bf16.msra.mxu1 %v4016_v27  ;;  %v4096_v27 = vld [vmem:[#allocation2 + $0x6ec] ss:$16 sps:$4 sm:$0xff]  }
 0x1af   :  { %2273 = vmatprep.subr.bf16.mxu0 %v4021_v13  ;;  %2368 = vmatprep.subr.bf16.mxu1 %v4024_v34  ;;  %v4094_v13 = vld [vmem:[#allocation2 + $0x6e8] ss:$16 sps:$4 sm:$0xff]   ;;  %v4099_v34 = vld [vmem:[#allocation2 + $0x70c] ss:$16 sps:$4 sm:$0xff]  }
 0x1b1   :  { %2360 = vmatmul.mubr.bf16.vlgmr.msra.gmra.mrb[4].mxu1 %v4704_v37  ;;  %v4121_v37 = vld [vmem:[%s5070_s7] ss:$8 sps:$4 sm:$0xff]  }
 0x1b2   :  { %2274 = vmatpush1.bf16.msra.mxu0 %v4019_v18  ;;  %2369 = vmatpush1.bf16.msra.mxu1 %v4022_v19  ;;  %v4097_v18 = vld [vmem:[#allocation2 + $0x708] ss:$16 sps:$4 sm:$0xff]  }
 0x1b3   :  { %2400 = vmatprep.mubr.bf16.mxu1 %v4713_v51  ;;  %2275 = vmatprep.subr.bf16.mxu0 %v4027_v20  ;;  %v4034_v51 = vld [vmem:[#allocation2 + $0x468] ss:$16 sps:$4 sm:$0xff]   ;;  %v4102_v20 = vld [vmem:[#allocation2 + $0x72c] ss:$16 sps:$4 sm:$0xff]  }
 0x1b4   :  { %2370 = vmatprep.subr.bf16.mxu1 %v4030_v21  ;;  %v4124_v19 = vld [vmem:[%s5070_s7 + $0x10] ss:$8 sps:$4 sm:$0xff]   ;;  %v4129_v21 = vld [vmem:[%s5070_s7 + $0x24] ss:$8 sps:$4 sm:$0xff]  }
 0x1b6   :  { %2276 = vmatpush1.bf16.msra.mxu0 %v4025_v0  ;;  %2371 = vmatpush1.bf16.msra.mxu1 %v4028_v23  ;;  %v4127_v0 = vld [vmem:[%s5070_s7 + $0x20] ss:$8 sps:$4 sm:$0xff]   ;;  %v4105_v23 = vld [vmem:[#allocation2 + $0x74c] ss:$16 sps:$4 sm:$0xff]  }
 0x1b7   :  { %2372 = vmatprep.subr.bf16.mxu1 %v4033_v26  ;;  %2991 = vmatprep.subr.bf16.mxu0 %v4123_v54  ;;  %v4132_v26 = vld [vmem:[%s5070_s7 + $0x34] ss:$8 sps:$4 sm:$0xff]   ;;  %v4103_v54 = vld [vmem:[#allocation2 + $0x748] ss:$16 sps:$4 sm:$0xff]  }
 0x1b9   :  { %2278 = vmatmul.mubr.bf16.vlgmr.msra.gmra.mrb[16].mxu0 %v4742_v24 }
 0x1ba   :  { %2373 = vmatpush1.bf16.msra.mxu1 %v4031_v25  ;;  %2992 = vmatpush1.bf16.msra.mxu0 %v4121_v37  ;;  %v4130_v25 = vld [vmem:[%s5070_s7 + $0x30] ss:$8 sps:$4 sm:$0xff]   ;;  %v4108_v37 = vld [vmem:[#allocation2 + $0x76c] ss:$16 sps:$4 sm:$0xff]  }
 0x1bb   :  { %2374 = vmatprep.subr.bf16.mxu1 %v4036_v28  ;;  %2993 = vmatprep.subr.bf16.mxu0 %v4126_v3  ;;  %v4135_v28 = vld [vmem:[%s5070_s7 + $0x44] ss:$8 sps:$4 sm:$0xff]  }
 0x1be   :  { %2375 = vmatpush1.bf16.msra.mxu1 %v4034_v51  ;;  %2994 = vmatpush1.bf16.msra.mxu0 %v4124_v19  ;;  %v4106_v51 = vld [vmem:[#allocation2 + $0x768] ss:$16 sps:$4 sm:$0xff]  }
 0x1bf   :  { %2376 = vmatprep.subr.bf16.mxu1 %v4039_v29  ;;  %2995 = vmatprep.subr.bf16.mxu0 %v4129_v21  ;;  %v4133_v29 = vld [vmem:[%s5070_s7 + $0x40] ss:$8 sps:$4 sm:$0xff]  }
 0x1c2   :  { %2377 = vmatpush1.bf16.msra.mxu1 %v4037_v30  ;;  %2996 = vmatpush1.bf16.msra.mxu0 %v4127_v0  ;;  %v4111_v30 = vld [vmem:[#allocation2 + $0x78c] ss:$16 sps:$4 sm:$0xff]  }
 0x1c3   :  { %2378 = vmatprep.subr.bf16.mxu1 %v4042_v35  ;;  %2997 = vmatprep.subr.bf16.mxu0 %v4132_v26  ;;  %v4138_v35 = vld [vmem:[%s5070_s7 + $0x54] ss:$8 sps:$4 sm:$0xff]  }
 0x1c6   :  { %2379 = vmatpush1.bf16.msra.mxu1 %v4040_v31  ;;  %2998 = vmatpush1.bf16.msra.mxu0 %v4130_v25  ;;  %v4109_v31 = vld [vmem:[#allocation2 + $0x788] ss:$16 sps:$4 sm:$0xff]  }
 0x1c7   :  { %2380 = vmatprep.subr.bf16.mxu1 %v4045_v32  ;;  %2999 = vmatprep.subr.bf16.mxu0 %v4135_v28  ;;  %v4136_v32 = vld [vmem:[%s5070_s7 + $0x50] ss:$8 sps:$4 sm:$0xff]  }
 0x1ca   :  { %2381 = vmatpush1.bf16.msra.mxu1 %v4043_v33  ;;  %3000 = vmatpush1.bf16.msra.mxu0 %v4133_v29  ;;  %v4114_v33 = vld [vmem:[#allocation2 + $0x7ac] ss:$16 sps:$4 sm:$0xff]  }
 0x1cb   :  { %2382 = vmatprep.subr.bf16.mxu1 %v4048_v5  ;;  %3001 = vmatprep.subr.bf16.mxu0 %v4138_v35  ;;  %v4141_v5 = vld [vmem:[%s5070_s7 + $0x64] ss:$8 sps:$4 sm:$0xff]  }
 0x1ce   :  { %2383 = vmatpush1.bf16.msra.mxu1 %v4046_v16  ;;  %3002 = vmatpush1.bf16.msra.mxu0 %v4136_v32  ;;  %v4112_v16 = vld [vmem:[#allocation2 + $0x7a8] ss:$16 sps:$4 sm:$0xff]  }
 0x1cf   :  { %2384 = vmatprep.subr.bf16.mxu1 %v4051_v36  ;;  %v4139_v36 = vld [vmem:[%s5070_s7 + $0x60] ss:$8 sps:$4 sm:$0xff]   ;;  %3003 = vmatprep.subr.bf16.mxu0 %v4141_v5 }
 0x1d2   :  { %2385 = vmatpush1.bf16.msra.mxu1 %v4049_v10  ;;  %v4117_v10 = vld [vmem:[#allocation2 + $0x7cc] ss:$16 sps:$4 sm:$0xff]   ;;  %3004 = vmatpush1.bf16.msra.mxu0 %v4139_v36 }
 0x1d3   :  { %2386 = vmatprep.subr.bf16.mxu1 %v4054_v17  ;;  %v4144_v17 = vld [vmem:[%s5070_s7 + $0x74] ss:$8 sps:$4 sm:$0xff]  }
 0x1d4   :  { %3005 = vmatprep.subr.bf16.mxu0 %v4144_v17 }
 0x1d6   :  { %2387 = vmatpush1.bf16.msra.mxu1 %v4052_v4  ;;  %v4115_v4 = vld [vmem:[#allocation2 + $0x7c8] ss:$16 sps:$4 sm:$0xff]  }
 0x1d7   :  { %2388 = vmatprep.subr.bf16.mxu1 %v4057_v8  ;;  %v4142_v8 = vld [vmem:[%s5070_s7 + $0x70] ss:$8 sps:$4 sm:$0xff]  }
 0x1d8   :  { %3006 = vmatpush1.bf16.msra.mxu0 %v4142_v8 }
 0x1da   :  { %2389 = vmatpush1.bf16.msra.mxu1 %v4055_v38  ;;  %v4120_v38 = vld [vmem:[#allocation2 + $0x7ec] ss:$16 sps:$4 sm:$0xff]  }
 0x1db   :  { %2390 = vmatprep.subr.bf16.mxu1 %v4060_v40  ;;  %v4147_v40 = vld [vmem:[%s5070_s7 + $0x84] ss:$8 sps:$4 sm:$0xff]  }
 0x1dc   :  { %3007 = vmatprep.subr.bf16.mxu0 %v4147_v40 }
 0x1de   :  { %2391 = vmatpush1.bf16.msra.mxu1 %v4058_v41  ;;  %v4118_v41 = vld [vmem:[#allocation2 + $0x7e8] ss:$16 sps:$4 sm:$0xff]  }
 0x1df   :  { %2392 = vmatprep.subr.bf16.mxu1 %v4063_v42  ;;  %v4145_v42 = vld [vmem:[%s5070_s7 + $0x80] ss:$8 sps:$4 sm:$0xff]  }
 0x1e0   :  { %3008 = vmatpush1.bf16.msra.mxu0 %v4145_v42 }
 0x1e2   :  { %2393 = vmatpush1.bf16.msra.mxu1 %v4061_v43  ;;  %v4150_v43 = vld [vmem:[%s5070_s7 + $0x94] ss:$8 sps:$4 sm:$0xff]  }
 0x1e3   :  { %2394 = vmatprep.subr.bf16.mxu1 %v4066_v44  ;;  %v4148_v44 = vld [vmem:[%s5070_s7 + $0x90] ss:$8 sps:$4 sm:$0xff]   ;;  %3009 = vmatprep.subr.bf16.mxu0 %v4150_v43 }
 0x1e4   :  { %3010 = vmatpush1.bf16.msra.mxu0 %v4148_v44 }
 0x1e6   :  { %2395 = vmatpush1.bf16.msra.mxu1 %v4064_v45  ;;  %v4153_v45 = vld [vmem:[%s5070_s7 + $0xa4] ss:$8 sps:$4 sm:$0xff]  }
 0x1e7   :  { %2396 = vmatprep.subr.bf16.mxu1 %v4069_v46  ;;  %v4151_v46 = vld [vmem:[%s5070_s7 + $0xa0] ss:$8 sps:$4 sm:$0xff]   ;;  %3011 = vmatprep.subr.bf16.mxu0 %v4153_v45 }
 0x1e8   :  { %3012 = vmatpush1.bf16.msra.mxu0 %v4151_v46 }
 0x1ea   :  { %2397 = vmatpush1.bf16.msra.mxu1 %v4067_v47  ;;  %v4156_v47 = vld [vmem:[%s5070_s7 + $0xb4] ss:$8 sps:$4 sm:$0xff]  }
 0x1eb   :  { %2398 = vmatprep.subr.bf16.mxu1 %v4072_v48  ;;  %v4154_v48 = vld [vmem:[%s5070_s7 + $0xb0] ss:$8 sps:$4 sm:$0xff]   ;;  %3013 = vmatprep.subr.bf16.mxu0 %v4156_v47  ;;  %v4866_v47 = vld [vmem:[%s5068_s5] sm:$0xf] }
 0x1ec   :  { %3014 = vmatpush1.bf16.msra.mxu0 %v4154_v48  ;;  %v4871_v48 = vld [vmem:[%s5069_s6] sm:$0xf] }
 0x1ee   :  { %2399 = vmatpush1.bf16.msra.mxu1 %v4070_v49  ;;  %v4157_v49 = vld [vmem:[%s5070_s7 + $0xc0] ss:$8 sps:$4 sm:$0xff]  }
 0x1ef   :  { %2409 = vmatprep.subr.bf16.mxu1 %v4075_v50  ;;  %v4162_v50 = vld [vmem:[%s5070_s7 + $0xd4] ss:$8 sps:$4 sm:$0xff]  }
 0x1f1   :  { %2401 = vmatmul.mubr.bf16.vlgmr.msra.gmra.mrb[4].mxu1 %v4728_v9  ;;  %v4088_v9 = vld [vmem:[#allocation2 + $0x6a8] ss:$16 sps:$4 sm:$0xff]  }
 0x1f2   :  { %2410 = vmatpush1.bf16.msra.mxu1 %v4073_v52  ;;  %2441 = vmatprep.mubr.bf16.mxu1 %v4730_v14  ;;  %v4160_v52 = vld [vmem:[%s5070_s7 + $0xd0] ss:$8 sps:$4 sm:$0xff]  }
 0x1f3   :  { %2411 = vmatprep.subr.bf16.mxu1 %v4078_v53  ;;  %v4163_v53 = vld [vmem:[%s5070_s7 + $0xe0] ss:$8 sps:$4 sm:$0xff]  }
 0x1f6   :  { %2412 = vmatpush1.bf16.msra.mxu1 %v4076_v56  ;;  %v4165_v56 = vld [vmem:[%s5070_s7 + $0xe4] ss:$8 sps:$4 sm:$0xff]  }
 0x1f7   :  { %2413 = vmatprep.subr.bf16.mxu1 %v4081_v57  ;;  %v4168_v57 = vld [vmem:[%s5070_s7 + $0xf4] ss:$8 sps:$4 sm:$0xff]  }
 0x1fa   :  { %2414 = vmatpush1.bf16.msra.mxu1 %v4079_v58  ;;  %v4166_v58 = vld [vmem:[%s5070_s7 + $0xf0] ss:$8 sps:$4 sm:$0xff]  }
 0x1fb   :  { %2415 = vmatprep.subr.bf16.mxu1 %v4084_v59  ;;  %v4171_v59 = vld [vmem:[%s5070_s7 + $0x104] ss:$8 sps:$4 sm:$0xff]  }
 0x1fe   :  { %2416 = vmatpush1.bf16.msra.mxu1 %v4082_v60  ;;  %v4851_v60 = vld [vmem:[%s5067_s4] sm:$0xf] }
 0x1ff   :  { %2417 = vmatprep.subr.bf16.mxu1 %v4087_v61  ;;  %v825_v61 = vrot.slane %v4851_v60, %v4676_v63 }
 0x202   :  { %2418 = vmatpush1.bf16.msra.mxu1 %v4085_v62  ;;  %v829_v62 = vrot.slane %v4851_v60, %v4684_v1 }
 0x203   :  { %2419 = vmatprep.subr.bf16.mxu1 %v4090_v2 }
 0x204   :  { %v4750_v14 = vpop.f32.mrb[0].mxu1 }
 0x205   :  { %v4752_v6 = vpop.f32.mrb[1].mxu1  ;;  %v2157_v2 = vadd.f32 %v4750_v14, %v825_v61 }
 0x206   :  { %2420 = vmatpush1.bf16.msra.mxu1 %v4088_v9  ;;  %v2160_v7 = vpop.f32.mrb[2].mxu1  ;;  %v2159_v9 = vadd.f32 %v4752_v6, %v829_v62 }
 0x207   :  { %v2161_v55 = vpop.f32.mrb[3].mxu1  ;;  %2421 = vmatprep.subr.bf16.mxu1 %v4093_v39 }
 0x20a   :  { %2422 = vmatpush1.bf16.msra.mxu1 %v4091_v11 }
 0x20b   :  { %2423 = vmatprep.subr.bf16.mxu1 %v4096_v27 }
 0x20e   :  { %2424 = vmatpush1.bf16.msra.mxu1 %v4094_v13 }
 0x20f   :  { %2425 = vmatprep.subr.bf16.mxu1 %v4099_v34 }
 0x212   :  { %2426 = vmatpush1.bf16.msra.mxu1 %v4097_v18 }
 0x213   :  { %2427 = vmatprep.subr.bf16.mxu1 %v4102_v20 }
 0x216   :  { %2428 = vmatpush1.bf16.msra.mxu1 %v4100_v22 }
 0x217   :  { %2429 = vmatprep.subr.bf16.mxu1 %v4105_v23 }
 0x21a   :  { %2430 = vmatpush1.bf16.msra.mxu1 %v4103_v54 }
 0x21b   :  { %2431 = vmatprep.subr.bf16.mxu1 %v4108_v37 }
 0x21e   :  { %2432 = vmatpush1.bf16.msra.mxu1 %v4106_v51 }
 0x21f   :  { %2433 = vmatprep.subr.bf16.mxu1 %v4111_v30 }
 0x222   :  { %2434 = vmatpush1.bf16.msra.mxu1 %v4109_v31 }
 0x223   :  { %2435 = vmatprep.subr.bf16.mxu1 %v4114_v33 }
 0x226   :  { %2436 = vmatpush1.bf16.msra.mxu1 %v4112_v16 }
 0x227   :  { %2437 = vmatprep.subr.bf16.mxu1 %v4117_v10 }
 0x22a   :  { %2438 = vmatpush1.bf16.msra.mxu1 %v4115_v4 }
 0x22b   :  { %2439 = vmatprep.subr.bf16.mxu1 %v4120_v38 }
 0x22e   :  { %2440 = vmatpush1.bf16.msra.mxu1 %v4118_v41 }
 0x231   :  { %2442 = vmatmul.mubr.bf16.vlgmr.msra.gmra.mrb[4].mxu1 %v4742_v24  ;;  %v4159_v24 = vld [vmem:[%s5070_s7 + $0xc4] ss:$8 sps:$4 sm:$0xff]  }
 0x232   :  { %3015 = vmatprep.subr.bf16.mxu0 %v4159_v24  ;;  %v2539_v24 = vrot.slane %v4866_v47, %v4676_v63 }
 0x233   :  { %3016 = vmatpush1.bf16.msra.mxu0 %v4157_v49 }
 0x234   :  { %3017 = vmatprep.subr.bf16.mxu0 %v4162_v50  ;;  %v2543_v50 = vrot.slane %v4866_v47, %v4684_v1 }
 0x237   :  { %3018 = vmatpush1.bf16.msra.mxu0 %v4160_v52 }
 0x238   :  { %3019 = vmatprep.subr.bf16.mxu0 %v4165_v56  ;;  %v2564_v56 = vrot.slane %v4871_v48, %v4676_v63 }
 0x23b   :  { %3020 = vmatpush1.bf16.msra.mxu0 %v4163_v53 }
 0x23c   :  { %3021 = vmatprep.subr.bf16.mxu0 %v4168_v57 }
 0x23f   :  { %3022 = vmatpush1.bf16.msra.mxu0 %v4166_v58  ;;  %v2568_v58 = vrot.slane %v4871_v48, %v4684_v1 }
 0x240   :  { %3032 = vmatprep.subr.bf16.mxu0 %v4171_v59 }
 0x28c   :  { %v2279_v39 = vpop.f32.mrb[16].mxu0 }
 0x28d   :  { %v3698_v7 = vadd.f32 %v2279_v39, %v2157_v2  ;;  %v2281_v11 = vpop.f32.mrb[17].mxu0 }
 0x28e   :  { %v3700_v55 = vadd.f32 %v2281_v11, %v2159_v9  ;;  %v2283_v27 = vpop.f32.mrb[18].mxu0  ;;  %v4169_v11 = vld [vmem:[%s5070_s7 + $0x100] ss:$8 sps:$4 sm:$0xff]  }
 0x28f   :  { %v2450_v13 = vsel %vm355_vm1, %v3698_v7, 0.0  ;;  %v2284_v34 = vpop.f32.mrb[19].mxu0  ;;  %v4174_v27 = vld [vmem:[%s5070_s7 + $0x114] ss:$8 sps:$4 sm:$0xff]  }
 0x290   :  { %v2451_v3 = vrot.slane %v2450_v13, 4  ;;  %v2457_v18 = vsel %vm355_vm1, %v3700_v55, 0.0  ;;  %v4177_v34 = vld [vmem:[%s5070_s7 + $0x124] ss:$8 sps:$4 sm:$0xff]  }
 0x291   :  { %v2458_v19 = vrot.slane %v2457_v18, 4 }
 0x292   :  { %v2452_v20 = vadd.f32 %v2451_v3, %v2450_v13  ;;  %v4172_v13 = vld [vmem:[%s5070_s7 + $0x110] ss:$8 sps:$4 sm:$0xff]   ;;  %v4175_v3 = vld [vmem:[%s5070_s7 + $0x120] ss:$8 sps:$4 sm:$0xff]  }
 0x293   :  { %v2459_v21 = vadd.f32 %v2458_v19, %v2457_v18  ;;  %v4180_v18 = vld [vmem:[%s5070_s7 + $0x134] ss:$8 sps:$4 sm:$0xff]   ;;  %v4178_v19 = vld [vmem:[%s5070_s7 + $0x130] ss:$8 sps:$4 sm:$0xff]  }
 0x294   :  { %v2453_v22 = vrot.slane %v2452_v20, 2 }
 0x295   :  { %v2460_v0 = vrot.slane %v2459_v21, 2 }
 0x296   :  { %v2454_v23 = vadd.f32 %v2453_v22, %v2452_v20  ;;  %v4183_v20 = vld [vmem:[%s5070_s7 + $0x144] ss:$8 sps:$4 sm:$0xff]   ;;  %v4186_v22 = vld [vmem:[%s5070_s7 + $0x154] ss:$8 sps:$4 sm:$0xff]  }
 0x297   :  { %v2461_v14 = vadd.f32 %v2460_v0, %v2459_v21  ;;  %v4181_v21 = vld [vmem:[%s5070_s7 + $0x140] ss:$8 sps:$4 sm:$0xff]   ;;  %v4184_v0 = vld [vmem:[%s5070_s7 + $0x150] ss:$8 sps:$4 sm:$0xff]  }
 0x298   :  { %v2455_v26 = vrot.slane %v2454_v23, 1 }
 0x299   :  { %v2462_v6 = vrot.slane %v2461_v14, 1 }
 0x29a   :  { %v2456_v54 = vadd.f32 %v2455_v26, %v2454_v23  ;;  %v4189_v23 = vld [vmem:[%s5070_s7 + $0x164] ss:$8 sps:$4 sm:$0xff]   ;;  %v4192_v26 = vld [vmem:[%s5070_s7 + $0x174] ss:$8 sps:$4 sm:$0xff]  }
 0x29b   :  { %v2463_v25 = vadd.f32 %v2462_v6, %v2461_v14  ;;  %v4187_v14 = vld [vmem:[%s5070_s7 + $0x160] ss:$8 sps:$4 sm:$0xff]   ;;  %v4190_v6 = vld [vmem:[%s5070_s7 + $0x170] ss:$8 sps:$4 sm:$0xff]  }
 0x29c   :  { %v2479_v37 = vmul.f32 0.5, %v2456_v54  ;;  %v4195_v54 = vld [vmem:[%s5070_s7 + $0x184] ss:$8 sps:$4 sm:$0xff]  }
 0x29d   :  { %v2480_v28 = vmul.f32 0.5, %v2463_v25  ;;  %v4193_v25 = vld [vmem:[%s5070_s7 + $0x180] ss:$8 sps:$4 sm:$0xff]  }
 0x29e   :  { %v2483_v51 = vsub.f32 %v3698_v7, %v2479_v37  ;;  %v4198_v37 = vld [vmem:[%s5070_s7 + $0x194] ss:$8 sps:$4 sm:$0xff]  }
 0x29f   :  { %v2484_v29 = vsub.f32 %v3700_v55, %v2480_v28  ;;  %v4196_v28 = vld [vmem:[%s5070_s7 + $0x190] ss:$8 sps:$4 sm:$0xff]  }
 0x2a0   :  { %v2487_v30 = vmul.f32 %v2483_v51, %v2483_v51 }
 0x2a1   :  { %v2488_v35 = vmul.f32 %v2484_v29, %v2484_v29 }
 0x2a2   :  { %v2491_v31 = vsel %vm355_vm1, %v2487_v30, 0.0  ;;  %v4204_v30 = vld [vmem:[%s5070_s7 + $0x1b4] ss:$8 sps:$4 sm:$0xff]  }
 0x2a3   :  { %v2492_v32 = vrot.slane %v2491_v31, 4  ;;  %v2498_v33 = vsel %vm355_vm1, %v2488_v35, 0.0  ;;  %v4202_v35 = vld [vmem:[%s5070_s7 + $0x1b0] ss:$8 sps:$4 sm:$0xff]  }
 0x2a4   :  { %v2499_v5 = vrot.slane %v2498_v33, 4 }
 0x2a5   :  { %v2493_v16 = vadd.f32 %v2492_v32, %v2491_v31  ;;  %v4207_v31 = vld [vmem:[%s5070_s7 + $0x1c4] ss:$8 sps:$4 sm:$0xff]   ;;  %v4205_v32 = vld [vmem:[%s5070_s7 + $0x1c0] ss:$8 sps:$4 sm:$0xff]  }
 0x2a6   :  { %v2500_v36 = vadd.f32 %v2499_v5, %v2498_v33  ;;  %v4210_v33 = vld [vmem:[%s5070_s7 + $0x1d4] ss:$8 sps:$4 sm:$0xff]   ;;  %v4208_v5 = vld [vmem:[%s5070_s7 + $0x1d0] ss:$8 sps:$4 sm:$0xff]  }
 0x2a7   :  { %v2494_v10 = vrot.slane %v2493_v16, 2 }
 0x2a8   :  { %v2501_v17 = vrot.slane %v2500_v36, 2 }
 0x2a9   :  { %v2495_v4 = vadd.f32 %v2494_v10, %v2493_v16  ;;  %v4213_v16 = vld [vmem:[%s5070_s7 + $0x1e4] ss:$8 sps:$4 sm:$0xff]   ;;  %v4216_v10 = vld [vmem:[%s5070_s7 + $0x1f4] ss:$8 sps:$4 sm:$0xff]  }
 0x2aa   :  { %v2502_v8 = vadd.f32 %v2501_v17, %v2500_v36  ;;  %v4211_v36 = vld [vmem:[%s5070_s7 + $0x1e0] ss:$8 sps:$4 sm:$0xff]   ;;  %v833_v17 = vrot.slane %v4851_v60, %v4691_v12 }
 0x2ab   :  { %v2496_v38 = vrot.slane %v2495_v4, 1 }
 0x2ac   :  { %v2503_v40 = vrot.slane %v2502_v8, 1 }
 0x2ad   :  { %v2497_v41 = vadd.f32 %v2496_v38, %v2495_v4  ;;  %v837_v4 = vrot.slane %v4851_v60, %v4694_v15 }
 0x2ae   :  { %v2504_v42 = vadd.f32 %v2503_v40, %v2502_v8  ;;  %v4214_v8 = vld [vmem:[%s5070_s7 + $0x1f0] ss:$8 sps:$4 sm:$0xff]  }
 0x2af   :  { %v2519_v43 = vmul.f32 0.5, %v2497_v41 }
 0x2b0   :  { %v2520_v44 = vmul.f32 0.5, %v2504_v42 }
 0x2b1   :  { %v2523_v45 = vadd.f32 1e-05, %v2519_v43 }
 0x2b2   :  { %v2524_v46 = vadd.f32 1e-05, %v2520_v44 }
 0x2b3   :  { %4233 = vrsqrt.f32 %v2523_v45 }
 0x2b4   :  { %4235 = vrsqrt.f32 %v2524_v46 }
 0x2bd   :  { %v4234_v49 = vpop.eup %4233 }
 0x2be   :  { %v4236_v52 = vpop.eup %4235  ;;  %v2531_v53 = vmul.f32 %v4234_v49, %v2483_v51  ;;  %v4201_v51 = vld [vmem:[%s5070_s7 + $0x1a4] ss:$8 sps:$4 sm:$0xff]  }
 0x2bf   :  { %v2532_v57 = vmul.f32 %v4236_v52, %v2484_v29  ;;  %v4199_v29 = vld [vmem:[%s5070_s7 + $0x1a0] ss:$8 sps:$4 sm:$0xff]  }
 0x2c0   :  { %v2556_v59 = vmul.f32 %v2539_v24, %v2531_v53 }
 0x2c1   :  { %v2557_v61 = vmul.f32 %v2543_v50, %v2532_v57 }
 0x2c2   :  { %v2581_v62 = vadd.f32 %v2564_v56, %v2556_v59 }
 0x2c3   :  { %v2582_v2 = vadd.f32 %v2568_v58, %v2557_v61 }
 0x2c4   :  { %v2585_v9 = vmax.f32 %v2581_v62, 0.0 }
 0x2c5   :  { %v2586_v39 = vmax.f32 %v2582_v2, 0.0 }
 0x2c6   :  { %v2656_v55 = vpack.c.bf16 %v2585_v9, %v2585_v9 }
 0x2c7   :  { %v2657_v7 = vpack.c.bf16 %v2586_v39, %v2586_v39 }
 0x2c9   :  { %3023 = vmatprep.mubr.bf16.mxu0 %v2657_v7 }
 0x2ca   :  { %3024 = vmatmul.mubr.bf16.vlgmr.msra.gmra.mrb[20].mxu0 %v2656_v55 }
 0x2cb   :  { %3033 = vmatpush1.bf16.msra.mxu0 %v4169_v11 }
 0x2cc   :  { %3034 = vmatprep.subr.bf16.mxu0 %v4174_v27 }
 0x2cf   :  { %3035 = vmatpush1.bf16.msra.mxu0 %v4172_v13 }
 0x2d0   :  { %3036 = vmatprep.subr.bf16.mxu0 %v4177_v34 }
 0x2d3   :  { %3037 = vmatpush1.bf16.msra.mxu0 %v4175_v3 }
 0x2d4   :  { %3038 = vmatprep.subr.bf16.mxu0 %v4180_v18 }
 0x2d7   :  { %3039 = vmatpush1.bf16.msra.mxu0 %v4178_v19 }
 0x2d8   :  { %3040 = vmatprep.subr.bf16.mxu0 %v4183_v20 }
 0x2db   :  { %3041 = vmatpush1.bf16.msra.mxu0 %v4181_v21 }
 0x2dc   :  { %3042 = vmatprep.subr.bf16.mxu0 %v4186_v22 }
 0x2df   :  { %3043 = vmatpush1.bf16.msra.mxu0 %v4184_v0 }
 0x2e0   :  { %3044 = vmatprep.subr.bf16.mxu0 %v4189_v23 }
 0x2e3   :  { %3045 = vmatpush1.bf16.msra.mxu0 %v4187_v14 }
 0x2e4   :  { %3046 = vmatprep.subr.bf16.mxu0 %v4192_v26 }
 0x2e7   :  { %3047 = vmatpush1.bf16.msra.mxu0 %v4190_v6 }
 0x2e8   :  { %3048 = vmatprep.subr.bf16.mxu0 %v4195_v54 }
 0x2eb   :  { %3049 = vmatpush1.bf16.msra.mxu0 %v4193_v25 }
 0x2ec   :  { %3050 = vmatprep.subr.bf16.mxu0 %v4198_v37 }
 0x2ef   :  { %3051 = vmatpush1.bf16.msra.mxu0 %v4196_v28 }
 0x2f0   :  { %3052 = vmatprep.subr.bf16.mxu0 %v4201_v51  ;;  %v2547_v51 = vrot.slane %v4866_v47, %v4691_v12 }
 0x2f3   :  { %3053 = vmatpush1.bf16.msra.mxu0 %v4199_v29 }
 0x2f4   :  { %3054 = vmatprep.subr.bf16.mxu0 %v4204_v30  ;;  %v2551_v30 = vrot.slane %v4866_v47, %v4694_v15  ;;  %v4217_v47 = vld [vmem:[%s5074_s11 + $0x40] sm:$0xff]  }
 0x2f5   :  { %3675 = vmatprep.subr.bf16.mxu1 %v4217_v47 }
 0x2f7   :  { %3055 = vmatpush1.bf16.msra.mxu0 %v4202_v35 }
 0x2f8   :  { %3056 = vmatprep.subr.bf16.mxu0 %v4207_v31 }
 0x2fb   :  { %3057 = vmatpush1.bf16.msra.mxu0 %v4205_v32  ;;  %v2572_v32 = vrot.slane %v4871_v48, %v4691_v12  ;;  %v4218_v12 = vld [vmem:[%s5074_s11] sm:$0xff]  }
 0x2fc   :  { %3058 = vmatprep.subr.bf16.mxu0 %v4210_v33  ;;  %3676 = vmatpush3.bf16.msra.mxu1 %v4218_v12  ;;  %v2654_v12 = vld [vmem:[%s5072_s9] sm:$0x3] }
 0x2ff   :  { %3059 = vmatpush1.bf16.msra.mxu0 %v4208_v5  ;;  %v2576_v5 = vrot.slane %v4871_v48, %v4694_v15  ;;  %v4219_v15 = vld [vmem:[%s5074_s11 + $0x48] sm:$0xff]  }
 0x300   :  { %3060 = vmatprep.subr.bf16.mxu0 %v4213_v16  ;;  %v4220_v48 = vld [vmem:[%s5074_s11 + $0x8] sm:$0xff]   ;;  %3677 = vmatprep.subr.bf16.mxu1 %v4219_v15  ;;  %v2655_v15 = vld [vmem:[%s5073_s10] sm:$0x3] }
 0x301   :  { %3678 = vmatpush3.bf16.msra.mxu1 %v4220_v48  ;;  %v3119_v48 = vrot.slane %v2654_v12, %v4676_v63 }
 0x303   :  { %3061 = vmatpush1.bf16.msra.mxu0 %v4211_v36 }
 0x304   :  { %v2443_v38 = vpop.f32.mrb[4].mxu1  ;;  %3062 = vmatprep.subr.bf16.mxu0 %v4216_v10 }
 0x305   :  { %v3701_v40 = vadd.f32 %v2443_v38, %v833_v17  ;;  %v2445_v41 = vpop.f32.mrb[5].mxu1 }
 0x306   :  { %v3702_v42 = vadd.f32 %v2445_v41, %v837_v4  ;;  %v2447_v43 = vpop.f32.mrb[6].mxu1  ;;  %v4221_v41 = vld [vmem:[%s5074_s11 + $0x50] sm:$0xff]  }
 0x307   :  { %v2464_v44 = vsel %vm355_vm1, %v3701_v40, 0.0  ;;  %v2448_v45 = vpop.f32.mrb[7].mxu1  ;;  %3063 = vmatpush1.bf16.msra.mxu0 %v4214_v8  ;;  %3679 = vmatprep.subr.bf16.mxu1 %v4221_v41  ;;  %v4223_v43 = vld [vmem:[%s5074_s11 + $0x58] sm:$0xff]  }
 0x308   :  { %v2465_v46 = vrot.slane %v2464_v44, 4  ;;  %v2471_v24 = vsel %vm355_vm1, %v3702_v42, 0.0  ;;  %v4225_v45 = vld [vmem:[%s5074_s11 + $0x60] sm:$0xff]  }
 0x309   :  { %v2472_v49 = vrot.slane %v2471_v24, 4 }
 0x30a   :  { %v2466_v60 = vadd.f32 %v2465_v46, %v2464_v44  ;;  %v4224_v44 = vld [vmem:[%s5074_s11 + $0x18] sm:$0xff]   ;;  %v4226_v46 = vld [vmem:[%s5074_s11 + $0x20] sm:$0xff]  }
 0x30b   :  { %v2473_v50 = vadd.f32 %v2472_v49, %v2471_v24  ;;  %v4227_v24 = vld [vmem:[%s5074_s11 + $0x68] sm:$0xff]  }
 0x30c   :  { %v2467_v52 = vrot.slane %v2466_v60, 2  ;;  %v4228_v49 = vld [vmem:[%s5074_s11 + $0x28] sm:$0xff]  }
 0x30d   :  { %v2474_v53 = vrot.slane %v2473_v50, 2 }
 0x30e   :  { %v2468_v56 = vadd.f32 %v2467_v52, %v2466_v60  ;;  %v4229_v60 = vld [vmem:[%s5074_s11 + $0x70] sm:$0xff]   ;;  %v4231_v52 = vld [vmem:[%s5074_s11 + $0x78] sm:$0xff]  }
 0x30f   :  { %v2475_v57 = vadd.f32 %v2474_v53, %v2473_v50  ;;  %v4230_v50 = vld [vmem:[%s5074_s11 + $0x30] sm:$0xff]   ;;  %v4232_v53 = vld [vmem:[%s5074_s11 + $0x38] sm:$0xff]  }
 0x310   :  { %v2469_v58 = vrot.slane %v2468_v56, 1 }
 0x311   :  { %v2476_v59 = vrot.slane %v2475_v57, 1 }
 0x312   :  { %v2470_v61 = vadd.f32 %v2469_v58, %v2468_v56  ;;  %v2653_v56 = vld [vmem:[%s5071_s8] sm:$0x3] }
 0x313   :  { %v2477_v62 = vadd.f32 %v2476_v59, %v2475_v57  ;;  %v2664_v57 = vrot.slane %v2653_v56, %v4676_v63  ;;  %v2668_v58 = vrot.slane %v2653_v56, %v4684_v1 }
 0x314   :  { %v2481_v2 = vmul.f32 0.5, %v2470_v61 }
 0x315   :  { %v2482_v9 = vmul.f32 0.5, %v2477_v62 }
 0x316   :  { %v2485_v39 = vsub.f32 %v3701_v40, %v2481_v2 }
 0x317   :  { %v2486_v7 = vsub.f32 %v3702_v42, %v2482_v9  ;;  %v4222_v42 = vld [vmem:[%s5074_s11 + $0x10] sm:$0xff]  }
 0x318   :  { %v2489_v11 = vmul.f32 %v2485_v39, %v2485_v39  ;;  %3680 = vmatpush3.bf16.msra.mxu1 %v4222_v42  ;;  %v3123_v42 = vrot.slane %v2654_v12, %v4684_v1 }
 0x319   :  { %v2490_v55 = vmul.f32 %v2486_v7, %v2486_v7  ;;  %3681 = vmatprep.subr.bf16.mxu1 %v4223_v43 }
 0x31a   :  { %v2505_v27 = vsel %vm355_vm1, %v2489_v11, 0.0 }
 0x31b   :  { %v2506_v13 = vrot.slane %v2505_v27, 4  ;;  %v2512_v34 = vsel %vm355_vm1, %v2490_v55, 0.0 }
 0x31c   :  { %v2513_v3 = vrot.slane %v2512_v34, 4  ;;  %3682 = vmatpush3.bf16.msra.mxu1 %v4224_v44 }
 0x31d   :  { %v2507_v18 = vadd.f32 %v2506_v13, %v2505_v27  ;;  %3683 = vmatprep.subr.bf16.mxu1 %v4225_v45  ;;  %v3132_v45 = vrot.slane %v2655_v15, %v4676_v63 }
 0x31e   :  { %v2514_v19 = vadd.f32 %v2513_v3, %v2512_v34 }
 0x31f   :  { %v2508_v20 = vrot.slane %v2507_v18, 2 }
 0x320   :  { %v2515_v21 = vrot.slane %v2514_v19, 2  ;;  %3684 = vmatpush3.bf16.msra.mxu1 %v4226_v46 }
 0x321   :  { %v2509_v22 = vadd.f32 %v2508_v20, %v2507_v18  ;;  %3685 = vmatprep.subr.bf16.mxu1 %v4227_v24  ;;  %v3136_v24 = vrot.slane %v2655_v15, %v4684_v1 }
 0x322   :  { %v2516_v0 = vadd.f32 %v2515_v21, %v2514_v19 }
 0x323   :  { %v2510_v23 = vrot.slane %v2509_v22, 1 }
 0x324   :  { %v2517_v14 = vrot.slane %v2516_v0, 1  ;;  %3686 = vmatpush3.bf16.msra.mxu1 %v4228_v49 }
 0x325   :  { %v2511_v26 = vadd.f32 %v2510_v23, %v2509_v22  ;;  %3687 = vmatprep.subr.bf16.mxu1 %v4229_v60 }
 0x326   :  { %v2518_v6 = vadd.f32 %v2517_v14, %v2516_v0 }
 0x327   :  { %v2521_v54 = vmul.f32 0.5, %v2511_v26 }
 0x328   :  { %v2522_v25 = vmul.f32 0.5, %v2518_v6  ;;  %3688 = vmatpush3.bf16.msra.mxu1 %v4230_v50 }
 0x329   :  { %v2525_v37 = vadd.f32 1e-05, %v2521_v54  ;;  %3689 = vmatprep.subr.bf16.mxu1 %v4231_v52 }
 0x32a   :  { %v2526_v28 = vadd.f32 1e-05, %v2522_v25 }
 0x32b   :  { %4237 = vrsqrt.f32 %v2525_v37 }
 0x32c   :  { %4239 = vrsqrt.f32 %v2526_v28  ;;  %3690 = vmatpush3.bf16.msra.mxu1 %v4232_v53 }
 0x335   :  { %v4238_v29 = vpop.eup %4237 }
 0x336   :  { %v4240_v35 = vpop.eup %4239  ;;  %v2533_v31 = vmul.f32 %v4238_v29, %v2485_v39 }
 0x337   :  { %v2534_v33 = vmul.f32 %v4240_v35, %v2486_v7 }
 0x338   :  { %v2558_v16 = vmul.f32 %v2547_v51, %v2533_v31 }
 0x339   :  { %v2559_v36 = vmul.f32 %v2551_v30, %v2534_v33 }
 0x33a   :  { %v2583_v10 = vadd.f32 %v2572_v32, %v2558_v16 }
 0x33b   :  { %v2584_v17 = vadd.f32 %v2576_v5, %v2559_v36 }
 0x33c   :  { %v2587_v4 = vmax.f32 %v2583_v10, 0.0 }
 0x33d   :  { %v2588_v8 = vmax.f32 %v2584_v17, 0.0 }
 0x33e   :  { %v2658_v40 = vpack.c.bf16 %v2587_v4, %v2587_v4 }
 0x33f   :  { %v2659_v38 = vpack.c.bf16 %v2588_v8, %v2588_v8 }
 0x341   :  { %3064 = vmatprep.mubr.bf16.mxu0 %v2659_v38 }
 0x342   :  { %3065 = vmatmul.mubr.bf16.vlgmr.msra.gmra.mrb[20].mxu0 %v2658_v40 }
 0x415   :  { %v3066_v59 = vpop.f32.mrb[20].mxu0 }
 0x416   :  { %v3703_v61 = vadd.f32 %v3066_v59, %v2664_v57  ;;  %v3068_v62 = vpop.f32.mrb[21].mxu0 }
 0x417   :  { %v3704_v2 = vadd.f32 %v3068_v62, %v2668_v58  ;;  %v3070_v9 = vpop.f32.mrb[22].mxu0 }
 0x418   :  { %v3073_v39 = vsel %vm355_vm1, %v3703_v61, 0.0  ;;  %v3071_v7 = vpop.f32.mrb[23].mxu0 }
 0x419   :  { %v3074_v11 = vrot.slane %v3073_v39, 4  ;;  %v3080_v55 = vsel %vm355_vm1, %v3704_v2, 0.0 }
 0x41a   :  { %v3081_v27 = vrot.slane %v3080_v55, 4 }
 0x41b   :  { %v3075_v13 = vadd.f32 %v3074_v11, %v3073_v39 }
 0x41c   :  { %v3082_v34 = vadd.f32 %v3081_v27, %v3080_v55 }
 0x41d   :  { %v3076_v3 = vrot.slane %v3075_v13, 2 }
 0x41e   :  { %v3083_v18 = vrot.slane %v3082_v34, 2 }
 0x41f   :  { %v3077_v19 = vadd.f32 %v3076_v3, %v3075_v13 }
 0x420   :  { %v3084_v20 = vadd.f32 %v3083_v18, %v3082_v34 }
 0x421   :  { %v3078_v21 = vrot.slane %v3077_v19, 1 }
 0x422   :  { %v3085_v22 = vrot.slane %v3084_v20, 1 }
 0x423   :  { %v3079_v0 = vadd.f32 %v3078_v21, %v3077_v19 }
 0x424   :  { %v3086_v23 = vadd.f32 %v3085_v22, %v3084_v20 }
 0x425   :  { %v3087_v14 = vmul.f32 0.5, %v3079_v0 }
 0x426   :  { %v3088_v26 = vmul.f32 0.5, %v3086_v23 }
 0x427   :  { %v3089_v6 = vsub.f32 %v3703_v61, %v3087_v14  ;;  %v3657_v61 = vld [vmem:[%s5075_s12] ss:$0 sm:$0xff] }
 0x428   :  { %v3090_v54 = vsub.f32 %v3704_v2, %v3088_v26 }
 0x429   :  { %v3091_v25 = vmul.f32 %v3089_v6, %v3089_v6 }
 0x42a   :  { %v3092_v37 = vmul.f32 %v3090_v54, %v3090_v54 }
 0x42b   :  { %v3093_v28 = vsel %vm355_vm1, %v3091_v25, 0.0 }
 0x42c   :  { %v3094_v51 = vrot.slane %v3093_v28, 4  ;;  %v3100_v29 = vsel %vm355_vm1, %v3092_v37, 0.0 }
 0x42d   :  { %v3101_v30 = vrot.slane %v3100_v29, 4 }
 0x42e   :  { %v3095_v35 = vadd.f32 %v3094_v51, %v3093_v28 }
 0x42f   :  { %v3102_v31 = vadd.f32 %v3101_v30, %v3100_v29 }
 0x430   :  { %v3096_v32 = vrot.slane %v3095_v35, 2 }
 0x431   :  { %v3103_v33 = vrot.slane %v3102_v31, 2 }
 0x432   :  { %v3097_v5 = vadd.f32 %v3096_v32, %v3095_v35 }
 0x433   :  { %v3104_v16 = vadd.f32 %v3103_v33, %v3102_v31 }
 0x434   :  { %v3098_v36 = vrot.slane %v3097_v5, 1 }
 0x435   :  { %v3105_v10 = vrot.slane %v3104_v16, 1 }
 0x436   :  { %v3099_v17 = vadd.f32 %v3098_v36, %v3097_v5 }
 0x437   :  { %v3106_v4 = vadd.f32 %v3105_v10, %v3104_v16 }
 0x438   :  { %v3107_v8 = vmul.f32 0.5, %v3099_v17 }
 0x439   :  { %v3108_v38 = vmul.f32 0.5, %v3106_v4 }
 0x43a   :  { %v3109_v40 = vadd.f32 1e-05, %v3107_v8 }
 0x43b   :  { %v3110_v47 = vadd.f32 1e-05, %v3108_v38 }
 0x43c   :  { %4241 = vrsqrt.f32 %v3109_v40 }
 0x43d   :  { %4243 = vrsqrt.f32 %v3110_v47 }
 0x446   :  { %v4242_v41 = vpop.eup %4241 }
 0x447   :  { %v4244_v43 = vpop.eup %4243  ;;  %v3113_v44 = vmul.f32 %v4242_v41, %v3089_v6 }
 0x448   :  { %v3114_v46 = vmul.f32 %v4244_v43, %v3090_v54 }
 0x449   :  { %v3126_v49 = vmul.f32 %v3119_v48, %v3113_v44 }
 0x44a   :  { %v3127_v60 = vmul.f32 %v3123_v42, %v3114_v46 }
 0x44b   :  { %v3139_v50 = vadd.f32 %v3132_v45, %v3126_v49 }
 0x44c   :  { %v3140_v52 = vadd.f32 %v3136_v24, %v3127_v60 }
 0x44d   :  { %v3141_v53 = vmax.f32 %v3139_v50, 0.0 }
 0x44e   :  { %v3142_v56 = vmax.f32 %v3140_v52, 0.0 }
 0x44f   :  { %v3143_v58 = vpack.c.bf16 %v3141_v53, %v3141_v53 }
 0x450   :  { %v3144_v57 = vpack.c.bf16 %v3142_v56, %v3142_v56 }
 0x452   :  { %3312 = vmatprep.mubr.bf16.mxu1 %v3144_v57 }
 0x453   :  { %3313 = vmatmul.mubr.bf16.vlgmr.msra.gmra.mrb[8].mxu1 %v3143_v58 }
 0x526   :  { %v3691_v59 = vpop.f32.mrb[8].mxu1 }
 0x527   :  { %v3692_v62 = vpop.f32.mrb[9].mxu1 }
 0x528   :  { %v3693_v63 = vadd.f32 %v3692_v62, %v3691_v59  ;;  %v3694_v2 = vpop.f32.mrb[10].mxu1 }
 0x529   :  { %v3695_v9 = vpop.f32.mrb[11].mxu1 }
 0x52a   :  { %v3315_v1 = vadd.f32 %v3693_v63, %v3657_v61 }
 0x52c   :  { %v3674_v39 = vmul.f32 -1.442695, %v3315_v1 }
 0x52e   :  { %4245 = vpow2.f32 %v3674_v39 }
 0x538   :  { %v4246_v7 = vpop.eup %4245 }
 0x539   :  { %v3323_v11 = vadd.f32 1.0, %v4246_v7 }
 0x53b   :  { %4247 = vrcp.f32 %v3323_v11 }
 0x545   :  { %v4248_v55 = vpop.eup %4247 }
 0x546   :  { %3327 = vst.msk [vmem:[%s5076_s13] sm:$0x3] %vm3326_vm4, %v4248_v55 }
 0x547   :  { %3332 = vsyncpa [#allocation3], 1 }

</bundles_post_ra>
